<compile_context>
chip_gen: v6e
topology: v6e:2x2x1
jax: 0.10.0
libtpu: 0.0.40
codegen_flags: <defaults>
</compile_context>

<pallas_src>
import functools

import jax
import jax.numpy as jnp
from jax.experimental import pallas as pl
from jax.experimental.pallas import tpu as pltpu


_VMEM_LIMIT = 64 * 1024 * 1024


# ----------------------------------------------------------------------------
# Tile-size helpers (biggest tiles that keep BlockSpecs legal).
# ----------------------------------------------------------------------------
def _row_tile(m, cap=512):
    """Largest row tile <= cap that divides m (full m when small / ragged)."""
    if m <= cap or m % 8 != 0:
        return m
    t = cap - (cap % 8)
    while t >= 8:
        if m % t == 0:
            return t
        t -= 8
    return m


def _col_tile(n):
    """Lane-dense (multiple of 128) column tile when n is large."""
    if n <= 512 or n % 128 != 0:
        return n
    for t in (512, 384, 256, 128):
        if n % t == 0:
            return t
    return n


def _batch_tile(n, cap=256):
    """Attention-batch tile for the MHA kernel."""
    if n <= cap:
        return n
    for t in range(cap, 0, -1):
        if n % t == 0:
            return t
    return 1


# ----------------------------------------------------------------------------
# Kernel 1: linear layer  y = x @ W + b  (optional ReLU), tiled rows x cols.
# ----------------------------------------------------------------------------
def _linear_kernel(x_ref, w_ref, b_ref, o_ref, *, activation):
    acc = jnp.dot(x_ref[...], w_ref[...], preferred_element_type=jnp.float32)
    acc = acc + b_ref[...]
    if activation == "relu":
        acc = jnp.maximum(acc, 0.0)
    o_ref[...] = acc.astype(o_ref.dtype)


def pallas_linear(x, w, b, activation=None, out_dtype=jnp.bfloat16):
    M, K = x.shape
    N = w.shape[1]
    TM = _row_tile(M)
    TN = _col_tile(N)
    kernel = functools.partial(_linear_kernel, activation=activation)
    return pl.pallas_call(
        kernel,
        out_shape=jax.ShapeDtypeStruct((M, N), out_dtype),
        grid=(M // TM, N // TN),
        in_specs=[
            pl.BlockSpec((TM, K), lambda i, j: (i, 0)),
            pl.BlockSpec((K, TN), lambda i, j: (0, j)),
            pl.BlockSpec((1, TN), lambda i, j: (0, j)),
        ],
        out_specs=pl.BlockSpec((TM, TN), lambda i, j: (i, j)),
        compiler_params=pltpu.CompilerParams(
            dimension_semantics=("parallel", "parallel"),
            vmem_limit_bytes=_VMEM_LIMIT),
    )(x, w, b.reshape(1, N))


# ----------------------------------------------------------------------------
# Kernel 2: fused  y = LayerNorm(resid + x @ W + b)   (eps=1e-5, PyTorch).
# ----------------------------------------------------------------------------
def _linear_add_ln_kernel(x_ref, w_ref, b_ref, r_ref, g_ref, beta_ref, o_ref,
                          *, eps):
    y = jnp.dot(x_ref[...], w_ref[...], preferred_element_type=jnp.float32)
    y = y + b_ref[...] + r_ref[...].astype(jnp.float32)
    mean = jnp.mean(y, axis=-1, keepdims=True)
    yc = y - mean
    var = jnp.mean(yc * yc, axis=-1, keepdims=True)
    out = yc * jax.lax.rsqrt(var + eps) * g_ref[...] + beta_ref[...]
    o_ref[...] = out.astype(o_ref.dtype)


def pallas_linear_add_layernorm(x, w, b, resid, gamma, beta, eps=1e-5,
                                out_dtype=jnp.bfloat16):
    M, K = x.shape
    D = w.shape[1]
    TM = _row_tile(M)
    kernel = functools.partial(_linear_add_ln_kernel, eps=eps)
    return pl.pallas_call(
        kernel,
        out_shape=jax.ShapeDtypeStruct((M, D), out_dtype),
        grid=(M // TM,),
        in_specs=[
            pl.BlockSpec((TM, K), lambda i: (i, 0)),
            pl.BlockSpec((K, D), lambda i: (0, 0)),
            pl.BlockSpec((1, D), lambda i: (0, 0)),
            pl.BlockSpec((TM, D), lambda i: (i, 0)),
            pl.BlockSpec((1, D), lambda i: (0, 0)),
            pl.BlockSpec((1, D), lambda i: (0, 0)),
        ],
        out_specs=pl.BlockSpec((TM, D), lambda i: (i, 0)),
        compiler_params=pltpu.CompilerParams(
            dimension_semantics=("parallel",),
            vmem_limit_bytes=_VMEM_LIMIT),
    )(x, w, b.reshape(1, D), resid, gamma.reshape(1, D), beta.reshape(1, D))


# ----------------------------------------------------------------------------
# Kernel 3: multi-head attention over a block of attention-batches.
#   qkv: (N, S, 3D)  packed Q|K|V (head-major chunks), mask: (S, S) additive.
#   One grid step handles NB attention-batches and ALL H heads -> output block
#   (NB, S, D) is lane-dense (last dim = d_model, not Dh).
# ----------------------------------------------------------------------------
def _mha_kernel(qkv_ref, mask_ref, o_ref, *, nhead, scale):
    _, _, three_d = qkv_ref.shape
    D = three_d // 3
    Dh = D // nhead
    qkv = qkv_ref[...]                       # (NB, S, 3D) bf16
    mask = mask_ref[...]                     # (S, S) f32
    outs = []
    for h in range(nhead):                   # static unroll over heads
        q = qkv[:, :, h * Dh:(h + 1) * Dh]
        k = qkv[:, :, D + h * Dh:D + (h + 1) * Dh]
        v = qkv[:, :, 2 * D + h * Dh:2 * D + (h + 1) * Dh]
        s = jnp.einsum("bqd,bkd->bqk", q, k,
                       preferred_element_type=jnp.float32)
        s = s * scale + mask                 # mask-add in f32
        m = jnp.max(s, axis=-1, keepdims=True)
        p = jnp.exp(s - m)
        denom = jnp.sum(p, axis=-1, keepdims=True)
        p = p * pl.reciprocal(denom, approx=True)
        outs.append(jnp.einsum("bqk,bkd->bqd", p.astype(qkv.dtype), v,
                               preferred_element_type=jnp.float32))
    o_ref[...] = jnp.concatenate(outs, axis=-1).astype(o_ref.dtype)


def pallas_mha(qkv, mask, *, nhead, scale, out_dtype=jnp.bfloat16):
    N, S, three_d = qkv.shape
    D = three_d // 3
    NB = _batch_tile(N)
    kernel = functools.partial(_mha_kernel, nhead=nhead, scale=scale)
    return pl.pallas_call(
        kernel,
        out_shape=jax.ShapeDtypeStruct((N, S, D), out_dtype),
        grid=(N // NB,),
        in_specs=[
            pl.BlockSpec((NB, S, three_d), lambda j: (j, 0, 0)),
            pl.BlockSpec((S, S), lambda j: (0, 0)),
        ],
        out_specs=pl.BlockSpec((NB, S, D), lambda j: (j, 0, 0)),
        compiler_params=pltpu.CompilerParams(
            dimension_semantics=("parallel",),
            vmem_limit_bytes=_VMEM_LIMIT),
    )(qkv, mask)


# ----------------------------------------------------------------------------
# Parameters (deterministic, synthetic).  Matrices in bf16, biases/LN in f32.
# ----------------------------------------------------------------------------
def init_params(key, *, vocab_size, d_model, nhead, num_layers,
                max_seq_length, embedding_dim, dim_feedforward):
    del nhead
    keys = iter(jax.random.split(key, 8 + 10 * num_layers))

    def rnd(shape, scale=0.05, dtype=jnp.bfloat16):
        return (scale * jax.random.normal(next(keys), shape, jnp.float32)
                ).astype(dtype)

    params = dict(
        embedding_matrix=rnd((vocab_size, embedding_dim), 0.1),
        emb_w=rnd((embedding_dim, d_model)),
        emb_b=rnd((d_model,), dtype=jnp.float32),
        pos_enc=rnd((1, max_seq_length, d_model), 0.02),
        emb_ln_g=jnp.ones((d_model,), jnp.float32),
        emb_ln_b=jnp.zeros((d_model,), jnp.float32),
        fc_w=rnd((d_model, vocab_size)),
        fc_b=rnd((vocab_size,), dtype=jnp.float32),
        layers=[],
    )
    for _ in range(num_layers):
        params["layers"].append(dict(
            w_qkv=rnd((d_model, 3 * d_model)),
            b_qkv=rnd((3 * d_model,), dtype=jnp.float32),
            w_o=rnd((d_model, d_model)),
            b_o=rnd((d_model,), dtype=jnp.float32),
            w_ff1=rnd((d_model, dim_feedforward)),
            b_ff1=rnd((dim_feedforward,), dtype=jnp.float32),
            w_ff2=rnd((dim_feedforward, d_model)),
            b_ff2=rnd((d_model,), dtype=jnp.float32),
            ln1_g=jnp.ones((d_model,), jnp.float32),
            ln1_b=jnp.zeros((d_model,), jnp.float32),
            ln2_g=jnp.ones((d_model,), jnp.float32),
            ln2_b=jnp.zeros((d_model,), jnp.float32),
        ))
    return params


# ----------------------------------------------------------------------------
# Forward pass (Pallas kernels on the hot path; only cheap glue in JAX).
# ----------------------------------------------------------------------------
def transformer_forward(params, token_ids, *, nhead):
    B, T = token_ids.shape
    D = params["emb_w"].shape[1]
    Dh = D // nhead
    # PyTorch module attends over axis 0 (=B) with a (B,B) causal mask; T is
    # the attention batch.  Keep activations in (N, S, D) = (T, B, D) layout.
    S, N = B, T
    M = N * S

    emb = params["embedding_matrix"][token_ids]               # (S, N, E) bf16
    emb = jnp.transpose(emb, (1, 0, 2)).reshape(M, -1)        # (N*S, E)
    pos = params["pos_enc"][0, :T, :]                         # (N, D)
    pos = jnp.broadcast_to(pos[:, None, :], (N, S, D)).reshape(M, D)

    # Linear(embedding_dim -> d_model) + positional add + LayerNorm, fused.
    x = pallas_linear_add_layernorm(
        emb, params["emb_w"], params["emb_b"], pos,
        params["emb_ln_g"], params["emb_ln_b"])
    # dropout: identity (eval mode)

    causal = jnp.where(jnp.triu(jnp.ones((S, S), jnp.float32), k=1) == 1.0,
                       jnp.float32(-jnp.inf), jnp.float32(0.0))
    scale = 1.0 / float(Dh) ** 0.5

    for lyr in params["layers"]:
        # --- self-attention block (post-norm encoder layer) ---
        qkv = pallas_linear(x, lyr["w_qkv"], lyr["b_qkv"])             # (M, 3D)
        attn = pallas_mha(qkv.reshape(N, S, 3 * D), causal,
                          nhead=nhead, scale=scale)                    # (N, S, D)
        x = pallas_linear_add_layernorm(attn.reshape(M, D), lyr["w_o"],
                                        lyr["b_o"], x,
                                        lyr["ln1_g"], lyr["ln1_b"])
        # --- feed-forward block ---
        h = pallas_linear(x, lyr["w_ff1"], lyr["b_ff1"], activation="relu")
        x = pallas_linear_add_layernorm(h, lyr["w_ff2"], lyr["b_ff2"], x,
                                        lyr["ln2_g"], lyr["ln2_b"])

    logits = pallas_linear(x, params["fc_w"], params["fc_b"],
                           out_dtype=jnp.float32)                      # (M, V)
    return logits.reshape(N, S, -1).transpose(1, 0, 2)                 # (B, T, V)


# ----------------------------------------------------------------------------
# Pure-JAX reference (f32 activations, same bf16-stored weights).
# ----------------------------------------------------------------------------
def _ln_ref(x, g, b, eps=1e-5):
    mu = jnp.mean(x, axis=-1, keepdims=True)
    var = jnp.mean((x - mu) ** 2, axis=-1, keepdims=True)
    return (x - mu) * jax.lax.rsqrt(var + eps) * g + b


def reference_forward(params, token_ids, *, nhead):
    f32 = lambda a: a.astype(jnp.float32)
    B, T = token_ids.shape
    D = params["emb_w"].shape[1]
    H, Dh = nhead, D // nhead
    x = f32(params["embedding_matrix"])[token_ids] @ f32(params["emb_w"]) \
        + params["emb_b"]
    x = x + f32(params["pos_enc"])[:, :T, :]
    x = _ln_ref(x, params["emb_ln_g"], params["emb_ln_b"])   # (B,T,D)=(S,N,D)
    S, N = B, T
    mask = jnp.where(jnp.triu(jnp.ones((S, S), jnp.float32), 1) == 1.0,
                     -jnp.inf, 0.0)
    scale = 1.0 / float(Dh) ** 0.5
    for lyr in params["layers"]:
        qkv = x @ f32(lyr["w_qkv"]) + lyr["b_qkv"]
        q, k, v = jnp.split(qkv, 3, axis=-1)

        def heads(t):                     # (S,N,D) -> (N,H,S,Dh)
            return t.reshape(S, N, H, Dh).transpose(1, 2, 0, 3)

        sc = jnp.einsum("nhsd,nhtd->nhst", heads(q), heads(k)) * scale + mask
        p = jax.nn.softmax(sc, axis=-1)
        o = jnp.einsum("nhst,nhtd->nhsd", p, heads(v))
        o = o.transpose(2, 0, 1, 3).reshape(S, N, D)
        o = o @ f32(lyr["w_o"]) + lyr["b_o"]
        x = _ln_ref(x + o, lyr["ln1_g"], lyr["ln1_b"])
        h = jax.nn.relu(x @ f32(lyr["w_ff1"]) + lyr["b_ff1"])
        h = h @ f32(lyr["w_ff2"]) + lyr["b_ff2"]
        x = _ln_ref(x + h, lyr["ln2_g"], lyr["ln2_b"])
    return x @ f32(params["fc_w"]) + params["fc_b"]


# ----------------------------------------------------------------------------
if __name__ == "__main__":
    vocab_size, d_model, nhead, num_layers = 32, 32, 4, 2
    max_seq_length, embedding_dim = 16, 16
    dim_feedforward = 2048  # nn.TransformerEncoderLayer default
    B, T = 2, 8

    root = jax.random.PRNGKey(0)
    pkey, dkey = jax.random.split(root)
    params = init_params(
        pkey, vocab_size=vocab_size, d_model=d_model, nhead=nhead,
        num_layers=num_layers, max_seq_length=max_seq_length,
        embedding_dim=embedding_dim, dim_feedforward=dim_feedforward)

    token_ids = jax.random.randint(dkey, (B, T), 0, vocab_size, dtype=jnp.int32)

    fwd = jax.jit(functools.partial(transformer_forward, nhead=nhead))
    logits = jax.block_until_ready(fwd(params, token_ids))
    assert logits.shape == (B, T, vocab_size)

    with jax.default_matmul_precision("highest"):
        ref = jax.block_until_ready(
            reference_forward(params, token_ids, nhead=nhead))

    max_err = float(jnp.max(jnp.abs(logits - ref)))
    if not bool(jnp.allclose(logits, ref, atol=3e-2, rtol=3e-2)):
        raise SystemExit(f"numerical mismatch vs reference: max abs err = {max_err}")

    print("KERNEL_OK")
</pallas_src>

<mosaic_0001>
module attributes {stable_mosaic.version = 11 : i64} {
  func.func @_mha_kernel(%arg0: i32, %arg1: memref<8x2x96xbf16, #tpu.memory_space<vmem>>, %arg2: memref<2x2xf32, #tpu.memory_space<vmem>>, %arg3: memref<8x2x32xbf16, #tpu.memory_space<vmem>>) attributes {dimension_semantics = [#tpu.dimension_semantics<parallel>], iteration_bounds = array<i64: 1>, scalar_prefetch = 0 : i64, scratch_operands = 0 : i64, tpu.core_type = #tpu.core_type<tc>, window_params = [{transform_indices = @transform_0, window_bounds = array<i64: 8, 2, 96>}, {pipeline_mode = #tpu.pipeline_mode<synchronous>, transform_indices = @transform_1, window_bounds = array<i64: 2, 2>}, {transform_indices = @transform_2, window_bounds = array<i64: 8, 2, 32>}]} {
    %c0 = arith.constant 0 : index
    %c0_0 = arith.constant 0 : index
    %c0_1 = arith.constant 0 : index
    %0 = vector.load %arg1[%c0, %c0_0, %c0_1] : memref<8x2x96xbf16, #tpu.memory_space<vmem>>, vector<8x2x96xbf16>
    %c0_2 = arith.constant 0 : index
    %c0_3 = arith.constant 0 : index
    %1 = vector.load %arg2[%c0_2, %c0_3] : memref<2x2xf32, #tpu.memory_space<vmem>>, vector<2x2xf32>
    %2 = vector.extract_strided_slice %0 {offsets = [0, 0, 0], sizes = [8, 2, 8], strides = [1, 1, 1]} : vector<8x2x96xbf16> to vector<8x2x8xbf16>
    %3 = vector.extract_strided_slice %0 {offsets = [0, 0, 32], sizes = [8, 2, 8], strides = [1, 1, 1]} : vector<8x2x96xbf16> to vector<8x2x8xbf16>
    %4 = vector.extract_strided_slice %0 {offsets = [0, 0, 64], sizes = [8, 2, 8], strides = [1, 1, 1]} : vector<8x2x96xbf16> to vector<8x2x8xbf16>
    "tpu.trace_start"() <{level = 10 : i32, message = "bqd,bkd->bqk"}> : () -> ()
    %cst = arith.constant dense<0.000000e+00> : vector<8x2x2xf32>
    %5 = tpu.matmul %2, %3, %cst {dimension_numbers = #tpu.dot_dimension_numbers<[2], [2], [1], [1], [0, 0, 0, 1, 1, 1], [0], [0]>} : vector<8x2x8xbf16>, vector<8x2x8xbf16>, vector<8x2x2xf32> -> vector<8x2x2xf32>
    "tpu.trace_stop"() : () -> ()
    %cst_4 = arith.constant 0.353553385 : f32
    %6 = vector.broadcast %cst_4 : f32 to vector<8x2x2xf32>
    %7 = arith.mulf %5, %6 : vector<8x2x2xf32>
    %8 = vector.shape_cast %1 : vector<2x2xf32> to vector<1x2x2xf32>
    %9 = vector.broadcast %8 : vector<1x2x2xf32> to vector<8x2x2xf32>
    %10 = arith.addf %7, %9 : vector<8x2x2xf32>
    %cst_5 = arith.constant dense<0xFF800000> : vector<8x2xf32>
    %11 = vector.multi_reduction <maximumf>, %10, %cst_5 [2] : vector<8x2x2xf32> to vector<8x2xf32>
    %12 = vector.shape_cast %11 : vector<8x2xf32> to vector<8x2x1xf32>
    %13 = vector.broadcast %12 : vector<8x2x1xf32> to vector<8x2x2xf32>
    %14 = arith.subf %10, %13 : vector<8x2x2xf32>
    %15 = math.exp %14 : vector<8x2x2xf32>
    %cst_6 = arith.constant dense<0.000000e+00> : vector<8x2xf32>
    %16 = vector.multi_reduction <add>, %15, %cst_6 [2] : vector<8x2x2xf32> to vector<8x2xf32>
    %17 = vector.shape_cast %16 : vector<8x2xf32> to vector<8x2x1xf32>
    %18 = tpu.reciprocal %17 {approx = true} : vector<8x2x1xf32> -> vector<8x2x1xf32>
    %19 = vector.broadcast %18 : vector<8x2x1xf32> to vector<8x2x2xf32>
    %20 = arith.mulf %15, %19 : vector<8x2x2xf32>
    %21 = arith.truncf %20 : vector<8x2x2xf32> to vector<8x2x2xbf16>
    "tpu.trace_start"() <{level = 10 : i32, message = "bqk,bkd->bqd"}> : () -> ()
    %cst_7 = arith.constant dense<0.000000e+00> : vector<8x2x8xf32>
    %22 = tpu.matmul %21, %4, %cst_7 {dimension_numbers = #tpu.dot_dimension_numbers<[2], [1], [1], [2], [0, 0, 0, 1, 1, 2], [0], [0]>} : vector<8x2x2xbf16>, vector<8x2x8xbf16>, vector<8x2x8xf32> -> vector<8x2x8xf32>
    "tpu.trace_stop"() : () -> ()
    %23 = vector.extract_strided_slice %0 {offsets = [0, 0, 8], sizes = [8, 2, 8], strides = [1, 1, 1]} : vector<8x2x96xbf16> to vector<8x2x8xbf16>
    %24 = vector.extract_strided_slice %0 {offsets = [0, 0, 40], sizes = [8, 2, 8], strides = [1, 1, 1]} : vector<8x2x96xbf16> to vector<8x2x8xbf16>
    %25 = vector.extract_strided_slice %0 {offsets = [0, 0, 72], sizes = [8, 2, 8], strides = [1, 1, 1]} : vector<8x2x96xbf16> to vector<8x2x8xbf16>
    "tpu.trace_start"() <{level = 10 : i32, message = "bqd,bkd->bqk"}> : () -> ()
    %cst_8 = arith.constant dense<0.000000e+00> : vector<8x2x2xf32>
    %26 = tpu.matmul %23, %24, %cst_8 {dimension_numbers = #tpu.dot_dimension_numbers<[2], [2], [1], [1], [0, 0, 0, 1, 1, 1], [0], [0]>} : vector<8x2x8xbf16>, vector<8x2x8xbf16>, vector<8x2x2xf32> -> vector<8x2x2xf32>
    "tpu.trace_stop"() : () -> ()
    %cst_9 = arith.constant 0.353553385 : f32
    %27 = vector.broadcast %cst_9 : f32 to vector<8x2x2xf32>
    %28 = arith.mulf %26, %27 : vector<8x2x2xf32>
    %29 = vector.shape_cast %1 : vector<2x2xf32> to vector<1x2x2xf32>
    %30 = vector.broadcast %29 : vector<1x2x2xf32> to vector<8x2x2xf32>
    %31 = arith.addf %28, %30 : vector<8x2x2xf32>
    %cst_10 = arith.constant dense<0xFF800000> : vector<8x2xf32>
    %32 = vector.multi_reduction <maximumf>, %31, %cst_10 [2] : vector<8x2x2xf32> to vector<8x2xf32>
    %33 = vector.shape_cast %32 : vector<8x2xf32> to vector<8x2x1xf32>
    %34 = vector.broadcast %33 : vector<8x2x1xf32> to vector<8x2x2xf32>
    %35 = arith.subf %31, %34 : vector<8x2x2xf32>
    %36 = math.exp %35 : vector<8x2x2xf32>
    %cst_11 = arith.constant dense<0.000000e+00> : vector<8x2xf32>
    %37 = vector.multi_reduction <add>, %36, %cst_11 [2] : vector<8x2x2xf32> to vector<8x2xf32>
    %38 = vector.shape_cast %37 : vector<8x2xf32> to vector<8x2x1xf32>
    %39 = tpu.reciprocal %38 {approx = true} : vector<8x2x1xf32> -> vector<8x2x1xf32>
    %40 = vector.broadcast %39 : vector<8x2x1xf32> to vector<8x2x2xf32>
    %41 = arith.mulf %36, %40 : vector<8x2x2xf32>
    %42 = arith.truncf %41 : vector<8x2x2xf32> to vector<8x2x2xbf16>
    "tpu.trace_start"() <{level = 10 : i32, message = "bqk,bkd->bqd"}> : () -> ()
    %cst_12 = arith.constant dense<0.000000e+00> : vector<8x2x8xf32>
    %43 = tpu.matmul %42, %25, %cst_12 {dimension_numbers = #tpu.dot_dimension_numbers<[2], [1], [1], [2], [0, 0, 0, 1, 1, 2], [0], [0]>} : vector<8x2x2xbf16>, vector<8x2x8xbf16>, vector<8x2x8xf32> -> vector<8x2x8xf32>
    "tpu.trace_stop"() : () -> ()
    %44 = vector.extract_strided_slice %0 {offsets = [0, 0, 16], sizes = [8, 2, 8], strides = [1, 1, 1]} : vector<8x2x96xbf16> to vector<8x2x8xbf16>
    %45 = vector.extract_strided_slice %0 {offsets = [0, 0, 48], sizes = [8, 2, 8], strides = [1, 1, 1]} : vector<8x2x96xbf16> to vector<8x2x8xbf16>
    %46 = vector.extract_strided_slice %0 {offsets = [0, 0, 80], sizes = [8, 2, 8], strides = [1, 1, 1]} : vector<8x2x96xbf16> to vector<8x2x8xbf16>
    "tpu.trace_start"() <{level = 10 : i32, message = "bqd,bkd->bqk"}> : () -> ()
    %cst_13 = arith.constant dense<0.000000e+00> : vector<8x2x2xf32>
    %47 = tpu.matmul %44, %45, %cst_13 {dimension_numbers = #tpu.dot_dimension_numbers<[2], [2], [1], [1], [0, 0, 0, 1, 1, 1], [0], [0]>} : vector<8x2x8xbf16>, vector<8x2x8xbf16>, vector<8x2x2xf32> -> vector<8x2x2xf32>
    "tpu.trace_stop"() : () -> ()
    %cst_14 = arith.constant 0.353553385 : f32
    %48 = vector.broadcast %cst_14 : f32 to vector<8x2x2xf32>
    %49 = arith.mulf %47, %48 : vector<8x2x2xf32>
    %50 = vector.shape_cast %1 : vector<2x2xf32> to vector<1x2x2xf32>
    %51 = vector.broadcast %50 : vector<1x2x2xf32> to vector<8x2x2xf32>
    %52 = arith.addf %49, %51 : vector<8x2x2xf32>
    %cst_15 = arith.constant dense<0xFF800000> : vector<8x2xf32>
    %53 = vector.multi_reduction <maximumf>, %52, %cst_15 [2] : vector<8x2x2xf32> to vector<8x2xf32>
    %54 = vector.shape_cast %53 : vector<8x2xf32> to vector<8x2x1xf32>
    %55 = vector.broadcast %54 : vector<8x2x1xf32> to vector<8x2x2xf32>
    %56 = arith.subf %52, %55 : vector<8x2x2xf32>
    %57 = math.exp %56 : vector<8x2x2xf32>
    %cst_16 = arith.constant dense<0.000000e+00> : vector<8x2xf32>
    %58 = vector.multi_reduction <add>, %57, %cst_16 [2] : vector<8x2x2xf32> to vector<8x2xf32>
    %59 = vector.shape_cast %58 : vector<8x2xf32> to vector<8x2x1xf32>
    %60 = tpu.reciprocal %59 {approx = true} : vector<8x2x1xf32> -> vector<8x2x1xf32>
    %61 = vector.broadcast %60 : vector<8x2x1xf32> to vector<8x2x2xf32>
    %62 = arith.mulf %57, %61 : vector<8x2x2xf32>
    %63 = arith.truncf %62 : vector<8x2x2xf32> to vector<8x2x2xbf16>
    "tpu.trace_start"() <{level = 10 : i32, message = "bqk,bkd->bqd"}> : () -> ()
    %cst_17 = arith.constant dense<0.000000e+00> : vector<8x2x8xf32>
    %64 = tpu.matmul %63, %46, %cst_17 {dimension_numbers = #tpu.dot_dimension_numbers<[2], [1], [1], [2], [0, 0, 0, 1, 1, 2], [0], [0]>} : vector<8x2x2xbf16>, vector<8x2x8xbf16>, vector<8x2x8xf32> -> vector<8x2x8xf32>
    "tpu.trace_stop"() : () -> ()
    %65 = vector.extract_strided_slice %0 {offsets = [0, 0, 24], sizes = [8, 2, 8], strides = [1, 1, 1]} : vector<8x2x96xbf16> to vector<8x2x8xbf16>
    %66 = vector.extract_strided_slice %0 {offsets = [0, 0, 56], sizes = [8, 2, 8], strides = [1, 1, 1]} : vector<8x2x96xbf16> to vector<8x2x8xbf16>
    %67 = vector.extract_strided_slice %0 {offsets = [0, 0, 88], sizes = [8, 2, 8], strides = [1, 1, 1]} : vector<8x2x96xbf16> to vector<8x2x8xbf16>
    "tpu.trace_start"() <{level = 10 : i32, message = "bqd,bkd->bqk"}> : () -> ()
    %cst_18 = arith.constant dense<0.000000e+00> : vector<8x2x2xf32>
    %68 = tpu.matmul %65, %66, %cst_18 {dimension_numbers = #tpu.dot_dimension_numbers<[2], [2], [1], [1], [0, 0, 0, 1, 1, 1], [0], [0]>} : vector<8x2x8xbf16>, vector<8x2x8xbf16>, vector<8x2x2xf32> -> vector<8x2x2xf32>
    "tpu.trace_stop"() : () -> ()
    %cst_19 = arith.constant 0.353553385 : f32
    %69 = vector.broadcast %cst_19 : f32 to vector<8x2x2xf32>
    %70 = arith.mulf %68, %69 : vector<8x2x2xf32>
    %71 = vector.shape_cast %1 : vector<2x2xf32> to vector<1x2x2xf32>
    %72 = vector.broadcast %71 : vector<1x2x2xf32> to vector<8x2x2xf32>
    %73 = arith.addf %70, %72 : vector<8x2x2xf32>
    %cst_20 = arith.constant dense<0xFF800000> : vector<8x2xf32>
    %74 = vector.multi_reduction <maximumf>, %73, %cst_20 [2] : vector<8x2x2xf32> to vector<8x2xf32>
    %75 = vector.shape_cast %74 : vector<8x2xf32> to vector<8x2x1xf32>
    %76 = vector.broadcast %75 : vector<8x2x1xf32> to vector<8x2x2xf32>
    %77 = arith.subf %73, %76 : vector<8x2x2xf32>
    %78 = math.exp %77 : vector<8x2x2xf32>
    %cst_21 = arith.constant dense<0.000000e+00> : vector<8x2xf32>
    %79 = vector.multi_reduction <add>, %78, %cst_21 [2] : vector<8x2x2xf32> to vector<8x2xf32>
    %80 = vector.shape_cast %79 : vector<8x2xf32> to vector<8x2x1xf32>
    %81 = tpu.reciprocal %80 {approx = true} : vector<8x2x1xf32> -> vector<8x2x1xf32>
    %82 = vector.broadcast %81 : vector<8x2x1xf32> to vector<8x2x2xf32>
    %83 = arith.mulf %78, %82 : vector<8x2x2xf32>
    %84 = arith.truncf %83 : vector<8x2x2xf32> to vector<8x2x2xbf16>
    "tpu.trace_start"() <{level = 10 : i32, message = "bqk,bkd->bqd"}> : () -> ()
    %cst_22 = arith.constant dense<0.000000e+00> : vector<8x2x8xf32>
    %85 = tpu.matmul %84, %67, %cst_22 {dimension_numbers = #tpu.dot_dimension_numbers<[2], [1], [1], [2], [0, 0, 0, 1, 1, 2], [0], [0]>} : vector<8x2x2xbf16>, vector<8x2x8xbf16>, vector<8x2x8xf32> -> vector<8x2x8xf32>
    "tpu.trace_stop"() : () -> ()
    %86 = tpu.concatenate %22, %43, %64, %85 in 2 : vector<8x2x8xf32>, vector<8x2x8xf32>, vector<8x2x8xf32>, vector<8x2x8xf32> -> vector<8x2x32xf32>
    %87 = arith.truncf %86 : vector<8x2x32xf32> to vector<8x2x32xbf16>
    %c0_23 = arith.constant 0 : index
    %c0_24 = arith.constant 0 : index
    %c0_25 = arith.constant 0 : index
    %88 = vector.load %arg3[%c0_23, %c0_24, %c0_25] : memref<8x2x32xbf16, #tpu.memory_space<vmem>>, vector<8x2x32xbf16>
    tpu.vector_store %arg3[%c0_23, %c0_24, %c0_25], %87 {strides = array<i32>} : memref<8x2x32xbf16, #tpu.memory_space<vmem>>, vector<8x2x32xbf16>,
    return
  }
  func.func @transform_0(%arg0: i32) -> (i32, i32, i32) {
    %c0_i32 = arith.constant 0 : i32
    %c0_i32_0 = arith.constant 0 : i32
    %c0_i32_1 = arith.constant 0 : i32
    return %arg0, %c0_i32, %c0_i32_0 : i32, i32, i32
  }
  func.func @transform_1(%arg0: i32) -> (i32, i32) {
    %c0_i32 = arith.constant 0 : i32
    %c0_i32_0 = arith.constant 0 : i32
    %c0_i32_1 = arith.constant 0 : i32
    return %c0_i32, %c0_i32_0 : i32, i32
  }
  func.func @transform_2(%arg0: i32) -> (i32, i32, i32) {
    %c0_i32 = arith.constant 0 : i32
    %c0_i32_0 = arith.constant 0 : i32
    %c0_i32_1 = arith.constant 0 : i32
    return %arg0, %c0_i32, %c0_i32_0 : i32, i32, i32
  }
}

module attributes {stable_mosaic.version = 11 : i64} {
  func.func @_linear_add_ln_kernel(%arg0: i32, %arg1: memref<16x16xbf16, #tpu.memory_space<vmem>>, %arg2: memref<16x32xbf16, #tpu.memory_space<vmem>>, %arg3: memref<1x32xf32, #tpu.memory_space<vmem>>, %arg4: memref<16x32xbf16, #tpu.memory_space<vmem>>, %arg5: memref<1x32xf32, #tpu.memory_space<vmem>>, %arg6: memref<1x32xf32, #tpu.memory_space<vmem>>, %arg7: memref<16x32xbf16, #tpu.memory_space<vmem>>) attributes {dimension_semantics = [#tpu.dimension_semantics<parallel>], iteration_bounds = array<i64: 1>, scalar_prefetch = 0 : i64, scratch_operands = 0 : i64, tpu.core_type = #tpu.core_type<tc>, window_params = [{transform_indices = @transform_0, window_bounds = array<i64: 16, 16>}, {pipeline_mode = #tpu.pipeline_mode<synchronous>, transform_indices = @transform_1, window_bounds = array<i64: 16, 32>}, {pipeline_mode = #tpu.pipeline_mode<synchronous>, transform_indices = @transform_2, window_bounds = array<i64: 1, 32>}, {transform_indices = @transform_3, window_bounds = array<i64: 16, 32>}, {pipeline_mode = #tpu.pipeline_mode<synchronous>, transform_indices = @transform_4, window_bounds = array<i64: 1, 32>}, {pipeline_mode = #tpu.pipeline_mode<synchronous>, transform_indices = @transform_5, window_bounds = array<i64: 1, 32>}, {transform_indices = @transform_6, window_bounds = array<i64: 16, 32>}]} {
    %c0 = arith.constant 0 : index
    %c0_0 = arith.constant 0 : index
    %0 = vector.load %arg1[%c0, %c0_0] : memref<16x16xbf16, #tpu.memory_space<vmem>>, vector<16x16xbf16>
    %c0_1 = arith.constant 0 : index
    %c0_2 = arith.constant 0 : index
    %1 = vector.load %arg2[%c0_1, %c0_2] : memref<16x32xbf16, #tpu.memory_space<vmem>>, vector<16x32xbf16>
    %cst = arith.constant dense<0.000000e+00> : vector<16x32xf32>
    %2 = tpu.matmul %0, %1, %cst {dimension_numbers = #tpu.dot_dimension_numbers<[1], [0], [0], [1], [0, 0, 1, 1], [], []>} : vector<16x16xbf16>, vector<16x32xbf16>, vector<16x32xf32> -> vector<16x32xf32>
    %c0_3 = arith.constant 0 : index
    %c0_4 = arith.constant 0 : index
    %3 = vector.load %arg3[%c0_3, %c0_4] : memref<1x32xf32, #tpu.memory_space<vmem>>, vector<1x32xf32>
    %4 = vector.broadcast %3 : vector<1x32xf32> to vector<16x32xf32>
    %5 = arith.addf %2, %4 : vector<16x32xf32>
    %c0_5 = arith.constant 0 : index
    %c0_6 = arith.constant 0 : index
    %6 = vector.load %arg4[%c0_5, %c0_6] : memref<16x32xbf16, #tpu.memory_space<vmem>>, vector<16x32xbf16>
    %7 = arith.extf %6 : vector<16x32xbf16> to vector<16x32xf32>
    %8 = arith.addf %5, %7 : vector<16x32xf32>
    %cst_7 = arith.constant dense<0.000000e+00> : vector<16xf32>
    %9 = vector.multi_reduction <add>, %8, %cst_7 [1] : vector<16x32xf32> to vector<16xf32>
    %10 = vector.shape_cast %9 : vector<16xf32> to vector<16x1xf32>
    %cst_8 = arith.constant 3.200000e+01 : f32
    %11 = vector.broadcast %cst_8 : f32 to vector<16x1xf32>
    %12 = arith.divf %10, %11 : vector<16x1xf32>
    %13 = vector.broadcast %12 : vector<16x1xf32> to vector<16x32xf32>
    %14 = arith.subf %8, %13 : vector<16x32xf32>
    %15 = arith.mulf %14, %14 : vector<16x32xf32>
    %cst_9 = arith.constant dense<0.000000e+00> : vector<16xf32>
    %16 = vector.multi_reduction <add>, %15, %cst_9 [1] : vector<16x32xf32> to vector<16xf32>
    %17 = vector.shape_cast %16 : vector<16xf32> to vector<16x1xf32>
    %cst_10 = arith.constant 3.200000e+01 : f32
    %18 = vector.broadcast %cst_10 : f32 to vector<16x1xf32>
    %19 = arith.divf %17, %18 : vector<16x1xf32>
    %cst_11 = arith.constant 9.99999974E-6 : f32
    %20 = vector.broadcast %cst_11 : f32 to vector<16x1xf32>
    %21 = arith.addf %19, %20 : vector<16x1xf32>
    %22 = math.rsqrt %21 : vector<16x1xf32>
    %23 = vector.broadcast %22 : vector<16x1xf32> to vector<16x32xf32>
    %24 = arith.mulf %14, %23 : vector<16x32xf32>
    %c0_12 = arith.constant 0 : index
    %c0_13 = arith.constant 0 : index
    %25 = vector.load %arg5[%c0_12, %c0_13] : memref<1x32xf32, #tpu.memory_space<vmem>>, vector<1x32xf32>
    %26 = vector.broadcast %25 : vector<1x32xf32> to vector<16x32xf32>
    %27 = arith.mulf %24, %26 : vector<16x32xf32>
    %c0_14 = arith.constant 0 : index
    %c0_15 = arith.constant 0 : index
    %28 = vector.load %arg6[%c0_14, %c0_15] : memref<1x32xf32, #tpu.memory_space<vmem>>, vector<1x32xf32>
    %29 = vector.broadcast %28 : vector<1x32xf32> to vector<16x32xf32>
    %30 = arith.addf %27, %29 : vector<16x32xf32>
    %31 = arith.truncf %30 : vector<16x32xf32> to vector<16x32xbf16>
    %c0_16 = arith.constant 0 : index
    %c0_17 = arith.constant 0 : index
    %32 = vector.load %arg7[%c0_16, %c0_17] : memref<16x32xbf16, #tpu.memory_space<vmem>>, vector<16x32xbf16>
    tpu.vector_store %arg7[%c0_16, %c0_17], %31 {strides = array<i32>} : memref<16x32xbf16, #tpu.memory_space<vmem>>, vector<16x32xbf16>,
    return
  }
  func.func @transform_0(%arg0: i32) -> (i32, i32) {
    %c0_i32 = arith.constant 0 : i32
    %c0_i32_0 = arith.constant 0 : i32
    return %arg0, %c0_i32 : i32, i32
  }
  func.func @transform_1(%arg0: i32) -> (i32, i32) {
    %c0_i32 = arith.constant 0 : i32
    %c0_i32_0 = arith.constant 0 : i32
    %c0_i32_1 = arith.constant 0 : i32
    return %c0_i32, %c0_i32_0 : i32, i32
  }
  func.func @transform_2(%arg0: i32) -> (i32, i32) {
    %c0_i32 = arith.constant 0 : i32
    %c0_i32_0 = arith.constant 0 : i32
    %c0_i32_1 = arith.constant 0 : i32
    return %c0_i32, %c0_i32_0 : i32, i32
  }
  func.func @transform_3(%arg0: i32) -> (i32, i32) {
    %c0_i32 = arith.constant 0 : i32
    %c0_i32_0 = arith.constant 0 : i32
    return %arg0, %c0_i32 : i32, i32
  }
  func.func @transform_4(%arg0: i32) -> (i32, i32) {
    %c0_i32 = arith.constant 0 : i32
    %c0_i32_0 = arith.constant 0 : i32
    %c0_i32_1 = arith.constant 0 : i32
    return %c0_i32, %c0_i32_0 : i32, i32
  }
  func.func @transform_5(%arg0: i32) -> (i32, i32) {
    %c0_i32 = arith.constant 0 : i32
    %c0_i32_0 = arith.constant 0 : i32
    %c0_i32_1 = arith.constant 0 : i32
    return %c0_i32, %c0_i32_0 : i32, i32
  }
  func.func @transform_6(%arg0: i32) -> (i32, i32) {
    %c0_i32 = arith.constant 0 : i32
    %c0_i32_0 = arith.constant 0 : i32
    return %arg0, %c0_i32 : i32, i32
  }
}

module attributes {stable_mosaic.version = 11 : i64} {
  func.func @_linear_kernel(%arg0: i32, %arg1: i32, %arg2: memref<16x32xbf16, #tpu.memory_space<vmem>>, %arg3: memref<32x96xbf16, #tpu.memory_space<vmem>>, %arg4: memref<1x96xf32, #tpu.memory_space<vmem>>, %arg5: memref<16x96xbf16, #tpu.memory_space<vmem>>) attributes {dimension_semantics = [#tpu.dimension_semantics<parallel>, #tpu.dimension_semantics<parallel>], iteration_bounds = array<i64: 1, 1>, scalar_prefetch = 0 : i64, scratch_operands = 0 : i64, tpu.core_type = #tpu.core_type<tc>, window_params = [{transform_indices = @transform_0, window_bounds = array<i64: 16, 32>}, {transform_indices = @transform_1, window_bounds = array<i64: 32, 96>}, {transform_indices = @transform_2, window_bounds = array<i64: 1, 96>}, {transform_indices = @transform_3, window_bounds = array<i64: 16, 96>}]} {
    %c0 = arith.constant 0 : index
    %c0_0 = arith.constant 0 : index
    %0 = vector.load %arg2[%c0, %c0_0] : memref<16x32xbf16, #tpu.memory_space<vmem>>, vector<16x32xbf16>
    %c0_1 = arith.constant 0 : index
    %c0_2 = arith.constant 0 : index
    %1 = vector.load %arg3[%c0_1, %c0_2] : memref<32x96xbf16, #tpu.memory_space<vmem>>, vector<32x96xbf16>
    %cst = arith.constant dense<0.000000e+00> : vector<16x96xf32>
    %2 = tpu.matmul %0, %1, %cst {dimension_numbers = #tpu.dot_dimension_numbers<[1], [0], [0], [1], [0, 0, 1, 1], [], []>} : vector<16x32xbf16>, vector<32x96xbf16>, vector<16x96xf32> -> vector<16x96xf32>
    %c0_3 = arith.constant 0 : index
    %c0_4 = arith.constant 0 : index
    %3 = vector.load %arg4[%c0_3, %c0_4] : memref<1x96xf32, #tpu.memory_space<vmem>>, vector<1x96xf32>
    %4 = vector.broadcast %3 : vector<1x96xf32> to vector<16x96xf32>
    %5 = arith.addf %2, %4 : vector<16x96xf32>
    %6 = arith.truncf %5 : vector<16x96xf32> to vector<16x96xbf16>
    %c0_5 = arith.constant 0 : index
    %c0_6 = arith.constant 0 : index
    %7 = vector.load %arg5[%c0_5, %c0_6] : memref<16x96xbf16, #tpu.memory_space<vmem>>, vector<16x96xbf16>
    tpu.vector_store %arg5[%c0_5, %c0_6], %6 {strides = array<i32>} : memref<16x96xbf16, #tpu.memory_space<vmem>>, vector<16x96xbf16>,
    return
  }
  func.func @transform_0(%arg0: i32, %arg1: i32) -> (i32, i32) {
    %c0_i32 = arith.constant 0 : i32
    %c0_i32_0 = arith.constant 0 : i32
    return %arg0, %c0_i32 : i32, i32
  }
  func.func @transform_1(%arg0: i32, %arg1: i32) -> (i32, i32) {
    %c0_i32 = arith.constant 0 : i32
    %c0_i32_0 = arith.constant 0 : i32
    return %c0_i32, %arg1 : i32, i32
  }
  func.func @transform_2(%arg0: i32, %arg1: i32) -> (i32, i32) {
    %c0_i32 = arith.constant 0 : i32
    %c0_i32_0 = arith.constant 0 : i32
    return %c0_i32, %arg1 : i32, i32
  }
  func.func @transform_3(%arg0: i32, %arg1: i32) -> (i32, i32) {
    %c0_i32 = arith.constant 0 : i32
    return %arg0, %arg1 : i32, i32
  }
}

module attributes {stable_mosaic.version = 11 : i64} {
  func.func @_linear_add_ln_kernel(%arg0: i32, %arg1: memref<16x32xbf16, #tpu.memory_space<vmem>>, %arg2: memref<32x32xbf16, #tpu.memory_space<vmem>>, %arg3: memref<1x32xf32, #tpu.memory_space<vmem>>, %arg4: memref<16x32xbf16, #tpu.memory_space<vmem>>, %arg5: memref<1x32xf32, #tpu.memory_space<vmem>>, %arg6: memref<1x32xf32, #tpu.memory_space<vmem>>, %arg7: memref<16x32xbf16, #tpu.memory_space<vmem>>) attributes {dimension_semantics = [#tpu.dimension_semantics<parallel>], iteration_bounds = array<i64: 1>, scalar_prefetch = 0 : i64, scratch_operands = 0 : i64, tpu.core_type = #tpu.core_type<tc>, window_params = [{transform_indices = @transform_0, window_bounds = array<i64: 16, 32>}, {pipeline_mode = #tpu.pipeline_mode<synchronous>, transform_indices = @transform_1, window_bounds = array<i64: 32, 32>}, {pipeline_mode = #tpu.pipeline_mode<synchronous>, transform_indices = @transform_2, window_bounds = array<i64: 1, 32>}, {transform_indices = @transform_3, window_bounds = array<i64: 16, 32>}, {pipeline_mode = #tpu.pipeline_mode<synchronous>, transform_indices = @transform_4, window_bounds = array<i64: 1, 32>}, {pipeline_mode = #tpu.pipeline_mode<synchronous>, transform_indices = @transform_5, window_bounds = array<i64: 1, 32>}, {transform_indices = @transform_6, window_bounds = array<i64: 16, 32>}]} {
    %c0 = arith.constant 0 : index
    %c0_0 = arith.constant 0 : index
    %0 = vector.load %arg1[%c0, %c0_0] : memref<16x32xbf16, #tpu.memory_space<vmem>>, vector<16x32xbf16>
    %c0_1 = arith.constant 0 : index
    %c0_2 = arith.constant 0 : index
    %1 = vector.load %arg2[%c0_1, %c0_2] : memref<32x32xbf16, #tpu.memory_space<vmem>>, vector<32x32xbf16>
    %cst = arith.constant dense<0.000000e+00> : vector<16x32xf32>
    %2 = tpu.matmul %0, %1, %cst {dimension_numbers = #tpu.dot_dimension_numbers<[1], [0], [0], [1], [0, 0, 1, 1], [], []>} : vector<16x32xbf16>, vector<32x32xbf16>, vector<16x32xf32> -> vector<16x32xf32>
    %c0_3 = arith.constant 0 : index
    %c0_4 = arith.constant 0 : index
    %3 = vector.load %arg3[%c0_3, %c0_4] : memref<1x32xf32, #tpu.memory_space<vmem>>, vector<1x32xf32>
    %4 = vector.broadcast %3 : vector<1x32xf32> to vector<16x32xf32>
    %5 = arith.addf %2, %4 : vector<16x32xf32>
    %c0_5 = arith.constant 0 : index
    %c0_6 = arith.constant 0 : index
    %6 = vector.load %arg4[%c0_5, %c0_6] : memref<16x32xbf16, #tpu.memory_space<vmem>>, vector<16x32xbf16>
    %7 = arith.extf %6 : vector<16x32xbf16> to vector<16x32xf32>
    %8 = arith.addf %5, %7 : vector<16x32xf32>
    %cst_7 = arith.constant dense<0.000000e+00> : vector<16xf32>
    %9 = vector.multi_reduction <add>, %8, %cst_7 [1] : vector<16x32xf32> to vector<16xf32>
    %10 = vector.shape_cast %9 : vector<16xf32> to vector<16x1xf32>
    %cst_8 = arith.constant 3.200000e+01 : f32
    %11 = vector.broadcast %cst_8 : f32 to vector<16x1xf32>
    %12 = arith.divf %10, %11 : vector<16x1xf32>
    %13 = vector.broadcast %12 : vector<16x1xf32> to vector<16x32xf32>
    %14 = arith.subf %8, %13 : vector<16x32xf32>
    %15 = arith.mulf %14, %14 : vector<16x32xf32>
    %cst_9 = arith.constant dense<0.000000e+00> : vector<16xf32>
    %16 = vector.multi_reduction <add>, %15, %cst_9 [1] : vector<16x32xf32> to vector<16xf32>
    %17 = vector.shape_cast %16 : vector<16xf32> to vector<16x1xf32>
    %cst_10 = arith.constant 3.200000e+01 : f32
    %18 = vector.broadcast %cst_10 : f32 to vector<16x1xf32>
    %19 = arith.divf %17, %18 : vector<16x1xf32>
    %cst_11 = arith.constant 9.99999974E-6 : f32
    %20 = vector.broadcast %cst_11 : f32 to vector<16x1xf32>
    %21 = arith.addf %19, %20 : vector<16x1xf32>
    %22 = math.rsqrt %21 : vector<16x1xf32>
    %23 = vector.broadcast %22 : vector<16x1xf32> to vector<16x32xf32>
    %24 = arith.mulf %14, %23 : vector<16x32xf32>
    %c0_12 = arith.constant 0 : index
    %c0_13 = arith.constant 0 : index
    %25 = vector.load %arg5[%c0_12, %c0_13] : memref<1x32xf32, #tpu.memory_space<vmem>>, vector<1x32xf32>
    %26 = vector.broadcast %25 : vector<1x32xf32> to vector<16x32xf32>
    %27 = arith.mulf %24, %26 : vector<16x32xf32>
    %c0_14 = arith.constant 0 : index
    %c0_15 = arith.constant 0 : index
    %28 = vector.load %arg6[%c0_14, %c0_15] : memref<1x32xf32, #tpu.memory_space<vmem>>, vector<1x32xf32>
    %29 = vector.broadcast %28 : vector<1x32xf32> to vector<16x32xf32>
    %30 = arith.addf %27, %29 : vector<16x32xf32>
    %31 = arith.truncf %30 : vector<16x32xf32> to vector<16x32xbf16>
    %c0_16 = arith.constant 0 : index
    %c0_17 = arith.constant 0 : index
    %32 = vector.load %arg7[%c0_16, %c0_17] : memref<16x32xbf16, #tpu.memory_space<vmem>>, vector<16x32xbf16>
    tpu.vector_store %arg7[%c0_16, %c0_17], %31 {strides = array<i32>} : memref<16x32xbf16, #tpu.memory_space<vmem>>, vector<16x32xbf16>,
    return
  }
  func.func @transform_0(%arg0: i32) -> (i32, i32) {
    %c0_i32 = arith.constant 0 : i32
    %c0_i32_0 = arith.constant 0 : i32
    return %arg0, %c0_i32 : i32, i32
  }
  func.func @transform_1(%arg0: i32) -> (i32, i32) {
    %c0_i32 = arith.constant 0 : i32
    %c0_i32_0 = arith.constant 0 : i32
    %c0_i32_1 = arith.constant 0 : i32
    return %c0_i32, %c0_i32_0 : i32, i32
  }
  func.func @transform_2(%arg0: i32) -> (i32, i32) {
    %c0_i32 = arith.constant 0 : i32
    %c0_i32_0 = arith.constant 0 : i32
    %c0_i32_1 = arith.constant 0 : i32
    return %c0_i32, %c0_i32_0 : i32, i32
  }
  func.func @transform_3(%arg0: i32) -> (i32, i32) {
    %c0_i32 = arith.constant 0 : i32
    %c0_i32_0 = arith.constant 0 : i32
    return %arg0, %c0_i32 : i32, i32
  }
  func.func @transform_4(%arg0: i32) -> (i32, i32) {
    %c0_i32 = arith.constant 0 : i32
    %c0_i32_0 = arith.constant 0 : i32
    %c0_i32_1 = arith.constant 0 : i32
    return %c0_i32, %c0_i32_0 : i32, i32
  }
  func.func @transform_5(%arg0: i32) -> (i32, i32) {
    %c0_i32 = arith.constant 0 : i32
    %c0_i32_0 = arith.constant 0 : i32
    %c0_i32_1 = arith.constant 0 : i32
    return %c0_i32, %c0_i32_0 : i32, i32
  }
  func.func @transform_6(%arg0: i32) -> (i32, i32) {
    %c0_i32 = arith.constant 0 : i32
    %c0_i32_0 = arith.constant 0 : i32
    return %arg0, %c0_i32 : i32, i32
  }
}

module attributes {stable_mosaic.version = 11 : i64} {
  func.func @_linear_kernel(%arg0: i32, %arg1: i32, %arg2: memref<16x32xbf16, #tpu.memory_space<vmem>>, %arg3: memref<32x512xbf16, #tpu.memory_space<vmem>>, %arg4: memref<1x512xf32, #tpu.memory_space<vmem>>, %arg5: memref<16x512xbf16, #tpu.memory_space<vmem>>) attributes {dimension_semantics = [#tpu.dimension_semantics<parallel>, #tpu.dimension_semantics<parallel>], iteration_bounds = array<i64: 1, 4>, scalar_prefetch = 0 : i64, scratch_operands = 0 : i64, tpu.core_type = #tpu.core_type<tc>, window_params = [{transform_indices = @transform_0, window_bounds = array<i64: 16, 32>}, {transform_indices = @transform_1, window_bounds = array<i64: 32, 512>}, {transform_indices = @transform_2, window_bounds = array<i64: 1, 512>}, {transform_indices = @transform_3, window_bounds = array<i64: 16, 512>}]} {
    %c0 = arith.constant 0 : index
    %c0_0 = arith.constant 0 : index
    %0 = vector.load %arg2[%c0, %c0_0] : memref<16x32xbf16, #tpu.memory_space<vmem>>, vector<16x32xbf16>
    %c0_1 = arith.constant 0 : index
    %c0_2 = arith.constant 0 : index
    %1 = vector.load %arg3[%c0_1, %c0_2] : memref<32x512xbf16, #tpu.memory_space<vmem>>, vector<32x512xbf16>
    %cst = arith.constant dense<0.000000e+00> : vector<16x512xf32>
    %2 = tpu.matmul %0, %1, %cst {dimension_numbers = #tpu.dot_dimension_numbers<[1], [0], [0], [1], [0, 0, 1, 1], [], []>} : vector<16x32xbf16>, vector<32x512xbf16>, vector<16x512xf32> -> vector<16x512xf32>
    %c0_3 = arith.constant 0 : index
    %c0_4 = arith.constant 0 : index
    %3 = vector.load %arg4[%c0_3, %c0_4] : memref<1x512xf32, #tpu.memory_space<vmem>>, vector<1x512xf32>
    %4 = vector.broadcast %3 : vector<1x512xf32> to vector<16x512xf32>
    %5 = arith.addf %2, %4 : vector<16x512xf32>
    %cst_5 = arith.constant 0.000000e+00 : f32
    %6 = vector.broadcast %cst_5 : f32 to vector<16x512xf32>
    %7 = arith.maximumf %5, %6 : vector<16x512xf32>
    %8 = arith.truncf %7 : vector<16x512xf32> to vector<16x512xbf16>
    %c0_6 = arith.constant 0 : index
    %c0_7 = arith.constant 0 : index
    %9 = vector.load %arg5[%c0_6, %c0_7] : memref<16x512xbf16, #tpu.memory_space<vmem>>, vector<16x512xbf16>
    tpu.vector_store %arg5[%c0_6, %c0_7], %8 {strides = array<i32>} : memref<16x512xbf16, #tpu.memory_space<vmem>>, vector<16x512xbf16>,
    return
  }
  func.func @transform_0(%arg0: i32, %arg1: i32) -> (i32, i32) {
    %c0_i32 = arith.constant 0 : i32
    %c0_i32_0 = arith.constant 0 : i32
    return %arg0, %c0_i32 : i32, i32
  }
  func.func @transform_1(%arg0: i32, %arg1: i32) -> (i32, i32) {
    %c0_i32 = arith.constant 0 : i32
    %c0_i32_0 = arith.constant 0 : i32
    return %c0_i32, %arg1 : i32, i32
  }
  func.func @transform_2(%arg0: i32, %arg1: i32) -> (i32, i32) {
    %c0_i32 = arith.constant 0 : i32
    %c0_i32_0 = arith.constant 0 : i32
    return %c0_i32, %arg1 : i32, i32
  }
  func.func @transform_3(%arg0: i32, %arg1: i32) -> (i32, i32) {
    %c0_i32 = arith.constant 0 : i32
    return %arg0, %arg1 : i32, i32
  }
}

module attributes {stable_mosaic.version = 11 : i64} {
  func.func @_linear_add_ln_kernel(%arg0: i32, %arg1: memref<16x2048xbf16, #tpu.memory_space<vmem>>, %arg2: memref<2048x32xbf16, #tpu.memory_space<vmem>>, %arg3: memref<1x32xf32, #tpu.memory_space<vmem>>, %arg4: memref<16x32xbf16, #tpu.memory_space<vmem>>, %arg5: memref<1x32xf32, #tpu.memory_space<vmem>>, %arg6: memref<1x32xf32, #tpu.memory_space<vmem>>, %arg7: memref<16x32xbf16, #tpu.memory_space<vmem>>) attributes {dimension_semantics = [#tpu.dimension_semantics<parallel>], iteration_bounds = array<i64: 1>, scalar_prefetch = 0 : i64, scratch_operands = 0 : i64, tpu.core_type = #tpu.core_type<tc>, window_params = [{transform_indices = @transform_0, window_bounds = array<i64: 16, 2048>}, {pipeline_mode = #tpu.pipeline_mode<synchronous>, transform_indices = @transform_1, window_bounds = array<i64: 2048, 32>}, {pipeline_mode = #tpu.pipeline_mode<synchronous>, transform_indices = @transform_2, window_bounds = array<i64: 1, 32>}, {transform_indices = @transform_3, window_bounds = array<i64: 16, 32>}, {pipeline_mode = #tpu.pipeline_mode<synchronous>, transform_indices = @transform_4, window_bounds = array<i64: 1, 32>}, {pipeline_mode = #tpu.pipeline_mode<synchronous>, transform_indices = @transform_5, window_bounds = array<i64: 1, 32>}, {transform_indices = @transform_6, window_bounds = array<i64: 16, 32>}]} {
    %c0 = arith.constant 0 : index
    %c0_0 = arith.constant 0 : index
    %0 = vector.load %arg1[%c0, %c0_0] : memref<16x2048xbf16, #tpu.memory_space<vmem>>, vector<16x2048xbf16>
    %c0_1 = arith.constant 0 : index
    %c0_2 = arith.constant 0 : index
    %1 = vector.load %arg2[%c0_1, %c0_2] : memref<2048x32xbf16, #tpu.memory_space<vmem>>, vector<2048x32xbf16>
    %cst = arith.constant dense<0.000000e+00> : vector<16x32xf32>
    %2 = tpu.matmul %0, %1, %cst {dimension_numbers = #tpu.dot_dimension_numbers<[1], [0], [0], [1], [0, 0, 1, 1], [], []>} : vector<16x2048xbf16>, vector<2048x32xbf16>, vector<16x32xf32> -> vector<16x32xf32>
    %c0_3 = arith.constant 0 : index
    %c0_4 = arith.constant 0 : index
    %3 = vector.load %arg3[%c0_3, %c0_4] : memref<1x32xf32, #tpu.memory_space<vmem>>, vector<1x32xf32>
    %4 = vector.broadcast %3 : vector<1x32xf32> to vector<16x32xf32>
    %5 = arith.addf %2, %4 : vector<16x32xf32>
    %c0_5 = arith.constant 0 : index
    %c0_6 = arith.constant 0 : index
    %6 = vector.load %arg4[%c0_5, %c0_6] : memref<16x32xbf16, #tpu.memory_space<vmem>>, vector<16x32xbf16>
    %7 = arith.extf %6 : vector<16x32xbf16> to vector<16x32xf32>
    %8 = arith.addf %5, %7 : vector<16x32xf32>
    %cst_7 = arith.constant dense<0.000000e+00> : vector<16xf32>
    %9 = vector.multi_reduction <add>, %8, %cst_7 [1] : vector<16x32xf32> to vector<16xf32>
    %10 = vector.shape_cast %9 : vector<16xf32> to vector<16x1xf32>
    %cst_8 = arith.constant 3.200000e+01 : f32
    %11 = vector.broadcast %cst_8 : f32 to vector<16x1xf32>
    %12 = arith.divf %10, %11 : vector<16x1xf32>
    %13 = vector.broadcast %12 : vector<16x1xf32> to vector<16x32xf32>
    %14 = arith.subf %8, %13 : vector<16x32xf32>
    %15 = arith.mulf %14, %14 : vector<16x32xf32>
    %cst_9 = arith.constant dense<0.000000e+00> : vector<16xf32>
    %16 = vector.multi_reduction <add>, %15, %cst_9 [1] : vector<16x32xf32> to vector<16xf32>
    %17 = vector.shape_cast %16 : vector<16xf32> to vector<16x1xf32>
    %cst_10 = arith.constant 3.200000e+01 : f32
    %18 = vector.broadcast %cst_10 : f32 to vector<16x1xf32>
    %19 = arith.divf %17, %18 : vector<16x1xf32>
    %cst_11 = arith.constant 9.99999974E-6 : f32
    %20 = vector.broadcast %cst_11 : f32 to vector<16x1xf32>
    %21 = arith.addf %19, %20 : vector<16x1xf32>
    %22 = math.rsqrt %21 : vector<16x1xf32>
    %23 = vector.broadcast %22 : vector<16x1xf32> to vector<16x32xf32>
    %24 = arith.mulf %14, %23 : vector<16x32xf32>
    %c0_12 = arith.constant 0 : index
    %c0_13 = arith.constant 0 : index
    %25 = vector.load %arg5[%c0_12, %c0_13] : memref<1x32xf32, #tpu.memory_space<vmem>>, vector<1x32xf32>
    %26 = vector.broadcast %25 : vector<1x32xf32> to vector<16x32xf32>
    %27 = arith.mulf %24, %26 : vector<16x32xf32>
    %c0_14 = arith.constant 0 : index
    %c0_15 = arith.constant 0 : index
    %28 = vector.load %arg6[%c0_14, %c0_15] : memref<1x32xf32, #tpu.memory_space<vmem>>, vector<1x32xf32>
    %29 = vector.broadcast %28 : vector<1x32xf32> to vector<16x32xf32>
    %30 = arith.addf %27, %29 : vector<16x32xf32>
    %31 = arith.truncf %30 : vector<16x32xf32> to vector<16x32xbf16>
    %c0_16 = arith.constant 0 : index
    %c0_17 = arith.constant 0 : index
    %32 = vector.load %arg7[%c0_16, %c0_17] : memref<16x32xbf16, #tpu.memory_space<vmem>>, vector<16x32xbf16>
    tpu.vector_store %arg7[%c0_16, %c0_17], %31 {strides = array<i32>} : memref<16x32xbf16, #tpu.memory_space<vmem>>, vector<16x32xbf16>,
    return
  }
  func.func @transform_0(%arg0: i32) -> (i32, i32) {
    %c0_i32 = arith.constant 0 : i32
    %c0_i32_0 = arith.constant 0 : i32
    return %arg0, %c0_i32 : i32, i32
  }
  func.func @transform_1(%arg0: i32) -> (i32, i32) {
    %c0_i32 = arith.constant 0 : i32
    %c0_i32_0 = arith.constant 0 : i32
    %c0_i32_1 = arith.constant 0 : i32
    return %c0_i32, %c0_i32_0 : i32, i32
  }
  func.func @transform_2(%arg0: i32) -> (i32, i32) {
    %c0_i32 = arith.constant 0 : i32
    %c0_i32_0 = arith.constant 0 : i32
    %c0_i32_1 = arith.constant 0 : i32
    return %c0_i32, %c0_i32_0 : i32, i32
  }
  func.func @transform_3(%arg0: i32) -> (i32, i32) {
    %c0_i32 = arith.constant 0 : i32
    %c0_i32_0 = arith.constant 0 : i32
    return %arg0, %c0_i32 : i32, i32
  }
  func.func @transform_4(%arg0: i32) -> (i32, i32) {
    %c0_i32 = arith.constant 0 : i32
    %c0_i32_0 = arith.constant 0 : i32
    %c0_i32_1 = arith.constant 0 : i32
    return %c0_i32, %c0_i32_0 : i32, i32
  }
  func.func @transform_5(%arg0: i32) -> (i32, i32) {
    %c0_i32 = arith.constant 0 : i32
    %c0_i32_0 = arith.constant 0 : i32
    %c0_i32_1 = arith.constant 0 : i32
    return %c0_i32, %c0_i32_0 : i32, i32
  }
  func.func @transform_6(%arg0: i32) -> (i32, i32) {
    %c0_i32 = arith.constant 0 : i32
    %c0_i32_0 = arith.constant 0 : i32
    return %arg0, %c0_i32 : i32, i32
  }
}

module attributes {stable_mosaic.version = 11 : i64} {
  func.func @_linear_kernel(%arg0: i32, %arg1: i32, %arg2: memref<16x32xbf16, #tpu.memory_space<vmem>>, %arg3: memref<32x96xbf16, #tpu.memory_space<vmem>>, %arg4: memref<1x96xf32, #tpu.memory_space<vmem>>, %arg5: memref<16x96xbf16, #tpu.memory_space<vmem>>) attributes {dimension_semantics = [#tpu.dimension_semantics<parallel>, #tpu.dimension_semantics<parallel>], iteration_bounds = array<i64: 1, 1>, scalar_prefetch = 0 : i64, scratch_operands = 0 : i64, tpu.core_type = #tpu.core_type<tc>, window_params = [{transform_indices = @transform_0, window_bounds = array<i64: 16, 32>}, {transform_indices = @transform_1, window_bounds = array<i64: 32, 96>}, {transform_indices = @transform_2, window_bounds = array<i64: 1, 96>}, {transform_indices = @transform_3, window_bounds = array<i64: 16, 96>}]} {
    %c0 = arith.constant 0 : index
    %c0_0 = arith.constant 0 : index
    %0 = vector.load %arg2[%c0, %c0_0] : memref<16x32xbf16, #tpu.memory_space<vmem>>, vector<16x32xbf16>
    %c0_1 = arith.constant 0 : index
    %c0_2 = arith.constant 0 : index
    %1 = vector.load %arg3[%c0_1, %c0_2] : memref<32x96xbf16, #tpu.memory_space<vmem>>, vector<32x96xbf16>
    %cst = arith.constant dense<0.000000e+00> : vector<16x96xf32>
    %2 = tpu.matmul %0, %1, %cst {dimension_numbers = #tpu.dot_dimension_numbers<[1], [0], [0], [1], [0, 0, 1, 1], [], []>} : vector<16x32xbf16>, vector<32x96xbf16>, vector<16x96xf32> -> vector<16x96xf32>
    %c0_3 = arith.constant 0 : index
    %c0_4 = arith.constant 0 : index
    %3 = vector.load %arg4[%c0_3, %c0_4] : memref<1x96xf32, #tpu.memory_space<vmem>>, vector<1x96xf32>
    %4 = vector.broadcast %3 : vector<1x96xf32> to vector<16x96xf32>
    %5 = arith.addf %2, %4 : vector<16x96xf32>
    %6 = arith.truncf %5 : vector<16x96xf32> to vector<16x96xbf16>
    %c0_5 = arith.constant 0 : index
    %c0_6 = arith.constant 0 : index
    %7 = vector.load %arg5[%c0_5, %c0_6] : memref<16x96xbf16, #tpu.memory_space<vmem>>, vector<16x96xbf16>
    tpu.vector_store %arg5[%c0_5, %c0_6], %6 {strides = array<i32>} : memref<16x96xbf16, #tpu.memory_space<vmem>>, vector<16x96xbf16>,
    return
  }
  func.func @transform_0(%arg0: i32, %arg1: i32) -> (i32, i32) {
    %c0_i32 = arith.constant 0 : i32
    %c0_i32_0 = arith.constant 0 : i32
    return %arg0, %c0_i32 : i32, i32
  }
  func.func @transform_1(%arg0: i32, %arg1: i32) -> (i32, i32) {
    %c0_i32 = arith.constant 0 : i32
    %c0_i32_0 = arith.constant 0 : i32
    return %c0_i32, %arg1 : i32, i32
  }
  func.func @transform_2(%arg0: i32, %arg1: i32) -> (i32, i32) {
    %c0_i32 = arith.constant 0 : i32
    %c0_i32_0 = arith.constant 0 : i32
    return %c0_i32, %arg1 : i32, i32
  }
  func.func @transform_3(%arg0: i32, %arg1: i32) -> (i32, i32) {
    %c0_i32 = arith.constant 0 : i32
    return %arg0, %arg1 : i32, i32
  }
}

module attributes {stable_mosaic.version = 11 : i64} {
  func.func @_linear_kernel(%arg0: i32, %arg1: i32, %arg2: memref<16x32xbf16, #tpu.memory_space<vmem>>, %arg3: memref<32x32xbf16, #tpu.memory_space<vmem>>, %arg4: memref<1x32xf32, #tpu.memory_space<vmem>>, %arg5: memref<16x32xf32, #tpu.memory_space<vmem>>) attributes {dimension_semantics = [#tpu.dimension_semantics<parallel>, #tpu.dimension_semantics<parallel>], iteration_bounds = array<i64: 1, 1>, scalar_prefetch = 0 : i64, scratch_operands = 0 : i64, tpu.core_type = #tpu.core_type<tc>, window_params = [{transform_indices = @transform_0, window_bounds = array<i64: 16, 32>}, {transform_indices = @transform_1, window_bounds = array<i64: 32, 32>}, {transform_indices = @transform_2, window_bounds = array<i64: 1, 32>}, {transform_indices = @transform_3, window_bounds = array<i64: 16, 32>}]} {
    %c0 = arith.constant 0 : index
    %c0_0 = arith.constant 0 : index
    %0 = vector.load %arg2[%c0, %c0_0] : memref<16x32xbf16, #tpu.memory_space<vmem>>, vector<16x32xbf16>
    %c0_1 = arith.constant 0 : index
    %c0_2 = arith.constant 0 : index
    %1 = vector.load %arg3[%c0_1, %c0_2] : memref<32x32xbf16, #tpu.memory_space<vmem>>, vector<32x32xbf16>
    %cst = arith.constant dense<0.000000e+00> : vector<16x32xf32>
    %2 = tpu.matmul %0, %1, %cst {dimension_numbers = #tpu.dot_dimension_numbers<[1], [0], [0], [1], [0, 0, 1, 1], [], []>} : vector<16x32xbf16>, vector<32x32xbf16>, vector<16x32xf32> -> vector<16x32xf32>
    %c0_3 = arith.constant 0 : index
    %c0_4 = arith.constant 0 : index
    %3 = vector.load %arg4[%c0_3, %c0_4] : memref<1x32xf32, #tpu.memory_space<vmem>>, vector<1x32xf32>
    %4 = vector.broadcast %3 : vector<1x32xf32> to vector<16x32xf32>
    %5 = arith.addf %2, %4 : vector<16x32xf32>
    %c0_5 = arith.constant 0 : index
    %c0_6 = arith.constant 0 : index
    %6 = vector.load %arg5[%c0_5, %c0_6] : memref<16x32xf32, #tpu.memory_space<vmem>>, vector<16x32xf32>
    tpu.vector_store %arg5[%c0_5, %c0_6], %5 {strides = array<i32>} : memref<16x32xf32, #tpu.memory_space<vmem>>, vector<16x32xf32>,
    return
  }
  func.func @transform_0(%arg0: i32, %arg1: i32) -> (i32, i32) {
    %c0_i32 = arith.constant 0 : i32
    %c0_i32_0 = arith.constant 0 : i32
    return %arg0, %c0_i32 : i32, i32
  }
  func.func @transform_1(%arg0: i32, %arg1: i32) -> (i32, i32) {
    %c0_i32 = arith.constant 0 : i32
    %c0_i32_0 = arith.constant 0 : i32
    return %c0_i32, %arg1 : i32, i32
  }
  func.func @transform_2(%arg0: i32, %arg1: i32) -> (i32, i32) {
    %c0_i32 = arith.constant 0 : i32
    %c0_i32_0 = arith.constant 0 : i32
    return %c0_i32, %arg1 : i32, i32
  }
  func.func @transform_3(%arg0: i32, %arg1: i32) -> (i32, i32) {
    %c0_i32 = arith.constant 0 : i32
    return %arg0, %arg1 : i32, i32
  }
}

</mosaic_0001>

<bundles_post_ra>
// kernel: transformer_forward.12
= control target key start
LH: loop header
LB: loop body
LE: loop exit
PB: predicated region body
PF: predicated region fallthrough
CT: control target
= control target key end

     0   :  { %11 = vsyncpa [#allocation3], 0  ;;  %s403_s0 = inlined_call_operand.vmem [shape: bf16[16,16], index: 0, kind: input, shape index: {}]   ;;  %s404_s1 = inlined_call_operand.hbm [shape: bf16[16,32], index: 1, kind: input, shape index: {}]   ;;  %s405_s2 = inlined_call_operand.hbm [shape: f32[1,32], index: 2, kind: input, shape index: {}]   ;;  %s406_s3 = inlined_call_operand.vmem [shape: bf16[16,32], index: 3, kind: input, shape index: {}]   ;;  %s407_s4 = inlined_call_operand.hbm [shape: f32[1,32], index: 4, kind: input, shape index: {}]   ;;  %s408_s5 = inlined_call_operand.hbm [shape: f32[1,32], index: 5, kind: input, shape index: {}]   ;;  %s409_s6 = inlined_call_operand.vmem [shape: bf16[16,32], index: 6, kind: output, shape index: {}]  }
   0x1   :  { %12 = vsyncpa [#allocation5], 0 }
   0x2   :  { %13 = vsyncpa [#allocation8], 0  ;;  %s332_s21 = smov [#allocation4]   ;;  %s333_s23 = smov [#allocation2]  }
   0x3   :  { %s34_s22 = sshll.u32 %s332_s21, 4  ;;  %s21_s24 = sshll.u32 %s333_s23, 4  ;;  %s35_s22 = int_to_ptr.vmem [resolvable:$true] %s34_s22  ;;  %s22_s24 = int_to_ptr.vmem [resolvable:$true] %s21_s24 }
   0x4   :  { %s254_s25 = scalar_lea.vmem %s35_s22, 16  ;;  %s258_s26 = scalar_lea.vmem %s35_s22, 32 }
   0x5   :  { %p255_p0 = scmp.ne.s32.totalorder %s35_s22, %s254_s25  ;;  %p259_p1 = scmp.lt.s32.totalorder %s35_s22, %s35_s22 }
   0x6   :  { %p260_p2 = scmp.lt.s32.totalorder %s258_s26, %s254_s25 }
   0x8   :  { %p261_p3 = por %p260_p2, %p259_p1 }
   0xa   :  { %p262_p4 = pnand %p261_p3, %p255_p0 }
   0xc   :  { %265 = shalt.err (!%p262_p4)
}
   0xd   :  { %37 = dma.hbm_to_vmem [thread:$0]  %s405_s2, 16, %s35_s22, [#allocation5]  }
   0xe   :  { %s274_s29 = scalar_lea.vmem %s22_s24, 128  ;;  %p279_p6 = scmp.lt.s32.totalorder %s22_s24, %s22_s24 }
   0xf   :  { %p275_p5 = scmp.ne.s32.totalorder %s22_s24, %s274_s29  ;;  %p280_p7 = scmp.lt.s32.totalorder %s274_s29, %s274_s29 }
  0x11   :  { %p281_p8 = por %p280_p7, %p279_p6 }
  0x13   :  { %p282_p9 = pnand %p281_p8, %p275_p5 }
  0x15   :  { %285 = shalt.err (!%p282_p9)
}
  0x16   :  { %s334_s30 = smov 64   ;;  %s335_s7 = smov 4  }
  0x17   :  { %27 = dma.hbm_to_vmem [thread:$0]  %s404_s1, 128, %s22_s24, [#allocation3], %s334_s30, %s334_s30, %s335_s7  }
  0x18   :  { %s336_s10 = smov [#allocation6]   ;;  %s337_s12 = smov [#allocation7]  }
  0x19   :  { %s46_s11 = sshll.u32 %s336_s10, 4  ;;  %s56_s13 = sshll.u32 %s337_s12, 4  ;;  %s47_s11 = int_to_ptr.vmem [resolvable:$true] %s46_s11  ;;  %s57_s13 = int_to_ptr.vmem [resolvable:$true] %s56_s13 }
  0x1a   :  { %s294_s2 = scalar_lea.vmem %s47_s11, 16  ;;  %s298_s14 = scalar_lea.vmem %s47_s11, 32 }
  0x1b   :  { %p295_p10 = scmp.ne.s32.totalorder %s47_s11, %s294_s2  ;;  %p299_p11 = scmp.lt.s32.totalorder %s47_s11, %s47_s11 }
  0x1c   :  { %p300_p12 = scmp.lt.s32.totalorder %s298_s14, %s294_s2 }
  0x1e   :  { %p301_p13 = por %p300_p12, %p299_p11 }
  0x20   :  { %p302_p0 = pnand %p301_p13, %p295_p10 }
  0x22   :  { %305 = shalt.err (!%p302_p0)
}
  0x23   :  { %49 = dma.hbm_to_vmem [thread:$0]  %s407_s4, 16, %s47_s11, [#allocation5]  }
  0x24   :  { %s314_s17 = scalar_lea.vmem %s57_s13, 16  ;;  %s318_s1 = scalar_lea.vmem %s57_s13, 32 }
  0x25   :  { %p315_p1 = scmp.ne.s32.totalorder %s57_s13, %s314_s17  ;;  %p319_p2 = scmp.lt.s32.totalorder %s57_s13, %s57_s13 }
  0x26   :  { %p320_p3 = scmp.lt.s32.totalorder %s318_s1, %s314_s17 }
  0x28   :  { %p321_p4 = por %p320_p3, %p319_p2 }
  0x2a   :  { %p322_p5 = pnand %p321_p4, %p315_p1 }
  0x2c   :  { %325 = shalt.err (!%p322_p5)
}
  0x2d   :  { %59 = dma.hbm_to_vmem [thread:$0]  %s408_s5, 16, %s57_s13, [#allocation8]  }
  0x2e   :  { %326 = dma.done.wait [#allocation3], 128  }
  0x2f   :  { %327 = vsyncadd [#allocation3], 4294967168 }
  0x30   :  { %328 = dma.done.wait [#allocation5], 32  }
  0x31   :  { %329 = vsyncadd [#allocation5], 4294967264 }
  0x32   :  { %330 = dma.done.wait [#allocation8], 16  }
  0x33   :  { %331 = vsyncadd [#allocation8], 4294967280  ;;  %v338_v0 = vmov 0.0   ;;  %vm339_vm0 = vmmov 0   ;;  %v240_v1 = vld [vmem:[#allocation2] sm:$0xff]   ;;  %vm95_vm1 = vcmask 130048  }
  0x34   :  { %226 = vmatprep.subr.bf16.mxu0 %v338_v0  ;;  %228 = vmatprep.mubr.msk.bf16.mxu0 %vm339_vm0, %v338_v0  ;;  %v241_v2 = vld [vmem:[%s403_s0] sm:$0xff]   ;;  %v210_v4 = vld [vmem:[#allocation4] ss:$0 sm:$0xff]  ;;  %vm146_vm2 = vcmask 261120   ;;  %v214_v34 = vld [vmem:[#allocation6] ss:$0 sm:$0xff] }
  0x35   :  { %227 = vmatpush3.bf16.msra.mxu0 %v240_v1  ;;  %v221_v3 = vld [vmem:[%s406_s3] sm:$0xff]   ;;  %v215_v36 = vld [vmem:[#allocation7] ss:$0 sm:$0xff]  ;;  %vm200_vm3 = vcmask 257024  }
  0x36   :  { %v222_v5 = vunpack.c.l.bf16 %v221_v3  ;;  %v223_v10 = vunpack.c.h.bf16 %v221_v3 }
  0x38   :  { %229 = vmatmul.mubr.msk.bf16.vlgmr.msra.gmra.mxu0 %vm95_vm1, %v241_v2 }
  0xf8   :  { %v133_v6 = vpop.f32.mrf.mxu0 }
  0xf9   :  { %v134_v7 = vadd.f32 %v210_v4, %v133_v6 }
  0xfa   :  { %v230_v8 = vpop.f32.mrf.mxu0 }
  0xfb   :  { %v144_v9 = vadd.f32 %v222_v5, %v134_v7 }
  0xfc   :  { %v136_v11 = vpop.f32.mrf.mxu0 }
  0xfd   :  { %v137_v12 = vadd.f32 %v210_v4, %v136_v11  ;;  %v147_v13 = vsel %vm146_vm2, %v144_v9, 0.0 }
  0xfe   :  { %148 = vadd.xlane.f32.xlu0 %v147_v13  ;;  %v231_v14 = vpop.f32.mrf.mxu0 }
  0xff   :  { %v145_v15 = vadd.f32 %v223_v10, %v137_v12 }
 0x101   :  { %v150_v16 = vsel %vm146_vm2, %v145_v15, 0.0 }
 0x102   :  { %151 = vadd.xlane.f32.xlu0 %v150_v16 }
 0x187   :  { %v149_v17 = vpop.xlane.xlu0 %148 }
 0x188   :  { %v154_v18 = vmul.f32 0.03125, %v149_v17 }
 0x18a   :  { %v156_v19 = vsub.f32 %v144_v9, %v154_v18 }
 0x18b   :  { %v152_v20 = vpop.xlane.xlu0 %151 }
 0x18c   :  { %v155_v21 = vmul.f32 0.03125, %v152_v20  ;;  %v158_v22 = vmul.f32 %v156_v19, %v156_v19 }
 0x18e   :  { %v157_v23 = vsub.f32 %v145_v15, %v155_v21  ;;  %v160_v24 = vsel %vm146_vm2, %v158_v22, 0.0 }
 0x18f   :  { %161 = vadd.xlane.f32.xlu1 %v160_v24 }
 0x190   :  { %v159_v25 = vmul.f32 %v157_v23, %v157_v23 }
 0x192   :  { %v163_v26 = vsel %vm146_vm2, %v159_v25, 0.0 }
 0x193   :  { %164 = vadd.xlane.f32.xlu1 %v163_v26 }
 0x218   :  { %v162_v27 = vpop.xlane.xlu1 %161 }
 0x219   :  { %v166_v28 = vmul.f32 0.03125, %v162_v27 }
 0x21b   :  { %v168_v29 = vadd.f32 1e-05, %v166_v28 }
 0x21c   :  { %v165_v30 = vpop.xlane.xlu1 %164 }
 0x21d   :  { %242 = vrsqrt.f32 %v168_v29  ;;  %v167_v31 = vmul.f32 0.03125, %v165_v30 }
 0x21f   :  { %v169_v32 = vadd.f32 1e-05, %v167_v31 }
 0x221   :  { %244 = vrsqrt.f32 %v169_v32 }
 0x22a   :  { %v243_v33 = vpop.eup %242 }
 0x22b   :  { %v172_v35 = vmul.f32 %v243_v33, %v156_v19 }
 0x22d   :  { %v181_v37 = vmul.f32 %v214_v34, %v172_v35 }
 0x22e   :  { %v245_v38 = vpop.eup %244 }
 0x22f   :  { %v190_v39 = vadd.f32 %v215_v36, %v181_v37  ;;  %v173_v40 = vmul.f32 %v245_v38, %v157_v23 }
 0x231   :  { %v218_v41 = vpack.c.bf16 %v190_v39, %v190_v39  ;;  %v182_v42 = vmul.f32 %v214_v34, %v173_v40 }
 0x233   :  { %201 = vst.msk [vmem:[%s409_s6] sm:$0xf] %vm200_vm3, %v218_v41  ;;  %v191_v43 = vadd.f32 %v215_v36, %v182_v42 }
 0x235   :  { %v219_v44 = vpack.c.bf16 %v191_v43, %v191_v43 }
 0x237   :  { %202 = vst.msk [vmem:[%s409_s6 + $0x4] sm:$0xf] %vm200_vm3, %v219_v44 }
 0x238   :  { %207 = vsyncpa [#allocation3], 1 }
 0x239   :  { %208 = vsyncpa [#allocation5], 1 }
 0x23a   :  { %209 = vsyncpa [#allocation8], 1 }

// kernel: transformer_forward.13
= control target key start
LH: loop header
LB: loop body
LE: loop exit
PB: predicated region body
PF: predicated region fallthrough
CT: control target
= control target key end

     0   :  { %8 = vsyncpa [#allocation3], 0  ;;  %s166_s12 = smov [#allocation2]   ;;  %s207_s0 = inlined_call_operand.vmem [shape: bf16[16,32], index: 0, kind: input, shape index: {}]   ;;  %s208_s1 = inlined_call_operand.vmem [shape: bf16[32,96], index: 1, kind: input, shape index: {}]   ;;  %s209_s2 = inlined_call_operand.hbm [shape: f32[1,96], index: 2, kind: input, shape index: {}]   ;;  %s210_s3 = inlined_call_operand.vmem [shape: bf16[16,96], index: 3, kind: output, shape index: {}]  }
   0x1   :  { %s19_s13 = sshll.u32 %s166_s12, 4  ;;  %s20_s13 = int_to_ptr.vmem [resolvable:$true] %s19_s13 }
   0x2   :  { %s152_s14 = scalar_lea.vmem %s20_s13, 16  ;;  %s156_s15 = scalar_lea.vmem %s20_s13, 32 }
   0x3   :  { %p153_p0 = scmp.ne.s32.totalorder %s20_s13, %s152_s14  ;;  %p157_p1 = scmp.lt.s32.totalorder %s20_s13, %s20_s13 }
   0x4   :  { %p158_p2 = scmp.lt.s32.totalorder %s156_s15, %s152_s14 }
   0x6   :  { %p159_p3 = por %p158_p2, %p157_p1 }
   0x8   :  { %p160_p4 = pnand %p159_p3, %p153_p0 }
   0xa   :  { %163 = shalt.err (!%p160_p4)
}
   0xb   :  { %22 = dma.hbm_to_vmem [thread:$0]  %s209_s2, 16, %s20_s13, [#allocation3]  }
   0xc   :  { %164 = dma.done.wait [#allocation3], 16  }
   0xd   :  { %165 = vsyncadd [#allocation3], 4294967280  ;;  %v167_v0 = vmov 0.0   ;;  %vm168_vm0 = vmmov 0   ;;  %v141_v1 = vld [vmem:[%s208_s1 + $0x8] sm:$0xff]   ;;  %v142_v2 = vld [vmem:[%s208_s1] sm:$0xff]  }
   0xe   :  { %130 = vmatprep.subr.bf16.mxu0 %v167_v0  ;;  %134 = vmatprep.mubr.msk.bf16.mxu0 %vm168_vm0, %v167_v0  ;;  %v143_v3 = vld [vmem:[%s207_s0] sm:$0xff]   ;;  %vm57_vm1 = vcmask 261120   ;;  %vm110_vm2 = vcmask 781312  }
   0xf   :  { %131 = vmatpush3.bf16.msra.mxu0 %v141_v1  ;;  %v118_v4 = vld [vmem:[#allocation2] ss:$0 sm:$0xff] }
  0x10   :  { %132 = vmatprep.subr.bf16.mxu0 %v167_v0 }
  0x13   :  { %133 = vmatpush3.bf16.msra.mxu0 %v142_v2 }
  0x16   :  { %135 = vmatmul.mubr.msk.bf16.vlgmr.msra.gmra.mxu0 %vm57_vm1, %v143_v3 }
  0xd6   :  { %v95_v5 = vpop.f32.mrf.mxu0 }
  0xd7   :  { %v96_v6 = vadd.f32 %v118_v4, %v95_v5 }
  0xd8   :  { %v136_v7 = vpop.f32.mrf.mxu0 }
  0xd9   :  { %v125_v8 = vpack.c.bf16 %v96_v6, %v96_v6 }
  0xda   :  { %v98_v9 = vpop.f32.mrf.mxu0 }
  0xdb   :  { %111 = vst.msk [vmem:[%s210_s3] sm:$0xf] %vm110_vm2, %v125_v8  ;;  %v99_v10 = vadd.f32 %v118_v4, %v98_v9 }
  0xdc   :  { %v137_v11 = vpop.f32.mrf.mxu0 }
  0xdd   :  { %v126_v12 = vpack.c.bf16 %v99_v10, %v99_v10 }
  0xdf   :  { %112 = vst.msk [vmem:[%s210_s3 + $0x4] sm:$0xf] %vm110_vm2, %v126_v12 }
  0xe0   :  { %117 = vsyncpa [#allocation3], 1 }

// kernel: transformer_forward.15
= control target key start
LH: loop header
LB: loop body
LE: loop exit
PB: predicated region body
PF: predicated region fallthrough
CT: control target
= control target key end

     0   :  { %v200_v0 = vmov 0.0   ;;  %vm201_vm0 = vmmov 0   ;;  %vm54_vm1 = vcmask 261120   ;;  %vm158_vm2 = vcmask 257024   ;;  %s269_s1 = inlined_call_operand.vmem [shape: bf16[32,32], index: 1, kind: input, shape index: {}]   ;;  %s270_s0 = inlined_call_operand.vmem [shape: bf16[16,32], index: 0, kind: input, shape index: {}]   ;;  %s271_s3 = inlined_call_operand.vmem [shape: bf16[16,32], index: 3, kind: input, shape index: {}]   ;;  %s272_s2 = inlined_call_operand.vmem [shape: f32[1,32], index: 2, kind: input, shape index: {}]   ;;  %s273_s4 = inlined_call_operand.vmem [shape: f32[1,32], index: 4, kind: input, shape index: {}]   ;;  %s274_s5 = inlined_call_operand.vmem [shape: f32[1,32], index: 5, kind: input, shape index: {}]   ;;  %s275_s6 = inlined_call_operand.vmem [shape: bf16[16,32], index: 6, kind: output, shape index: {}]  }
   0x1   :  { %183 = vmatprep.subr.bf16.mxu0 %v200_v0  ;;  %v193_v1 = vld [vmem:[%s269_s1 + $0x8] sm:$0xff]   ;;  %187 = vmatprep.mubr.msk.bf16.mxu0 %vm201_vm0, %v200_v0  ;;  %v194_v2 = vld [vmem:[%s269_s1] sm:$0xff]  }
   0x2   :  { %184 = vmatpush3.bf16.msra.mxu0 %v193_v1  ;;  %v195_v3 = vld [vmem:[%s270_s0] sm:$0xff]  }
   0x3   :  { %185 = vmatprep.subr.bf16.mxu0 %v200_v0  ;;  %v177_v4 = vld [vmem:[%s271_s3] sm:$0xff]  }
   0x4   :  { %v165_v5 = vld [vmem:[%s272_s2] ss:$0 sm:$0xff]  ;;  %v178_v6 = vunpack.c.l.bf16 %v177_v4  ;;  %v179_v11 = vunpack.c.h.bf16 %v177_v4 }
   0x5   :  { %v170_v35 = vld [vmem:[%s273_s4] ss:$0 sm:$0xff] }
   0x6   :  { %186 = vmatpush3.bf16.msra.mxu0 %v194_v2  ;;  %v171_v37 = vld [vmem:[%s274_s5] ss:$0 sm:$0xff] }
   0x9   :  { %188 = vmatmul.mubr.msk.bf16.vlgmr.msra.gmra.mxu0 %vm54_vm1, %v195_v3 }
  0xc9   :  { %v92_v7 = vpop.f32.mrf.mxu0 }
  0xca   :  { %v93_v8 = vadd.f32 %v165_v5, %v92_v7 }
  0xcb   :  { %v189_v9 = vpop.f32.mrf.mxu0 }
  0xcc   :  { %v103_v10 = vadd.f32 %v178_v6, %v93_v8 }
  0xcd   :  { %v95_v12 = vpop.f32.mrf.mxu0 }
  0xce   :  { %v96_v13 = vadd.f32 %v165_v5, %v95_v12  ;;  %v105_v14 = vsel %vm54_vm1, %v103_v10, 0.0 }
  0xcf   :  { %106 = vadd.xlane.f32.xlu0 %v105_v14  ;;  %v190_v15 = vpop.f32.mrf.mxu0 }
  0xd0   :  { %v104_v16 = vadd.f32 %v179_v11, %v96_v13 }
  0xd2   :  { %v108_v17 = vsel %vm54_vm1, %v104_v16, 0.0 }
  0xd3   :  { %109 = vadd.xlane.f32.xlu0 %v108_v17 }
 0x158   :  { %v107_v18 = vpop.xlane.xlu0 %106 }
 0x159   :  { %v112_v19 = vmul.f32 0.03125, %v107_v18 }
 0x15b   :  { %v114_v20 = vsub.f32 %v103_v10, %v112_v19 }
 0x15c   :  { %v110_v21 = vpop.xlane.xlu0 %109 }
 0x15d   :  { %v113_v22 = vmul.f32 0.03125, %v110_v21  ;;  %v116_v23 = vmul.f32 %v114_v20, %v114_v20 }
 0x15f   :  { %v115_v24 = vsub.f32 %v104_v16, %v113_v22  ;;  %v118_v25 = vsel %vm54_vm1, %v116_v23, 0.0 }
 0x160   :  { %119 = vadd.xlane.f32.xlu1 %v118_v25 }
 0x161   :  { %v117_v26 = vmul.f32 %v115_v24, %v115_v24 }
 0x163   :  { %v121_v27 = vsel %vm54_vm1, %v117_v26, 0.0 }
 0x164   :  { %122 = vadd.xlane.f32.xlu1 %v121_v27 }
 0x1e9   :  { %v120_v28 = vpop.xlane.xlu1 %119 }
 0x1ea   :  { %v124_v29 = vmul.f32 0.03125, %v120_v28 }
 0x1ec   :  { %v126_v30 = vadd.f32 1e-05, %v124_v29 }
 0x1ed   :  { %v123_v31 = vpop.xlane.xlu1 %122 }
 0x1ee   :  { %196 = vrsqrt.f32 %v126_v30  ;;  %v125_v32 = vmul.f32 0.03125, %v123_v31 }
 0x1f0   :  { %v127_v33 = vadd.f32 1e-05, %v125_v32 }
 0x1f2   :  { %198 = vrsqrt.f32 %v127_v33 }
 0x1fb   :  { %v197_v34 = vpop.eup %196 }
 0x1fc   :  { %v130_v36 = vmul.f32 %v197_v34, %v114_v20 }
 0x1fe   :  { %v139_v38 = vmul.f32 %v170_v35, %v130_v36 }
 0x1ff   :  { %v199_v39 = vpop.eup %198 }
 0x200   :  { %v148_v40 = vadd.f32 %v171_v37, %v139_v38  ;;  %v131_v41 = vmul.f32 %v199_v39, %v115_v24 }
 0x202   :  { %v174_v42 = vpack.c.bf16 %v148_v40, %v148_v40  ;;  %v140_v43 = vmul.f32 %v170_v35, %v131_v41 }
 0x204   :  { %159 = vst.msk [vmem:[%s275_s6] sm:$0xf] %vm158_vm2, %v174_v42  ;;  %v149_v44 = vadd.f32 %v171_v37, %v140_v43 }
 0x206   :  { %v175_v45 = vpack.c.bf16 %v149_v44, %v149_v44 }
 0x208   :  { %160 = vst.msk [vmem:[%s275_s6 + $0x4] sm:$0xf] %vm158_vm2, %v175_v45 }

// kernel: transformer_forward.16
= control target key start
LH: loop header
LB: loop body
LE: loop exit
PB: predicated region body
PF: predicated region fallthrough
CT: control target
= control target key end

     0   :  { %s742_s12 = smov 0   ;;  %s744_s13 = smov 0   ;;  %s825_s0 = inlined_call_operand.vmem [shape: bf16[16,32], index: 0, kind: input, shape index: {}]   ;;  %s826_s1 = inlined_call_operand.vmem [shape: bf16[32,2048], index: 1, kind: input, shape index: {}]   ;;  %s827_s2 = inlined_call_operand.vmem [shape: f32[1,2048], index: 2, kind: input, shape index: {}]   ;;  %s828_s3 = inlined_call_operand.vmem [shape: bf16[16,2048], index: 3, kind: output, shape index: {}]  }
   0x1   :  { %s746_s14 = smov 0   ;;  %s748_s15 = smov 0  }
   0x2   :  { %s750_s16 = smov 0  }
   0x3 LB: > { %s22_s17 = sadd.s32 1, %s715_s15  ;;  %s589_s18 = sadd.s32 4294967295, %s719_s16   ;;  %s719_s16 = sphi %s750_s16, %s13_s16   ;;  %s715_s15 = sphi %s748_s15, %s833_s15   ;;  %s711_s14 = sphi %s746_s14, %s832_s14   ;;  %s707_s13 = sphi %s744_s13, %s831_s13   ;;  %s703_s12 = sphi %s742_s12, %s830_s12  }
   0x4   : > { %p23_p0 = scmp.ge.s32.totalorder %s22_s17, 4  ;;  %p65_p1 = scmp.ne.s32.totalorder %s707_s13, %s703_s12 }
   0x5   : > { %p66_p2 = scmp.eq.s32.totalorder %s719_s16, 0  ;;  %p123_p4 = scmp.eq.s32.totalorder %s589_s18, 3 }
   0x6   : > { %s835_s17 = smov (%p23_p0, %s22_s17), 0  ;;  %s58_s20 = sadd.s32 1, %s707_s13 }
   0x7   : > { %p67_p3 = por %p66_p2, %p65_p1  ;;  %s55_s19 = ssub.s32 %s715_s15, %s835_s17 }
   0x8   : > { %p56_p5 = scmp.eq.s32.totalorder %s55_s19, 0  ;;  %p777_p6 = por %p123_p4, %p65_p1 }
   0x9   : > { %p593_p7 = scmp.ge.s32.totalorder %s719_s16, 4 }
   0xa   : > { %s782_s22 = scalar_select %p56_p5, %s707_s13, %s58_s20  }
   0xb   : > { %154 = sbr.rel (%p593_p7) target bundleno = 24 (0x18), region = 20 }
  0x10   : > { %157 = sbr.rel (!%p67_p3) target bundleno = 24 (0x18), region = 24  ;;  %s159_s23 = sand.u32 (%p67_p3), 1, %s707_s13  }
  0x11   : > { %s621_s24 = sshll.u32 (%p67_p3), %s715_s15, 4  ;;  %s594_s25 = sshll.u32 (%p67_p3), %s159_s23, 6 }
  0x12   : > { %s164_s28 = scalar_lea.vmem (%p67_p3), %s826_s1, %s621_s24  ;;  %s161_s29 = scalar_lea.vmem (%p67_p3), [#allocation2], %s594_s25 }
  0x13   : > { %v177_v0 = vld [vmem:[%s164_s28] sm:$0xff] (%p67_p3)  ;;  %v179_v1 = vld [vmem:[%s164_s28 + $0x8] sm:$0xff] (%p67_p3) }
  0x14   : > { %v181_v2 = vld [vmem:[%s164_s28 + $0x40] sm:$0xff] (%p67_p3)  ;;  %178 = vst [vmem:[%s161_s29] sm:$0xff] (%p67_p3), %v177_v0  ;;  %180 = vst [vmem:[%s161_s29 + $0x8] sm:$0xff] (%p67_p3), %v179_v1  ;;  %v183_v3 = vld [vmem:[%s164_s28 + $0x48] sm:$0xff] (%p67_p3) }
  0x15   : > { %182 = vst [vmem:[%s161_s29 + $0x10] sm:$0xff] %v181_v2  ;;  %v185_v4 = vld [vmem:[%s164_s28 + $0x80] sm:$0xff]  ;;  %v187_v5 = vld [vmem:[%s164_s28 + $0x88] sm:$0xff]  ;;  %184 = vst [vmem:[%s161_s29 + $0x18] sm:$0xff] %v183_v3 }
  0x16   : > { %186 = vst [vmem:[%s161_s29 + $0x20] sm:$0xff] %v185_v4  ;;  %188 = vst [vmem:[%s161_s29 + $0x28] sm:$0xff] %v187_v5  ;;  %v189_v6 = vld [vmem:[%s164_s28 + $0xc0] sm:$0xff]  ;;  %v191_v7 = vld [vmem:[%s164_s28 + $0xc8] sm:$0xff] }
  0x17   : > { %190 = vst [vmem:[%s161_s29 + $0x30] sm:$0xff] %v189_v6  ;;  %192 = vst [vmem:[%s161_s29 + $0x38] sm:$0xff] %v191_v7 }
  0x18 PF: > { %p597_p8 = scmp.ge.s32.totalorder %s719_s16, 1  ;;  %p205_p9 = scmp.lt.s32.totalorder %s719_s16, 5 }
  0x1a   : > { %p206_p10 = pnand %p597_p8, %p205_p9 }
  0x1b   : > { %s212_s30 = sand.u32 (!%p206_p10), 1, %s703_s12   ;;  %s600_s8 = sshll.u32 (!%p206_p10), %s711_s14, 2 }
  0x1c   : > { %209 = sbr.rel (%p206_p10) target bundleno = 257 (0x101), region = 51  ;;  %s598_s4 = sshll.u32 (!%p206_p10), %s212_s30, 6 }
  0x1d   : > { %s214_s5 = scalar_lea.vmem (!%p206_p10), [#allocation2], %s598_s4  ;;  %p251_p11 = scmp.lt.s32.totalorder (!%p206_p10), %s600_s8, 15 }
  0x1e   : > { %s599_s18 = sshll.u32 (!%p206_p10), %s212_s30, 5 }
  0x1f   : > { %s242_s19 = scalar_lea.vmem (!%p206_p10), [#allocation3], %s599_s18 }
  0x21   : > { %v721_v8 = vmov 0   ;;  %v668_v9 = vld [vmem:[%s214_s5 + $0x24] ss:$16 sps:$4 sm:$0xff]   ;;  %v670_v10 = vld [vmem:[%s214_s5 + $0x2c] ss:$16 sps:$4 sm:$0xff]   ;;  %vm335_vm0 = vcmask 261120   ;;  %v270_v18 = vlaneseq }
  0x22   : > { %371 = vmatprep.mubr.bf16.mxu0 %v721_v8  ;;  %414 = vmatprep.mubr.bf16.mxu1 %v721_v8  ;;  %v672_v11 = vld [vmem:[%s214_s5 + $0x20] ss:$16 sps:$4 sm:$0xff]   ;;  %v673_v12 = vld [vmem:[%s214_s5 + $0x28] ss:$16 sps:$4 sm:$0xff]   ;;  %v674_v13 = vld [vmem:[%s214_s5 + $0x4] ss:$16 sps:$4 sm:$0xff]  }
  0x23   : > { %351 = vmatprep.subr.bf16.mxu0 %v668_v9  ;;  %394 = vmatprep.subr.bf16.mxu1 %v670_v10  ;;  %v676_v14 = vld [vmem:[%s214_s5 + $0xc] ss:$16 sps:$4 sm:$0xff]   ;;  %v678_v15 = vld [vmem:[%s214_s5] ss:$16 sps:$4 sm:$0xff]   ;;  %v679_v16 = vld [vmem:[%s214_s5 + $0x8] ss:$16 sps:$4 sm:$0xff]  }
  0x24   : > { %352 = vmatpush1.bf16.msra.mxu0 %v672_v11  ;;  %395 = vmatpush1.bf16.msra.mxu1 %v673_v12  ;;  %v680_v17 = vld [vmem:[%s825_s0] sm:$0xff]   ;;  %s837_s8 = smov (!%p251_p11, %s600_s8), 15  ;;  %v271_v19 = vshrl.u32 %v270_v18, 7  ;;  %s626_s12 = sshll.u32 (%p777_p6), %s711_s14, 4 }
  0x25   : > { %353 = vmatprep.subr.bf16.mxu0 %v674_v13  ;;  %396 = vmatprep.subr.bf16.mxu1 %v676_v14  ;;  %s253_s11 = scalar_lea.vmem %s827_s2, %s837_s8  ;;  %s473_s24 = scalar_lea.vmem (%p777_p6), %s828_s3, %s626_s12 }
  0x26   : > { %v272_v20 = vsub.s32 0, %v271_v19  ;;  %v280_v21 = vsub.s32 2, %v271_v19  ;;  %v268_v22 = vld [vmem:[%s253_s11] sm:$0xf]  ;;  %v276_v23 = vsub.s32 1, %v271_v19  ;;  %v284_v24 = vsub.s32 3, %v271_v19 }
  0x28   : > { %354 = vmatpush1.bf16.msra.mxu0 %v678_v15  ;;  %397 = vmatpush1.bf16.msra.mxu1 %v679_v16  ;;  %v273_v25 = vrot.slane %v268_v22, %v272_v20  ;;  %v281_v26 = vrot.slane %v268_v22, %v280_v21  ;;  %v277_v27 = vrot.slane %v268_v22, %v276_v23 }
  0x29   : > { %v285_v28 = vrot.slane %v268_v22, %v284_v24 }
  0x2b   : > { %610 = vmatmul.mubr.msk.bf16.vlgmr.msra.gmra.mxu0 %vm335_vm0, %v680_v17  ;;  %611 = vmatmul.mubr.msk.bf16.vlgmr.msra.gmra.mxu1 %vm335_vm0, %v680_v17 }
  0xeb   : > { %v373_v29 = vpop.f32.mrf.mxu0  ;;  %v416_v30 = vpop.f32.mrf.mxu1 }
  0xec   : > { %v374_v31 = vadd.f32 %v373_v29, %v273_v25  ;;  %v417_v32 = vadd.f32 %v416_v30, %v281_v26 }
  0xed   : > { %v375_v33 = vpop.f32.mrf.mxu0  ;;  %v418_v34 = vpop.f32.mrf.mxu1 }
  0xee   : > { %v376_v35 = vadd.f32 %v375_v33, %v277_v27  ;;  %v419_v36 = vadd.f32 %v418_v34, %v285_v28  ;;  %v425_v39 = vmax.f32 %v374_v31, 0.0  ;;  %v427_v40 = vmax.f32 %v417_v32, 0.0 }
  0xef   : > { %v377_v37 = vpop.f32.mrf.mxu0  ;;  %v420_v38 = vpop.f32.mrf.mxu1 }
  0xf0   : > { %v426_v41 = vmax.f32 %v376_v35, 0.0  ;;  %v428_v42 = vmax.f32 %v419_v36, 0.0  ;;  %v378_v43 = vadd.f32 %v377_v37, %v273_v25  ;;  %v421_v44 = vadd.f32 %v420_v38, %v281_v26 }
  0xf1   : > { %v379_v45 = vpop.f32.mrf.mxu0  ;;  %v422_v46 = vpop.f32.mrf.mxu1 }
  0xf2   : > { %v622_v47 = vpack.c.bf16 %v426_v41, %v425_v39  ;;  %v623_v48 = vpack.c.bf16 %v428_v42, %v427_v40  ;;  %v380_v49 = vadd.f32 %v379_v45, %v277_v27  ;;  %v423_v50 = vadd.f32 %v422_v46, %v285_v28 }
  0xf3   : > { %v429_v51 = vmax.f32 %v378_v43, 0.0  ;;  %v431_v52 = vmax.f32 %v421_v44, 0.0 }
  0xf4   : > { %457 = vst [vmem:[%s242_s19] sm:$0xff] %v622_v47  ;;  %458 = vst [vmem:[%s242_s19 + $0x8] sm:$0xff] %v623_v48  ;;  %v430_v53 = vmax.f32 %v380_v49, 0.0  ;;  %v432_v54 = vmax.f32 %v423_v50, 0.0  ;;  %467 = sbr.rel (!%p777_p6) target bundleno = 257 (0x101), region = 59 }
  0xf6   : > { %v624_v55 = vpack.c.bf16 %v430_v53, %v429_v51  ;;  %v625_v56 = vpack.c.bf16 %v432_v54, %v431_v52 }
  0xf8   : > { %459 = vst [vmem:[%s242_s19 + $0x10] sm:$0xff] %v624_v55  ;;  %460 = vst [vmem:[%s242_s19 + $0x18] sm:$0xff] %v625_v56 }
  0xfb   : > { %v486_v57 = vld [vmem:[%s242_s19] sm:$0xff]  ;;  %v488_v58 = vld [vmem:[%s242_s19 + $0x8] sm:$0xff] }
  0xfc   : > { %487 = vst [vmem:[%s473_s24] sm:$0xff] %v486_v57  ;;  %489 = vst [vmem:[%s473_s24 + $0x8] sm:$0xff] %v488_v58 }
  0xff   : > { %v490_v59 = vld [vmem:[%s242_s19 + $0x10] sm:$0xff]  ;;  %v492_v60 = vld [vmem:[%s242_s19 + $0x18] sm:$0xff] }
 0x100   : > { %491 = vst [vmem:[%s473_s24 + $0x40] sm:$0xff] %v490_v59  ;;  %493 = vst [vmem:[%s473_s24 + $0x48] sm:$0xff] %v492_v60 }
 0x101 PF: > { %s13_s16 = sadd.s32 1, %s719_s16   ;;  %s830_s12 = smov %s707_s13 }
 0x102   : > { %p10_p12 = scmp.ge.s32.totalorder %s13_s16, 6   ;;  %s831_s13 = smov %s782_s22 }
 0x103   : > { %s832_s14 = smov %s715_s15  ;;  %s833_s15 = smov %s835_s17 }
 0x104   :  { %12 = sbr.rel (!%p10_p12) target bundleno = 3 (0x3), region = 119 }

// kernel: transformer_forward.18
= control target key start
LH: loop header
LB: loop body
LE: loop exit
PB: predicated region body
PF: predicated region fallthrough
CT: control target
= control target key end

     0   :  { %v130_v0 = vmov 0.0   ;;  %vm131_vm0 = vmmov 0   ;;  %vm45_vm1 = vcmask 261120   ;;  %vm98_vm2 = vcmask 781312   ;;  %s170_s1 = inlined_call_operand.vmem [shape: bf16[32,96], index: 1, kind: input, shape index: {}]   ;;  %s171_s0 = inlined_call_operand.vmem [shape: bf16[16,32], index: 0, kind: input, shape index: {}]   ;;  %s172_s2 = inlined_call_operand.vmem [shape: f32[1,96], index: 2, kind: input, shape index: {}]   ;;  %s173_s3 = inlined_call_operand.vmem [shape: bf16[16,96], index: 3, kind: output, shape index: {}]  }
   0x1   :  { %117 = vmatprep.subr.bf16.mxu0 %v130_v0  ;;  %v127_v1 = vld [vmem:[%s170_s1 + $0x8] sm:$0xff]   ;;  %121 = vmatprep.mubr.msk.bf16.mxu0 %vm131_vm0, %v130_v0  ;;  %v128_v2 = vld [vmem:[%s170_s1] sm:$0xff]  }
   0x2   :  { %118 = vmatpush3.bf16.msra.mxu0 %v127_v1  ;;  %v129_v3 = vld [vmem:[%s171_s0] sm:$0xff]  }
   0x3   :  { %119 = vmatprep.subr.bf16.mxu0 %v130_v0  ;;  %v105_v4 = vld [vmem:[%s172_s2] ss:$0 sm:$0xff] }
   0x6   :  { %120 = vmatpush3.bf16.msra.mxu0 %v128_v2 }
   0x9   :  { %122 = vmatmul.mubr.msk.bf16.vlgmr.msra.gmra.mxu0 %vm45_vm1, %v129_v3 }
  0xc9   :  { %v83_v5 = vpop.f32.mrf.mxu0 }
  0xca   :  { %v84_v6 = vadd.f32 %v105_v4, %v83_v5 }
  0xcb   :  { %v123_v7 = vpop.f32.mrf.mxu0 }
  0xcc   :  { %v112_v8 = vpack.c.bf16 %v84_v6, %v84_v6 }
  0xcd   :  { %v86_v9 = vpop.f32.mrf.mxu0 }
  0xce   :  { %99 = vst.msk [vmem:[%s173_s3] sm:$0xf] %vm98_vm2, %v112_v8  ;;  %v87_v10 = vadd.f32 %v105_v4, %v86_v9 }
  0xcf   :  { %v124_v11 = vpop.f32.mrf.mxu0 }
  0xd0   :  { %v113_v12 = vpack.c.bf16 %v87_v10, %v87_v10 }
  0xd2   :  { %100 = vst.msk [vmem:[%s173_s3 + $0x4] sm:$0xf] %vm98_vm2, %v113_v12 }

// kernel: transformer_forward.23
= control target key start
LH: loop header
LB: loop body
LE: loop exit
PB: predicated region body
PF: predicated region fallthrough
CT: control target
= control target key end

     0   :  { %v117_v0 = vmov 0.0   ;;  %vm118_vm0 = vmmov 0   ;;  %vm45_vm1 = vcmask 261120   ;;  %s157_s1 = inlined_call_operand.vmem [shape: bf16[32,32], index: 1, kind: input, shape index: {}]   ;;  %s158_s0 = inlined_call_operand.vmem [shape: bf16[16,32], index: 0, kind: input, shape index: {}]   ;;  %s159_s2 = inlined_call_operand.vmem [shape: f32[1,32], index: 2, kind: input, shape index: {}]   ;;  %s160_s3 = inlined_call_operand.vmem [shape: f32[16,32], index: 3, kind: output, shape index: {}]  }
   0x1   :  { %104 = vmatprep.subr.bf16.mxu0 %v117_v0  ;;  %v114_v1 = vld [vmem:[%s157_s1 + $0x8] sm:$0xff]   ;;  %108 = vmatprep.mubr.msk.bf16.mxu0 %vm118_vm0, %v117_v0  ;;  %v115_v2 = vld [vmem:[%s157_s1] sm:$0xff]  }
   0x2   :  { %105 = vmatpush3.bf16.msra.mxu0 %v114_v1  ;;  %v116_v3 = vld [vmem:[%s158_s0] sm:$0xff]  }
   0x3   :  { %106 = vmatprep.subr.bf16.mxu0 %v117_v0  ;;  %v96_v4 = vld [vmem:[%s159_s2] ss:$0 sm:$0xff] }
   0x6   :  { %107 = vmatpush3.bf16.msra.mxu0 %v115_v2 }
   0x9   :  { %109 = vmatmul.mubr.msk.bf16.vlgmr.msra.gmra.mxu0 %vm45_vm1, %v116_v3 }
  0xc9   :  { %v83_v5 = vpop.f32.mrf.mxu0 }
  0xca   :  { %v84_v6 = vadd.f32 %v96_v4, %v83_v5 }
  0xcb   :  { %v110_v7 = vpop.f32.mrf.mxu0 }
  0xcc   :  { %90 = vst.msk [vmem:[%s160_s3] sm:$0xff] %vm45_vm1, %v84_v6 }
  0xcd   :  { %v86_v8 = vpop.f32.mrf.mxu0 }
  0xce   :  { %v87_v9 = vadd.f32 %v96_v4, %v86_v8 }
  0xcf   :  { %v111_v10 = vpop.f32.mrf.mxu0 }
  0xd0   :  { %91 = vst.msk [vmem:[%s160_s3 + $0x8] sm:$0xff] %vm45_vm1, %v87_v9 }

// kernel: transformer_forward.14
= control target key start
LH: loop header
LB: loop body
LE: loop exit
PB: predicated region body
PF: predicated region fallthrough
CT: control target
= control target key end

     0   :  { %v25_v0 = vlaneseq  ;;  %v4638_v1 = vmov 1966171168   ;;  %v4639_v3 = vmov 0.0   ;;  %vm4640_vm0 = vmmov 0   ;;  %s4641_s21 = smov 96   ;;  %s4643_s28 = smov 88   ;;  %s5658_s0 = inlined_call_operand.vmem [shape: bf16[8,2,96], index: 0, kind: input, shape index: {}]   ;;  %s5659_s1 = inlined_call_operand.vmem [shape: f32[2,2], index: 1, kind: input, shape index: {}]   ;;  %s5660_s2 = inlined_call_operand.vmem [shape: bf16[8,2,32], index: 2, kind: output, shape index: {}]  }
   0x1   :  { %v23_v2 = vunpack.c.l.s4 %v4638_v1  ;;  %4048 = vmatprep.subr.bf16.mxu0 %v4639_v3  ;;  %4054 = vmatprep.subr.bf16.mxu1 %v4639_v3  ;;  %v12_v5 = vld [vmem:[%s5658_s0] sm:$0x1]  ;;  %v13_v7 = vld [vmem:[%s5658_s0 + $0x1] sm:$0x1]  ;;  %v4681_v8 = vld [vmem:[%s5658_s0 + $0x2] sm:$0x1] }
   0x2   :  { %v26_v4 = vshrl.u32 %v25_v0, 7  ;;  %v4686_v9 = vld [vmem:[%s5658_s0 + $0x3] sm:$0x1]  ;;  %4050 = vmatprep.mubr.msk.bf16.mxu0 %vm4640_vm0, %v4639_v3  ;;  %4056 = vmatprep.mubr.msk.bf16.mxu1 %vm4640_vm0, %v4639_v3  ;;  %v4697_v15 = vld [vmem:[%s5658_s0 + $0x4] sm:$0x1]  ;;  %vm38_vm1 = vcmask 64512  }
   0x3   :  { %v24_v6 = vunpack.c.0.s8 %v23_v2  ;;  %v4702_v16 = vld [vmem:[%s5658_s0 + $0x5] sm:$0x1]  ;;  %v4719_v23 = vld [vmem:[%s5658_s0 + $0x6] sm:$0x1]  ;;  %v4724_v24 = vld [vmem:[%s5658_s0 + $0x7] sm:$0x1] }
   0x4   :  { %s4642_s0 = smov 64   ;;  %vm645_vm2 = vcmask 1040384   ;;  %v4803_v52 = vld [vmem:[%s5659_s1] sm:$0x3]  ;;  %vm542_vm3 = vcmask 9216   ;;  %s4644_s29 = smov 120  }
   0x5   :  { %v27_v10 = vsub.s32 %v24_v6, %v26_v4  ;;  %vm641_vm4 = vcmask 15360   ;;  %s4645_s30 = smov 56   ;;  %s4646_s3 = smov 80   ;;  %vm3817_vm5 = vcmask 130048   ;;  %vm3826_vm6 = vcmask 195584  }
   0x6   :  { %s4647_s4 = smov 112   ;;  %s4648_s5 = smov 48   ;;  %vm3843_vm7 = vcmask 253952  }
   0x7   :  { %v28_v11 = vrot.slane %v12_v5, %v27_v10  ;;  %v92_v12 = vrot.slane %v13_v7, %v27_v10  ;;  %v155_v13 = vrot.slane %v4681_v8, %v27_v10  ;;  %v218_v14 = vrot.slane %v4686_v9, %v27_v10  ;;  %s4650_s8 = smov 104   ;;  %s4651_s9 = smov 40  }
   0x8   :  { %v281_v19 = vrot.slane %v4697_v15, %v27_v10  ;;  %v344_v22 = vrot.slane %v4702_v16, %v27_v10  ;;  %v407_v25 = vrot.slane %v4719_v23, %v27_v10  ;;  %v470_v28 = vrot.slane %v4724_v24, %v27_v10  ;;  %s4652_s10 = smov 8   ;;  %s4653_s11 = smov 16  }
   0x9   :  { %v4704_v17 = vrot.slane %v28_v11, %v27_v10  ;;  %v4706_v18 = vrot.slane %v155_v13, %v27_v10  ;;  %v4710_v20 = vrot.slane %v92_v12, %v27_v10  ;;  %v4713_v21 = vrot.slane %v218_v14, %v27_v10  ;;  %s4654_s12 = smov 24  }
   0xa   :  { %v4729_v26 = vrot.slane %v281_v19, %v27_v10  ;;  %v4731_v27 = vrot.slane %v344_v22, %v27_v10  ;;  %v4736_v29 = vrot.slane %v407_v25, %v27_v10  ;;  %v4738_v30 = vrot.slane %v470_v28, %v27_v10 }
   0xb   :  { %36 = vrot.lane.b32.xlu0 %v4704_v17, %s4641_s21  ;;  %163 = vrot.lane.b32.xlu1 %v4706_v18, %s4641_s21 }
   0xf   :  { %100 = vrot.lane.b32.xlu0 %v4710_v20, %s4641_s21  ;;  %226 = vrot.lane.b32.xlu1 %v4713_v21, %s4641_s21 }
  0x13   :  { %289 = vrot.lane.b32.xlu0 %v4729_v26, %s4641_s21  ;;  %352 = vrot.lane.b32.xlu1 %v4731_v27, %s4641_s21 }
  0x17   :  { %415 = vrot.lane.b32.xlu0 %v4736_v29, %s4641_s21  ;;  %478 = vrot.lane.b32.xlu1 %v4738_v30, %s4641_s21 }
  0x1b   :  { %639 = vrot.lane.b32.xlu1 %v4704_v17, %s4642_s0  ;;  %689 = vrot.lane.b32.xlu0 %v4710_v20, %s4642_s0 }
  0x1f   :  { %737 = vrot.lane.b32.xlu1 %v4706_v18, %s4642_s0 }
  0x23   :  { %785 = vrot.lane.b32.xlu1 %v4713_v21, %s4642_s0 }
  0x7d   :  { %v37_v31 = vpop.permute.xlu0 %36  ;;  %v164_v33 = vpop.permute.xlu1 %163 }
  0x7e   :  { %v43_v32 = vsel %vm38_vm1, %v37_v31, 0  ;;  %v169_v36 = vsel %vm38_vm1, %v164_v33, 0 }
  0x7f   :  { %4049 = vmatpush3.bf16.xpose.msra.mxu0 %v43_v32 }
  0x80   :  { %4060 = vmatprep.subr.bf16.mxu0 %v4639_v3 }
  0x81   :  { %v101_v34 = vpop.permute.xlu0 %100  ;;  %v227_v37 = vpop.permute.xlu1 %226 }
  0x82   :  { %v106_v35 = vsel %vm38_vm1, %v101_v34, 0  ;;  %v232_v38 = vsel %vm38_vm1, %v227_v37, 0 }
  0x83   :  { %4055 = vmatpush3.bf16.xpose.msra.mxu1 %v106_v35 }
  0x84   :  { %4066 = vmatprep.subr.bf16.mxu1 %v4639_v3 }
  0x85   :  { %v290_v39 = vpop.permute.xlu0 %289  ;;  %v353_v41 = vpop.permute.xlu1 %352 }
  0x86   :  { %4051 = vmatmul.mubr.msk.bf16.vlgmr.msra.gmra.mxu0 %vm38_vm1, %v12_v5  ;;  %v295_v40 = vsel %vm38_vm1, %v290_v39, 0  ;;  %v358_v42 = vsel %vm38_vm1, %v353_v41, 0 }
  0x87   :  { %4061 = vmatpush3.bf16.xpose.msra.mxu0 %v169_v36  ;;  %4062 = vmatprep.mubr.msk.bf16.mxu0 %vm4640_vm0, %v4639_v3 }
  0x88   :  { %4072 = vmatprep.subr.bf16.mxu0 %v4639_v3 }
  0x89   :  { %v416_v43 = vpop.permute.xlu0 %415  ;;  %v479_v45 = vpop.permute.xlu1 %478 }
  0x8a   :  { %4057 = vmatmul.mubr.msk.bf16.vlgmr.msra.gmra.mxu1 %vm38_vm1, %v13_v7  ;;  %v421_v44 = vsel %vm38_vm1, %v416_v43, 0  ;;  %v484_v46 = vsel %vm38_vm1, %v479_v45, 0 }
  0x8b   :  { %4067 = vmatpush3.bf16.xpose.msra.mxu1 %v232_v38  ;;  %4068 = vmatprep.mubr.msk.bf16.mxu1 %vm4640_vm0, %v4639_v3 }
  0x8c   :  { %4078 = vmatprep.subr.bf16.mxu1 %v4639_v3 }
  0x8d   :  { %v640_v47 = vpop.permute.xlu1 %639  ;;  %v690_v48 = vpop.permute.xlu0 %689 }
  0x8e   :  { %4063 = vmatmul.mubr.msk.bf16.vlgmr.msra.gmra.mxu0 %vm38_vm1, %v4681_v8  ;;  %v647_v49 = vsel %vm645_vm2, %v640_v47, 0  ;;  %v695_v50 = vsel %vm645_vm2, %v690_v48, 0 }
  0x8f   :  { %4073 = vmatpush3.bf16.xpose.msra.mxu0 %v295_v40  ;;  %4074 = vmatprep.mubr.msk.bf16.mxu0 %vm4640_vm0, %v4639_v3 }
  0x90   :  { %4084 = vmatprep.subr.bf16.mxu0 %v4639_v3 }
  0x92   :  { %4069 = vmatmul.mubr.msk.bf16.vlgmr.msra.gmra.mxu1 %vm38_vm1, %v4686_v9 }
  0x93   :  { %4079 = vmatpush3.bf16.xpose.msra.mxu1 %v358_v42  ;;  %4080 = vmatprep.mubr.msk.bf16.mxu1 %vm4640_vm0, %v4639_v3 }
  0x94   :  { %4090 = vmatprep.subr.bf16.mxu1 %v4639_v3 }
  0x96   :  { %4075 = vmatmul.mubr.msk.bf16.vlgmr.msra.gmra.mxu0 %vm38_vm1, %v4697_v15 }
  0x97   :  { %4085 = vmatpush3.bf16.xpose.msra.mxu0 %v421_v44  ;;  %4086 = vmatprep.mubr.msk.bf16.mxu0 %vm4640_vm0, %v4639_v3 }
  0x98   :  { %4096 = vmatprep.subr.bf16.mxu0 %v4639_v3 }
  0x9a   :  { %4081 = vmatmul.mubr.msk.bf16.vlgmr.msra.gmra.mxu1 %vm38_vm1, %v4702_v16 }
  0x9b   :  { %4091 = vmatpush3.bf16.xpose.msra.mxu1 %v484_v46  ;;  %4092 = vmatprep.mubr.msk.bf16.mxu1 %vm4640_vm0, %v4639_v3 }
  0x9c   :  { %4102 = vmatprep.subr.bf16.mxu1 %v4639_v3 }
  0x9e   :  { %4087 = vmatmul.mubr.msk.bf16.vlgmr.msra.gmra.mxu0 %vm38_vm1, %v4719_v23 }
  0x9f   :  { %4098 = vmatprep.mubr.msk.bf16.mxu0 %vm4640_vm0, %v4639_v3  ;;  %4097 = vmatpush3.bf16.msra.mxu0 %v647_v49 }
  0xa0   :  { %4108 = vmatprep.subr.bf16.mxu0 %v4639_v3 }
  0xa2   :  { %4093 = vmatmul.mubr.msk.bf16.vlgmr.msra.gmra.mxu1 %vm38_vm1, %v4724_v24 }
  0xa3   :  { %4104 = vmatprep.mubr.msk.bf16.mxu1 %vm4640_vm0, %v4639_v3  ;;  %4103 = vmatpush3.bf16.msra.mxu1 %v695_v50 }
  0xa4   :  { %4114 = vmatprep.subr.bf16.mxu1 %v4639_v3 }
 0x146   :  { %v79_v51 = vpop.f32.mrf.mxu0 }
 0x147   :  { %v526_v53 = vmul.f32 0.35355338, %v79_v51 }
 0x148   :  { %v4052_v54 = vpop.f32.mrf.mxu0 }
 0x149   :  { %v4806_v55 = vadd.f32 %v526_v53, %v4803_v52  ;;  %v4834_v54 = vpop.permute.xlu1 %737 }
 0x14a   :  { %v82_v56 = vpop.f32.mrf.mxu0  ;;  %v142_v57 = vpop.f32.mrf.mxu1 }
 0x14b   :  { %v527_v58 = vmul.f32 0.35355338, %v142_v57  ;;  %v543_v59 = vsel %vm542_vm3, %v4806_v55, -inf }
 0x14c   :  { %544 = vmax.xlane.f32.xlu0 %v543_v59  ;;  %v4053_v60 = vpop.f32.mrf.mxu0  ;;  %v4058_v61 = vpop.f32.mrf.mxu1 }
 0x14d   :  { %v4811_v62 = vadd.f32 %v527_v58, %v4803_v52  ;;  %v4836_v56 = vpop.permute.xlu1 %785 }
 0x14e   :  { %v145_v63 = vpop.f32.mrf.mxu1  ;;  %v205_v0 = vpop.f32.mrf.mxu0 }
 0x14f   :  { %v528_v1 = vmul.f32 0.35355338, %v205_v0  ;;  %v546_v2 = vsel %vm542_vm3, %v4811_v62, -inf }
 0x150   :  { %v4064_v4 = vpop.f32.mrf.mxu0  ;;  %547 = vmax.xlane.f32.xlu1 %v546_v2  ;;  %v4059_v5 = vpop.f32.mrf.mxu1 }
 0x151   :  { %v536_v6 = vadd.f32 %v528_v1, %v4803_v52 }
 0x152   :  { %v208_v7 = vpop.f32.mrf.mxu0  ;;  %v268_v8 = vpop.f32.mrf.mxu1 }
 0x153   :  { %v529_v9 = vmul.f32 0.35355338, %v268_v8  ;;  %v549_v10 = vsel %vm542_vm3, %v536_v6, -inf }
 0x154   :  { %550 = vmax.xlane.f32.xlu0 %v549_v10  ;;  %v4065_v11 = vpop.f32.mrf.mxu0  ;;  %v4070_v12 = vpop.f32.mrf.mxu1 }
 0x155   :  { %v537_v13 = vadd.f32 %v529_v9, %v4803_v52 }
 0x156   :  { %v271_v14 = vpop.f32.mrf.mxu1  ;;  %v331_v15 = vpop.f32.mrf.mxu0 }
 0x157   :  { %v530_v16 = vmul.f32 0.35355338, %v331_v15  ;;  %v552_v19 = vsel %vm542_vm3, %v537_v13, -inf }
 0x158   :  { %553 = vmax.xlane.f32.xlu0 %v552_v19  ;;  %v4071_v22 = vpop.f32.mrf.mxu1  ;;  %v4076_v23 = vpop.f32.mrf.mxu0 }
 0x159   :  { %v538_v24 = vadd.f32 %v530_v16, %v4803_v52 }
 0x15a   :  { %v334_v25 = vpop.f32.mrf.mxu0  ;;  %v394_v28 = vpop.f32.mrf.mxu1 }
 0x15b   :  { %v531_v31 = vmul.f32 0.35355338, %v394_v28  ;;  %v555_v32 = vsel %vm542_vm3, %v538_v24, -inf }
 0x15c   :  { %v4082_v33 = vpop.f32.mrf.mxu1  ;;  %556 = vmax.xlane.f32.xlu1 %v555_v32  ;;  %v4077_v34 = vpop.f32.mrf.mxu0 }
 0x15d   :  { %v539_v35 = vadd.f32 %v531_v31, %v4803_v52 }
 0x15e   :  { %v397_v36 = vpop.f32.mrf.mxu1  ;;  %v457_v37 = vpop.f32.mrf.mxu0 }
 0x15f   :  { %v532_v38 = vmul.f32 0.35355338, %v457_v37  ;;  %v558_v39 = vsel %vm542_vm3, %v539_v35, -inf }
 0x160   :  { %559 = vmax.xlane.f32.xlu0 %v558_v39  ;;  %v4083_v40 = vpop.f32.mrf.mxu1  ;;  %v4088_v41 = vpop.f32.mrf.mxu0 }
 0x161   :  { %v4824_v42 = vadd.f32 %v532_v38, %v4803_v52 }
 0x162   :  { %v520_v43 = vpop.f32.mrf.mxu1  ;;  %v460_v44 = vpop.f32.mrf.mxu0 }
 0x163   :  { %v533_v45 = vmul.f32 0.35355338, %v520_v43  ;;  %v561_v46 = vsel %vm542_vm3, %v4824_v42, -inf }
 0x164   :  { %562 = vmax.xlane.f32.xlu1 %v561_v46  ;;  %v4089_v47 = vpop.f32.mrf.mxu0  ;;  %v4094_v48 = vpop.f32.mrf.mxu1 }
 0x165   :  { %v541_v49 = vadd.f32 %v533_v45, %v4803_v52 }
 0x166   :  { %v523_v50 = vpop.f32.mrf.mxu1 }
 0x167   :  { %v564_v51 = vsel %vm542_vm3, %v541_v49, -inf }
 0x168   :  { %565 = vmax.xlane.f32.xlu0 %v564_v51  ;;  %v4095_v53 = vpop.f32.mrf.mxu1 }
 0x169   :  { %v743_v53 = vsel %vm645_vm2, %v4834_v54, 0 }
 0x175   :  { %881 = vrot.lane.b32.xlu1 %v4731_v27, %s4642_s0 }
 0x17e   :  { %833 = vrot.lane.b32.xlu0 %v4729_v26, %s4642_s0 }
 0x1d5   :  { %v545_v57 = vpop.xlane.xlu0 %544 }
 0x1d6   :  { %v567_v58 = vsub.f32 %v4806_v55, %v545_v57 }
 0x1d8   :  { %v575_v59 = vmul.f32 1.442695, %v567_v58 }
 0x1d9   :  { %v548_v60 = vpop.xlane.xlu1 %547 }
 0x1da   :  { %4509 = vpow2.f32 %v575_v59  ;;  %v568_v61 = vsub.f32 %v4811_v62, %v548_v60 }
 0x1dc   :  { %v577_v63 = vmul.f32 1.442695, %v568_v61  ;;  %v791_v61 = vsel %vm645_vm2, %v4836_v56, 0 }
 0x1dd   :  { %v551_v0 = vpop.xlane.xlu0 %550 }
 0x1de   :  { %4511 = vpow2.f32 %v577_v63  ;;  %v569_v1 = vsub.f32 %v536_v6, %v551_v0 }
 0x1e0   :  { %v579_v2 = vmul.f32 1.442695, %v569_v1 }
 0x1e1   :  { %v554_v4 = vpop.xlane.xlu0 %553 }
 0x1e2   :  { %4513 = vpow2.f32 %v579_v2  ;;  %v570_v5 = vsub.f32 %v537_v13, %v554_v4 }
 0x1e4   :  { %v581_v7 = vmul.f32 1.442695, %v570_v5 }
 0x1e5   :  { %v557_v8 = vpop.xlane.xlu1 %556 }
 0x1e6   :  { %4515 = vpow2.f32 %v581_v7  ;;  %v571_v9 = vsub.f32 %v538_v24, %v557_v8 }
 0x1e7   :  { %v4840_v10 = vpop.eup %4509 }
 0x1e8   :  { %v583_v55 = vmul.f32 1.442695, %v571_v9  ;;  %v591_v11 = vsel %vm542_vm3, %v4840_v10, 0.0 }
 0x1e9   :  { %592 = vadd.xlane.f32.xlu1 %v591_v11  ;;  %v560_v62 = vpop.xlane.xlu0 %559 }
 0x1ea   :  { %4517 = vpow2.f32 %v583_v55  ;;  %v572_v12 = vsub.f32 %v539_v35, %v560_v62 }
 0x1eb   :  { %v4844_v14 = vpop.eup %4511 }
 0x1ec   :  { %v585_v6 = vmul.f32 1.442695, %v572_v12  ;;  %v594_v13 = vsel %vm542_vm3, %v4844_v14, 0.0 }
 0x1ed   :  { %595 = vadd.xlane.f32.xlu0 %v594_v13  ;;  %v563_v31 = vpop.xlane.xlu1 %562 }
 0x1ee   :  { %4519 = vpow2.f32 %v585_v6  ;;  %v573_v32 = vsub.f32 %v4824_v42, %v563_v31 }
 0x1ef   :  { %v4848_v15 = vpop.eup %4513 }
 0x1f0   :  { %v597_v16 = vsel %vm542_vm3, %v4848_v15, 0.0  ;;  %v587_v34 = vmul.f32 1.442695, %v573_v32 }
 0x1f1   :  { %598 = vadd.xlane.f32.xlu1 %v597_v16  ;;  %v566_v33 = vpop.xlane.xlu0 %565  ;;  %v882_v41 = vpop.permute.xlu1 %881 }
 0x1f2   :  { %v574_v35 = vsub.f32 %v541_v49, %v566_v33  ;;  %4521 = vpow2.f32 %v587_v34  ;;  %v887_v5 = vsel %vm645_vm2, %v882_v41, 0 }
 0x1f3   :  { %v4852_v19 = vpop.eup %4515 }
 0x1f4   :  { %v600_v22 = vsel %vm542_vm3, %v4852_v19, 0.0  ;;  %v589_v36 = vmul.f32 1.442695, %v574_v35 }
 0x1f5   :  { %601 = vadd.xlane.f32.xlu0 %v600_v22  ;;  %v834_v42 = vpop.permute.xlu0 %833 }
 0x1f6   :  { %4523 = vpow2.f32 %v589_v36  ;;  %v839_v1 = vsel %vm645_vm2, %v834_v42, 0 }
 0x1f7   :  { %v4856_v23 = vpop.eup %4517 }
 0x1f8   :  { %v603_v24 = vsel %vm542_vm3, %v4856_v23, 0.0 }
 0x1f9   :  { %604 = vadd.xlane.f32.xlu1 %v603_v24 }
 0x1fb   :  { %v4860_v25 = vpop.eup %4519 }
 0x1fc   :  { %v606_v28 = vsel %vm542_vm3, %v4860_v25, 0.0 }
 0x1fd   :  { %607 = vadd.xlane.f32.xlu0 %v606_v28 }
 0x1ff   :  { %v4869_v37 = vpop.eup %4521 }
 0x200   :  { %v609_v38 = vsel %vm542_vm3, %v4869_v37, 0.0 }
 0x203   :  { %v4873_v39 = vpop.eup %4523 }
 0x204   :  { %v612_v40 = vsel %vm542_vm3, %v4873_v39, 0.0 }
 0x20a   :  { %977 = vrot.lane.b32.xlu1 %v4738_v30, %s4642_s0 }
 0x213   :  { %929 = vrot.lane.b32.xlu0 %v4736_v29, %s4642_s0 }
 0x22e   :  { %610 = vadd.xlane.f32.xlu1 %v609_v38 }
 0x232   :  { %613 = vadd.xlane.f32.xlu0 %v612_v40 }
 0x23f   :  { %1077 = vrot.lane.b32.xlu1 %v4710_v20, %s4643_s28 }
 0x243   :  { %1075 = vrot.lane.b32.xlu1 %v4710_v20, %s4644_s29 }
 0x247   :  { %1177 = vrot.lane.b32.xlu1 %v4713_v21, %s4643_s28 }
 0x248   :  { %1027 = vrot.lane.b32.xlu0 %v4704_v17, %s4643_s28 }
 0x24b   :  { %1175 = vrot.lane.b32.xlu1 %v4713_v21, %s4644_s29 }
 0x24c   :  { %1025 = vrot.lane.b32.xlu0 %v4704_v17, %s4644_s29 }
 0x24f   :  { %1277 = vrot.lane.b32.xlu1 %v4731_v27, %s4643_s28 }
 0x250   :  { %1127 = vrot.lane.b32.xlu0 %v4706_v18, %s4643_s28 }
 0x253   :  { %1275 = vrot.lane.b32.xlu1 %v4731_v27, %s4644_s29 }
 0x254   :  { %1125 = vrot.lane.b32.xlu0 %v4706_v18, %s4644_s29 }
 0x257   :  { %1377 = vrot.lane.b32.xlu1 %v4738_v30, %s4643_s28 }
 0x258   :  { %1227 = vrot.lane.b32.xlu0 %v4729_v26, %s4643_s28 }
 0x25b   :  { %1375 = vrot.lane.b32.xlu1 %v4738_v30, %s4644_s29 }
 0x25c   :  { %1225 = vrot.lane.b32.xlu0 %v4729_v26, %s4644_s29 }
 0x25f   :  { %1537 = vrot.lane.b32.xlu1 %v4704_v17, %s4645_s30 }
 0x260   :  { %1327 = vrot.lane.b32.xlu0 %v4736_v29, %s4643_s28 }
 0x263   :  { %1633 = vrot.lane.b32.xlu1 %v4706_v18, %s4645_s30 }
 0x264   :  { %1325 = vrot.lane.b32.xlu0 %v4736_v29, %s4644_s29 }
 0x267   :  { %1681 = vrot.lane.b32.xlu1 %v4713_v21, %s4645_s30 }
 0x268   :  { %1585 = vrot.lane.b32.xlu0 %v4710_v20, %s4645_s30 }
 0x272   :  { %v593_v43 = vpop.xlane.xlu1 %592 }
 0x273   :  { %4525 = vrcp.f32 %v593_v43 }
 0x276   :  { %v596_v44 = vpop.xlane.xlu0 %595 }
 0x277   :  { %4527 = vrcp.f32 %v596_v44 }
 0x27a   :  { %v599_v45 = vpop.xlane.xlu1 %598 }
 0x27b   :  { %4529 = vrcp.f32 %v599_v45 }
 0x27e   :  { %v602_v46 = vpop.xlane.xlu0 %601 }
 0x27f   :  { %4531 = vrcp.f32 %v602_v46 }
 0x280   :  { %v4526_v47 = vpop.eup %4525 }
 0x281   :  { %v623_v48 = vmul.f32 %v4526_v47, %v4840_v10 }
 0x282   :  { %v605_v49 = vpop.xlane.xlu1 %604 }
 0x283   :  { %4533 = vrcp.f32 %v605_v49  ;;  %v631_v50 = vpack.c.bf16 %v623_v48, %v623_v48 }
 0x284   :  { %v4528_v51 = vpop.eup %4527 }
 0x285   :  { %4099 = vmatmul.mubr.msk.bf16.vlgmr.msra.gmra.mxu0 %vm641_vm4, %v631_v50  ;;  %v624_v57 = vmul.f32 %v4528_v51, %v4844_v14 }
 0x286   :  { %4109 = vmatpush3.bf16.msra.mxu0 %v743_v53  ;;  %v608_v58 = vpop.xlane.xlu0 %607  ;;  %4110 = vmatprep.mubr.msk.bf16.mxu0 %vm4640_vm0, %v4639_v3  ;;  %v978_v62 = vpop.permute.xlu1 %977 }
 0x287   :  { %4535 = vrcp.f32 %v608_v58  ;;  %v632_v59 = vpack.c.bf16 %v624_v57, %v624_v57  ;;  %4120 = vmatprep.subr.bf16.mxu0 %v4639_v3  ;;  %v983_v14 = vsel %vm645_vm2, %v978_v62, 0 }
 0x288   :  { %v4530_v60 = vpop.eup %4529 }
 0x289   :  { %4105 = vmatmul.mubr.msk.bf16.vlgmr.msra.gmra.mxu1 %vm641_vm4, %v632_v59  ;;  %v625_v54 = vmul.f32 %v4530_v60, %v4848_v15 }
 0x28a   :  { %4115 = vmatpush3.bf16.msra.mxu1 %v791_v61  ;;  %4116 = vmatprep.mubr.msk.bf16.mxu1 %vm4640_vm0, %v4639_v3  ;;  %v930_v8 = vpop.permute.xlu0 %929 }
 0x28b   :  { %v633_v63 = vpack.c.bf16 %v625_v54, %v625_v54  ;;  %4126 = vmatprep.subr.bf16.mxu1 %v4639_v3  ;;  %v935_v55 = vsel %vm645_vm2, %v930_v8, 0 }
 0x28c   :  { %v4532_v0 = vpop.eup %4531 }
 0x28d   :  { %4111 = vmatmul.mubr.msk.bf16.vlgmr.msra.gmra.mxu0 %vm641_vm4, %v633_v63  ;;  %v626_v2 = vmul.f32 %v4532_v0, %v4852_v19 }
 0x28e   :  { %4121 = vmatpush3.bf16.msra.mxu0 %v839_v1  ;;  %4122 = vmatprep.mubr.msk.bf16.mxu0 %vm4640_vm0, %v4639_v3 }
 0x28f   :  { %v634_v56 = vpack.c.bf16 %v626_v2, %v626_v2  ;;  %4132 = vmatprep.subr.bf16.mxu0 %v4639_v3 }
 0x290   :  { %v4534_v4 = vpop.eup %4533 }
 0x291   :  { %4117 = vmatmul.mubr.msk.bf16.vlgmr.msra.gmra.mxu1 %vm641_vm4, %v634_v56  ;;  %v627_v7 = vmul.f32 %v4534_v4, %v4856_v23 }
 0x292   :  { %4127 = vmatpush3.bf16.msra.mxu1 %v887_v5  ;;  %4128 = vmatprep.mubr.msk.bf16.mxu1 %vm4640_vm0, %v4639_v3 }
 0x293   :  { %v635_v9 = vpack.c.bf16 %v627_v7, %v627_v7  ;;  %4138 = vmatprep.subr.bf16.mxu1 %v4639_v3 }
 0x294   :  { %v4536_v10 = vpop.eup %4535 }
 0x295   :  { %4123 = vmatmul.mubr.msk.bf16.vlgmr.msra.gmra.mxu0 %vm641_vm4, %v635_v9  ;;  %v628_v11 = vmul.f32 %v4536_v10, %v4860_v25 }
 0x296   :  { %4133 = vmatpush3.bf16.msra.mxu0 %v935_v55  ;;  %4134 = vmatprep.mubr.msk.bf16.mxu0 %vm4640_vm0, %v4639_v3 }
 0x297   :  { %v636_v12 = vpack.c.bf16 %v628_v11, %v628_v11  ;;  %4144 = vmatprep.subr.bf16.mxu0 %v4639_v3 }
 0x299   :  { %4129 = vmatmul.mubr.msk.bf16.vlgmr.msra.gmra.mxu1 %vm641_vm4, %v636_v12 }
 0x29a   :  { %4139 = vmatpush3.bf16.msra.mxu1 %v983_v14  ;;  %4140 = vmatprep.mubr.msk.bf16.mxu1 %vm4640_vm0, %v4639_v3 }
 0x29b   :  { %4150 = vmatprep.subr.bf16.mxu1 %v4639_v3 }
 0x2b7   :  { %v611_v6 = vpop.xlane.xlu1 %610 }
 0x2b8   :  { %4537 = vrcp.f32 %v611_v6 }
 0x2bb   :  { %v614_v13 = vpop.xlane.xlu0 %613  ;;  %v1078_v15 = vpop.permute.xlu1 %1077 }
 0x2bc   :  { %4539 = vrcp.f32 %v614_v13  ;;  %v1083_v36 = vsel %vm38_vm1, %v1078_v15, 0 }
 0x2bf   :  { %v1028_v16 = vpop.permute.xlu0 %1027  ;;  %v1076_v22 = vpop.permute.xlu1 %1075 }
 0x2c0   :  { %v1033_v28 = vsel %vm38_vm1, %v1028_v16, 0 }
 0x2c3   :  { %v1026_v19 = vpop.permute.xlu0 %1025  ;;  %v1178_v33 = vpop.permute.xlu1 %1177 }
 0x2c4   :  { %v1183_v41 = vsel %vm38_vm1, %v1178_v33, 0 }
 0x2c5   :  { %v4538_v23 = vpop.eup %4537 }
 0x2c6   :  { %v629_v24 = vmul.f32 %v4538_v23, %v4869_v37 }
 0x2c7   :  { %v1128_v25 = vpop.permute.xlu0 %1127  ;;  %v1176_v37 = vpop.permute.xlu1 %1175 }
 0x2c8   :  { %v637_v31 = vpack.c.bf16 %v629_v24, %v629_v24  ;;  %v1133_v40 = vsel %vm38_vm1, %v1128_v25, 0 }
 0x2c9   :  { %v4540_v32 = vpop.eup %4539 }
 0x2ca   :  { %4135 = vmatmul.mubr.msk.bf16.vlgmr.msra.gmra.mxu0 %vm641_vm4, %v637_v31  ;;  %v630_v34 = vmul.f32 %v4540_v32, %v4873_v39 }
 0x2cb   :  { %4145 = vmatpush3.bf16.xpose.msra.mxu0 %v1033_v28  ;;  %4146 = vmatprep.mubr.msk.bf16.mxu0 %vm4640_vm0, %v4639_v3  ;;  %v1126_v35 = vpop.permute.xlu0 %1125  ;;  %v1278_v42 = vpop.permute.xlu1 %1277 }
 0x2cc   :  { %v638_v38 = vpack.c.bf16 %v630_v34, %v630_v34  ;;  %4156 = vmatprep.subr.bf16.mxu0 %v4639_v3  ;;  %v1283_v46 = vsel %vm38_vm1, %v1278_v42, 0 }
 0x2ce   :  { %4141 = vmatmul.mubr.msk.bf16.vlgmr.msra.gmra.mxu1 %vm641_vm4, %v638_v38 }
 0x2cf   :  { %4151 = vmatpush3.bf16.xpose.msra.mxu1 %v1083_v36  ;;  %4152 = vmatprep.mubr.msk.bf16.mxu1 %vm4640_vm0, %v4639_v3  ;;  %v1228_v39 = vpop.permute.xlu0 %1227  ;;  %v1276_v45 = vpop.permute.xlu1 %1275 }
 0x2d0   :  { %4162 = vmatprep.subr.bf16.mxu1 %v4639_v3  ;;  %v1233_v44 = vsel %vm38_vm1, %v1228_v39, 0 }
 0x2d2   :  { %4147 = vmatmul.mubr.msk.bf16.vlgmr.msra.gmra.mxu0 %vm38_vm1, %v1026_v19 }
 0x2d3   :  { %4157 = vmatpush3.bf16.xpose.msra.mxu0 %v1133_v40  ;;  %4158 = vmatprep.mubr.msk.bf16.mxu0 %vm4640_vm0, %v4639_v3  ;;  %v1226_v43 = vpop.permute.xlu0 %1225  ;;  %v1378_v49 = vpop.permute.xlu1 %1377 }
 0x2d4   :  { %4168 = vmatprep.subr.bf16.mxu0 %v4639_v3  ;;  %v1383_v50 = vsel %vm38_vm1, %v1378_v49, 0 }
 0x2d6   :  { %4153 = vmatmul.mubr.msk.bf16.vlgmr.msra.gmra.mxu1 %vm38_vm1, %v1076_v22 }
 0x2d7   :  { %4163 = vmatpush3.bf16.xpose.msra.mxu1 %v1183_v41  ;;  %4164 = vmatprep.mubr.msk.bf16.mxu1 %vm4640_vm0, %v4639_v3  ;;  %v1328_v47 = vpop.permute.xlu0 %1327  ;;  %v1376_v53 = vpop.permute.xlu1 %1375 }
 0x2d8   :  { %4174 = vmatprep.subr.bf16.mxu1 %v4639_v3  ;;  %v1333_v48 = vsel %vm38_vm1, %v1328_v47, 0 }
 0x2da   :  { %4159 = vmatmul.mubr.msk.bf16.vlgmr.msra.gmra.mxu0 %vm38_vm1, %v1126_v35 }
 0x2db   :  { %4169 = vmatpush3.bf16.xpose.msra.mxu0 %v1233_v44  ;;  %4170 = vmatprep.mubr.msk.bf16.mxu0 %vm4640_vm0, %v4639_v3  ;;  %v1326_v51 = vpop.permute.xlu0 %1325  ;;  %v1538_v5 = vpop.permute.xlu1 %1537 }
 0x2dc   :  { %4180 = vmatprep.subr.bf16.mxu0 %v4639_v3  ;;  %v1543_v9 = vsel %vm645_vm2, %v1538_v5, 0 }
 0x2de   :  { %4165 = vmatmul.mubr.msk.bf16.vlgmr.msra.gmra.mxu1 %vm38_vm1, %v1176_v37 }
 0x2df   :  { %4175 = vmatpush3.bf16.xpose.msra.mxu1 %v1283_v46  ;;  %4176 = vmatprep.mubr.msk.bf16.mxu1 %vm4640_vm0, %v4639_v3  ;;  %v1586_v10 = vpop.permute.xlu0 %1585 }
 0x2e0   :  { %4186 = vmatprep.subr.bf16.mxu1 %v4639_v3  ;;  %v1591_v62 = vsel %vm645_vm2, %v1586_v10, 0 }
 0x2e2   :  { %4171 = vmatmul.mubr.msk.bf16.vlgmr.msra.gmra.mxu0 %vm38_vm1, %v1226_v43 }
 0x2e3   :  { %4181 = vmatpush3.bf16.xpose.msra.mxu0 %v1333_v48  ;;  %4182 = vmatprep.mubr.msk.bf16.mxu0 %vm4640_vm0, %v4639_v3 }
 0x2e4   :  { %4192 = vmatprep.subr.bf16.mxu0 %v4639_v3 }
 0x2e6   :  { %4177 = vmatmul.mubr.msk.bf16.vlgmr.msra.gmra.mxu1 %vm38_vm1, %v1276_v45 }
 0x2e7   :  { %4187 = vmatpush3.bf16.xpose.msra.mxu1 %v1383_v50  ;;  %4188 = vmatprep.mubr.msk.bf16.mxu1 %vm4640_vm0, %v4639_v3 }
 0x2e8   :  { %4198 = vmatprep.subr.bf16.mxu1 %v4639_v3 }
 0x2ea   :  { %4183 = vmatmul.mubr.msk.bf16.vlgmr.msra.gmra.mxu0 %vm38_vm1, %v1326_v51 }
 0x2eb   :  { %4194 = vmatprep.mubr.msk.bf16.mxu0 %vm4640_vm0, %v4639_v3  ;;  %4193 = vmatpush3.bf16.msra.mxu0 %v1543_v9 }
 0x2ec   :  { %4204 = vmatprep.subr.bf16.mxu0 %v4639_v3 }
 0x2ee   :  { %4189 = vmatmul.mubr.msk.bf16.vlgmr.msra.gmra.mxu1 %vm38_vm1, %v1376_v53 }
 0x2ef   :  { %4200 = vmatprep.mubr.msk.bf16.mxu1 %vm4640_vm0, %v4639_v3  ;;  %4199 = vmatpush3.bf16.msra.mxu1 %v1591_v62 }
 0x2f0   :  { %4210 = vmatprep.subr.bf16.mxu1 %v4639_v3 }
 0x345   :  { %v4987_v57 = vpop.f32.mrf.mxu0 }
 0x347   :  { %v4100_v58 = vpop.f32.mrf.mxu0 }
 0x349   :  { %v686_v59 = vpop.f32.mrf.mxu0  ;;  %v4989_v60 = vpop.f32.mrf.mxu1 }
 0x34b   :  { %v4101_v61 = vpop.f32.mrf.mxu0  ;;  %v4106_v54 = vpop.f32.mrf.mxu1 }
 0x34d   :  { %v734_v63 = vpop.f32.mrf.mxu1  ;;  %v4991_v0 = vpop.f32.mrf.mxu0 }
 0x34f   :  { %v4107_v1 = vpop.f32.mrf.mxu1  ;;  %v4112_v2 = vpop.f32.mrf.mxu0 }
 0x351   :  { %v782_v56 = vpop.f32.mrf.mxu0  ;;  %v4993_v4 = vpop.f32.mrf.mxu1 }
 0x353   :  { %v4113_v7 = vpop.f32.mrf.mxu0  ;;  %v4118_v8 = vpop.f32.mrf.mxu1 }
 0x355   :  { %v830_v55 = vpop.f32.mrf.mxu1  ;;  %v4996_v11 = vpop.f32.mrf.mxu0 }
 0x357   :  { %v4119_v12 = vpop.f32.mrf.mxu1  ;;  %v4124_v14 = vpop.f32.mrf.mxu0 }
 0x359   :  { %v878_v6 = vpop.f32.mrf.mxu0  ;;  %v5001_v13 = vpop.f32.mrf.mxu1 }
 0x35b   :  { %v4125_v15 = vpop.f32.mrf.mxu0  ;;  %v4130_v16 = vpop.f32.mrf.mxu1 }
 0x35d   :  { %v926_v19 = vpop.f32.mrf.mxu1 }
 0x35f   :  { %v4131_v22 = vpop.f32.mrf.mxu1 }
 0x38a   :  { %v5003_v23 = vpop.f32.mrf.mxu0 }
 0x38c   :  { %v4136_v24 = vpop.f32.mrf.mxu0 }
 0x38e   :  { %v974_v25 = vpop.f32.mrf.mxu0  ;;  %v5005_v28 = vpop.f32.mrf.mxu1 }
 0x390   :  { %v4137_v31 = vpop.f32.mrf.mxu0  ;;  %v4142_v32 = vpop.f32.mrf.mxu1 }
 0x392   :  { %v1022_v33 = vpop.f32.mrf.mxu1  ;;  %v1069_v34 = vpop.f32.mrf.mxu0 }
 0x393   :  { %v1425_v35 = vmul.f32 0.35355338, %v1069_v34 }
 0x394   :  { %v4143_v36 = vpop.f32.mrf.mxu1  ;;  %v4148_v38 = vpop.f32.mrf.mxu0 }
 0x395   :  { %v5008_v37 = vadd.f32 %v1425_v35, %v4803_v52 }
 0x396   :  { %v1072_v40 = vpop.f32.mrf.mxu0  ;;  %v1119_v39 = vpop.f32.mrf.mxu1 }
 0x397   :  { %v1426_v41 = vmul.f32 0.35355338, %v1119_v39  ;;  %v1441_v42 = vsel %vm542_vm3, %v5008_v37, -inf }
 0x398   :  { %v4154_v43 = vpop.f32.mrf.mxu1  ;;  %1442 = vmax.xlane.f32.xlu0 %v1441_v42  ;;  %v4149_v44 = vpop.f32.mrf.mxu0 }
 0x399   :  { %v5013_v45 = vadd.f32 %v1426_v41, %v4803_v52 }
 0x39a   :  { %v1122_v46 = vpop.f32.mrf.mxu1  ;;  %v1169_v47 = vpop.f32.mrf.mxu0 }
 0x39b   :  { %v1427_v48 = vmul.f32 0.35355338, %v1169_v47  ;;  %v1444_v49 = vsel %vm542_vm3, %v5013_v45, -inf  ;;  %v5036_v47 = vpop.permute.xlu1 %1633 }
 0x39c   :  { %1445 = vmax.xlane.f32.xlu1 %v1444_v49  ;;  %v4155_v50 = vpop.f32.mrf.mxu1  ;;  %v4160_v51 = vpop.f32.mrf.mxu0 }
 0x39d   :  { %v1435_v53 = vadd.f32 %v1427_v48, %v4803_v52 }
 0x39e   :  { %v1172_v58 = vpop.f32.mrf.mxu0  ;;  %v1219_v59 = vpop.f32.mrf.mxu1 }
 0x39f   :  { %v1428_v61 = vmul.f32 0.35355338, %v1219_v59  ;;  %v1447_v54 = vsel %vm542_vm3, %v1435_v53, -inf  ;;  %v5038_v48 = vpop.permute.xlu1 %1681 }
 0x3a0   :  { %v4166_v63 = vpop.f32.mrf.mxu1  ;;  %1448 = vmax.xlane.f32.xlu0 %v1447_v54  ;;  %v4161_v1 = vpop.f32.mrf.mxu0 }
 0x3a1   :  { %v1436_v2 = vadd.f32 %v1428_v61, %v4803_v52 }
 0x3a2   :  { %v1222_v56 = vpop.f32.mrf.mxu1  ;;  %v1269_v5 = vpop.f32.mrf.mxu0 }
 0x3a3   :  { %v1429_v7 = vmul.f32 0.35355338, %v1269_v5  ;;  %v1450_v8 = vsel %vm542_vm3, %v1436_v2, -inf }
 0x3a4   :  { %v4167_v9 = vpop.f32.mrf.mxu1  ;;  %1451 = vmax.xlane.f32.xlu0 %v1450_v8  ;;  %v4172_v10 = vpop.f32.mrf.mxu0 }
 0x3a5   :  { %v1437_v55 = vadd.f32 %v1429_v7, %v4803_v52 }
 0x3a6   :  { %v1272_v62 = vpop.f32.mrf.mxu0  ;;  %v1319_v12 = vpop.f32.mrf.mxu1 }
 0x3a7   :  { %v1430_v14 = vmul.f32 0.35355338, %v1319_v12  ;;  %v1453_v6 = vsel %vm542_vm3, %v1437_v55, -inf }
 0x3a8   :  { %v4178_v15 = vpop.f32.mrf.mxu1  ;;  %1454 = vmax.xlane.f32.xlu1 %v1453_v6  ;;  %v4173_v16 = vpop.f32.mrf.mxu0 }
 0x3a9   :  { %v1438_v19 = vadd.f32 %v1430_v14, %v4803_v52 }
 0x3aa   :  { %v1322_v22 = vpop.f32.mrf.mxu1  ;;  %v1369_v24 = vpop.f32.mrf.mxu0 }
 0x3ab   :  { %v1431_v25 = vmul.f32 0.35355338, %v1369_v24  ;;  %v1456_v31 = vsel %vm542_vm3, %v1438_v19, -inf }
 0x3ac   :  { %v4179_v32 = vpop.f32.mrf.mxu1  ;;  %1457 = vmax.xlane.f32.xlu0 %v1456_v31  ;;  %v4184_v33 = vpop.f32.mrf.mxu0 }
 0x3ad   :  { %v5026_v34 = vadd.f32 %v1431_v25, %v4803_v52 }
 0x3ae   :  { %v1419_v35 = vpop.f32.mrf.mxu1  ;;  %v1372_v36 = vpop.f32.mrf.mxu0 }
 0x3af   :  { %v1432_v38 = vmul.f32 0.35355338, %v1419_v35  ;;  %v1459_v40 = vsel %vm542_vm3, %v5026_v34, -inf }
 0x3b0   :  { %1460 = vmax.xlane.f32.xlu1 %v1459_v40  ;;  %v4185_v39 = vpop.f32.mrf.mxu0  ;;  %v4190_v41 = vpop.f32.mrf.mxu1 }
 0x3b1   :  { %v1440_v42 = vadd.f32 %v1432_v38, %v4803_v52 }
 0x3b2   :  { %v1422_v43 = vpop.f32.mrf.mxu1 }
 0x3b3   :  { %v1462_v44 = vsel %vm542_vm3, %v1440_v42, -inf }
 0x3b4   :  { %1463 = vmax.xlane.f32.xlu0 %v1462_v44  ;;  %v4191_v46 = vpop.f32.mrf.mxu1 }
 0x3c1   :  { %1777 = vrot.lane.b32.xlu1 %v4731_v27, %s4645_s30 }
 0x3ca   :  { %1729 = vrot.lane.b32.xlu0 %v4729_v26, %s4645_s30 }
 0x421   :  { %v1443_v49 = vpop.xlane.xlu0 %1442 }
 0x422   :  { %v1465_v50 = vsub.f32 %v5008_v37, %v1443_v49 }
 0x424   :  { %v1473_v51 = vmul.f32 1.442695, %v1465_v50 }
 0x425   :  { %v1446_v52 = vpop.xlane.xlu1 %1445 }
 0x426   :  { %4541 = vpow2.f32 %v1473_v51  ;;  %v1466_v58 = vsub.f32 %v5013_v45, %v1446_v52 }
 0x428   :  { %v1475_v59 = vmul.f32 1.442695, %v1466_v58 }
 0x429   :  { %v1449_v61 = vpop.xlane.xlu0 %1448 }
 0x42a   :  { %4543 = vpow2.f32 %v1475_v59  ;;  %v1467_v54 = vsub.f32 %v1435_v53, %v1449_v61  ;;  %v1639_v61 = vsel %vm645_vm2, %v5036_v47, 0 }
 0x42c   :  { %v1477_v63 = vmul.f32 1.442695, %v1467_v54 }
 0x42d   :  { %v1452_v1 = vpop.xlane.xlu0 %1451 }
 0x42e   :  { %4545 = vpow2.f32 %v1477_v63  ;;  %v1468_v56 = vsub.f32 %v1436_v2, %v1452_v1 }
 0x430   :  { %v1479_v5 = vmul.f32 1.442695, %v1468_v56 }
 0x431   :  { %v1455_v7 = vpop.xlane.xlu1 %1454 }
 0x432   :  { %4547 = vpow2.f32 %v1479_v5  ;;  %v1469_v8 = vsub.f32 %v1437_v55, %v1455_v7  ;;  %v1687_v5 = vsel %vm645_vm2, %v5038_v48, 0 }
 0x433   :  { %v5042_v9 = vpop.eup %4541 }
 0x434   :  { %v1481_v37 = vmul.f32 1.442695, %v1469_v8  ;;  %v1489_v10 = vsel %vm542_vm3, %v5042_v9, 0.0 }
 0x435   :  { %1490 = vadd.xlane.f32.xlu1 %v1489_v10  ;;  %v1458_v45 = vpop.xlane.xlu0 %1457 }
 0x436   :  { %4549 = vpow2.f32 %v1481_v37  ;;  %v1470_v62 = vsub.f32 %v1438_v19, %v1458_v45 }
 0x437   :  { %v5046_v12 = vpop.eup %4543 }
 0x438   :  { %v1483_v53 = vmul.f32 1.442695, %v1470_v62  ;;  %v1492_v2 = vsel %vm542_vm3, %v5046_v12, 0.0 }
 0x439   :  { %1493 = vadd.xlane.f32.xlu0 %v1492_v2  ;;  %v1461_v25 = vpop.xlane.xlu1 %1460 }
 0x43a   :  { %4551 = vpow2.f32 %v1483_v53  ;;  %v1471_v31 = vsub.f32 %v5026_v34, %v1461_v25 }
 0x43b   :  { %v5050_v14 = vpop.eup %4545 }
 0x43c   :  { %v1495_v55 = vsel %vm542_vm3, %v5050_v14, 0.0  ;;  %v1485_v33 = vmul.f32 1.442695, %v1471_v31 }
 0x43d   :  { %1496 = vadd.xlane.f32.xlu1 %v1495_v55  ;;  %v1464_v32 = vpop.xlane.xlu0 %1463  ;;  %v1778_v34 = vpop.permute.xlu1 %1777 }
 0x43e   :  { %v1472_v35 = vsub.f32 %v1440_v42, %v1464_v32  ;;  %4553 = vpow2.f32 %v1485_v33  ;;  %v1783_v45 = vsel %vm645_vm2, %v1778_v34, 0 }
 0x43f   :  { %v5054_v6 = vpop.eup %4547 }
 0x440   :  { %v1498_v15 = vsel %vm542_vm3, %v5054_v6, 0.0  ;;  %v1487_v36 = vmul.f32 1.442695, %v1472_v35 }
 0x441   :  { %1499 = vadd.xlane.f32.xlu0 %v1498_v15  ;;  %v1730_v42 = vpop.permute.xlu0 %1729 }
 0x442   :  { %4555 = vpow2.f32 %v1487_v36 }
 0x443   :  { %v5058_v16 = vpop.eup %4549 }
 0x444   :  { %v1501_v19 = vsel %vm542_vm3, %v5058_v16, 0.0 }
 0x445   :  { %1502 = vadd.xlane.f32.xlu1 %v1501_v19 }
 0x447   :  { %v5062_v22 = vpop.eup %4551 }
 0x448   :  { %v1504_v24 = vsel %vm542_vm3, %v5062_v22, 0.0 }
 0x449   :  { %1505 = vadd.xlane.f32.xlu0 %v1504_v24 }
 0x44b   :  { %v5071_v38 = vpop.eup %4553 }
 0x44c   :  { %v1507_v40 = vsel %vm542_vm3, %v5071_v38, 0.0 }
 0x44f   :  { %v5075_v39 = vpop.eup %4555 }
 0x450   :  { %v1510_v41 = vsel %vm542_vm3, %v5075_v39, 0.0 }
 0x456   :  { %1873 = vrot.lane.b32.xlu1 %v4738_v30, %s4645_s30 }
 0x45f   :  { %1825 = vrot.lane.b32.xlu0 %v4736_v29, %s4645_s30 }
 0x47a   :  { %1508 = vadd.xlane.f32.xlu1 %v1507_v40 }
 0x47e   :  { %1511 = vadd.xlane.f32.xlu0 %v1510_v41 }
 0x48b   :  { %1973 = vrot.lane.b32.xlu1 %v4710_v20, %s4646_s3 }
 0x48f   :  { %1971 = vrot.lane.b32.xlu1 %v4710_v20, %s4647_s4 }
 0x493   :  { %2073 = vrot.lane.b32.xlu1 %v4713_v21, %s4646_s3 }
 0x494   :  { %1923 = vrot.lane.b32.xlu0 %v4704_v17, %s4646_s3 }
 0x497   :  { %2071 = vrot.lane.b32.xlu1 %v4713_v21, %s4647_s4 }
 0x498   :  { %1921 = vrot.lane.b32.xlu0 %v4704_v17, %s4647_s4 }
 0x49b   :  { %2173 = vrot.lane.b32.xlu1 %v4731_v27, %s4646_s3 }
 0x49c   :  { %2023 = vrot.lane.b32.xlu0 %v4706_v18, %s4646_s3 }
 0x49f   :  { %2171 = vrot.lane.b32.xlu1 %v4731_v27, %s4647_s4 }
 0x4a0   :  { %2021 = vrot.lane.b32.xlu0 %v4706_v18, %s4647_s4 }
 0x4a3   :  { %2273 = vrot.lane.b32.xlu1 %v4738_v30, %s4646_s3 }
 0x4a4   :  { %2123 = vrot.lane.b32.xlu0 %v4729_v26, %s4646_s3 }
 0x4a7   :  { %2271 = vrot.lane.b32.xlu1 %v4738_v30, %s4647_s4 }
 0x4a8   :  { %2121 = vrot.lane.b32.xlu0 %v4729_v26, %s4647_s4 }
 0x4ab   :  { %2433 = vrot.lane.b32.xlu1 %v4704_v17, %s4648_s5 }
 0x4ac   :  { %2223 = vrot.lane.b32.xlu0 %v4736_v29, %s4646_s3 }
 0x4af   :  { %2529 = vrot.lane.b32.xlu1 %v4706_v18, %s4648_s5 }
 0x4b0   :  { %2221 = vrot.lane.b32.xlu0 %v4736_v29, %s4647_s4 }
 0x4b3   :  { %2577 = vrot.lane.b32.xlu1 %v4713_v21, %s4648_s5 }
 0x4b4   :  { %2481 = vrot.lane.b32.xlu0 %v4710_v20, %s4648_s5 }
 0x4be   :  { %v1491_v43 = vpop.xlane.xlu1 %1490 }
 0x4bf   :  { %4557 = vrcp.f32 %v1491_v43 }
 0x4c2   :  { %v1494_v44 = vpop.xlane.xlu0 %1493 }
 0x4c3   :  { %4559 = vrcp.f32 %v1494_v44 }
 0x4c6   :  { %v1497_v46 = vpop.xlane.xlu1 %1496 }
 0x4c7   :  { %4561 = vrcp.f32 %v1497_v46 }
 0x4ca   :  { %v1500_v49 = vpop.xlane.xlu0 %1499 }
 0x4cb   :  { %4563 = vrcp.f32 %v1500_v49 }
 0x4cc   :  { %v4558_v50 = vpop.eup %4557 }
 0x4cd   :  { %v1521_v51 = vmul.f32 %v4558_v50, %v5042_v9  ;;  %v1735_v9 = vsel %vm645_vm2, %v1730_v42, 0 }
 0x4ce   :  { %v1503_v52 = vpop.xlane.xlu1 %1502 }
 0x4cf   :  { %4565 = vrcp.f32 %v1503_v52  ;;  %v1529_v58 = vpack.c.bf16 %v1521_v51, %v1521_v51 }
 0x4d0   :  { %v4560_v59 = vpop.eup %4559 }
 0x4d1   :  { %4195 = vmatmul.mubr.msk.bf16.vlgmr.msra.gmra.mxu0 %vm641_vm4, %v1529_v58  ;;  %v1522_v54 = vmul.f32 %v4560_v59, %v5046_v12 }
 0x4d2   :  { %4205 = vmatpush3.bf16.msra.mxu0 %v1639_v61  ;;  %v1506_v63 = vpop.xlane.xlu0 %1505  ;;  %4206 = vmatprep.mubr.msk.bf16.mxu0 %vm4640_vm0, %v4639_v3 }
 0x4d3   :  { %4567 = vrcp.f32 %v1506_v63  ;;  %v1530_v1 = vpack.c.bf16 %v1522_v54, %v1522_v54  ;;  %4216 = vmatprep.subr.bf16.mxu0 %v4639_v3 }
 0x4d4   :  { %v4562_v56 = vpop.eup %4561 }
 0x4d5   :  { %4201 = vmatmul.mubr.msk.bf16.vlgmr.msra.gmra.mxu1 %vm641_vm4, %v1530_v1  ;;  %v1523_v47 = vmul.f32 %v4562_v56, %v5050_v14 }
 0x4d6   :  { %4211 = vmatpush3.bf16.msra.mxu1 %v1687_v5  ;;  %4212 = vmatprep.mubr.msk.bf16.mxu1 %vm4640_vm0, %v4639_v3  ;;  %v1826_v12 = vpop.permute.xlu0 %1825 }
 0x4d7   :  { %v1531_v7 = vpack.c.bf16 %v1523_v47, %v1523_v47  ;;  %4222 = vmatprep.subr.bf16.mxu1 %v4639_v3  ;;  %v1831_v14 = vsel %vm645_vm2, %v1826_v12, 0 }
 0x4d8   :  { %v4564_v8 = vpop.eup %4563 }
 0x4d9   :  { %4207 = vmatmul.mubr.msk.bf16.vlgmr.msra.gmra.mxu0 %vm641_vm4, %v1531_v7  ;;  %v1524_v37 = vmul.f32 %v4564_v8, %v5054_v6  ;;  %v1874_v6 = vpop.permute.xlu1 %1873 }
 0x4da   :  { %4217 = vmatpush3.bf16.msra.mxu0 %v1735_v9  ;;  %4218 = vmatprep.mubr.msk.bf16.mxu0 %vm4640_vm0, %v4639_v3 }
 0x4db   :  { %v1532_v48 = vpack.c.bf16 %v1524_v37, %v1524_v37  ;;  %4228 = vmatprep.subr.bf16.mxu0 %v4639_v3 }
 0x4dc   :  { %v4566_v10 = vpop.eup %4565 }
 0x4dd   :  { %4213 = vmatmul.mubr.msk.bf16.vlgmr.msra.gmra.mxu1 %vm641_vm4, %v1532_v48  ;;  %v1525_v62 = vmul.f32 %v4566_v10, %v5058_v16  ;;  %v1879_v16 = vsel %vm645_vm2, %v1874_v6, 0 }
 0x4de   :  { %4223 = vmatpush3.bf16.msra.mxu1 %v1783_v45  ;;  %4224 = vmatprep.mubr.msk.bf16.mxu1 %vm4640_vm0, %v4639_v3 }
 0x4df   :  { %v1533_v53 = vpack.c.bf16 %v1525_v62, %v1525_v62  ;;  %4234 = vmatprep.subr.bf16.mxu1 %v4639_v3 }
 0x4e0   :  { %v4568_v2 = vpop.eup %4567 }
 0x4e1   :  { %4219 = vmatmul.mubr.msk.bf16.vlgmr.msra.gmra.mxu0 %vm641_vm4, %v1533_v53  ;;  %v1526_v55 = vmul.f32 %v4568_v2, %v5062_v22 }
 0x4e2   :  { %4229 = vmatpush3.bf16.msra.mxu0 %v1831_v14  ;;  %4230 = vmatprep.mubr.msk.bf16.mxu0 %vm4640_vm0, %v4639_v3 }
 0x4e3   :  { %v1534_v15 = vpack.c.bf16 %v1526_v55, %v1526_v55  ;;  %4240 = vmatprep.subr.bf16.mxu0 %v4639_v3 }
 0x4e5   :  { %4225 = vmatmul.mubr.msk.bf16.vlgmr.msra.gmra.mxu1 %vm641_vm4, %v1534_v15 }
 0x4e6   :  { %4235 = vmatpush3.bf16.msra.mxu1 %v1879_v16  ;;  %4236 = vmatprep.mubr.msk.bf16.mxu1 %vm4640_vm0, %v4639_v3 }
 0x4e7   :  { %4246 = vmatprep.subr.bf16.mxu1 %v4639_v3 }
 0x503   :  { %v1509_v19 = vpop.xlane.xlu1 %1508 }
 0x504   :  { %4569 = vrcp.f32 %v1509_v19 }
 0x507   :  { %v1512_v22 = vpop.xlane.xlu0 %1511  ;;  %v1974_v24 = vpop.permute.xlu1 %1973 }
 0x508   :  { %4571 = vrcp.f32 %v1512_v22  ;;  %v1979_v46 = vsel %vm38_vm1, %v1974_v24, 0 }
 0x50b   :  { %v1924_v25 = vpop.permute.xlu0 %1923  ;;  %v1972_v32 = vpop.permute.xlu1 %1971 }
 0x50c   :  { %v1929_v40 = vsel %vm38_vm1, %v1924_v25, 0 }
 0x50f   :  { %v1922_v31 = vpop.permute.xlu0 %1921  ;;  %v2074_v42 = vpop.permute.xlu1 %2073 }
 0x510   :  { %v2079_v51 = vsel %vm38_vm1, %v2074_v42, 0 }
 0x511   :  { %v4570_v33 = vpop.eup %4569 }
 0x512   :  { %v1527_v35 = vmul.f32 %v4570_v33, %v5071_v38 }
 0x513   :  { %v2024_v36 = vpop.permute.xlu0 %2023  ;;  %v2072_v38 = vpop.permute.xlu1 %2071 }
 0x514   :  { %v1535_v41 = vpack.c.bf16 %v1527_v35, %v1527_v35  ;;  %v2029_v50 = vsel %vm38_vm1, %v2024_v36, 0 }
 0x515   :  { %v4572_v34 = vpop.eup %4571 }
 0x516   :  { %4231 = vmatmul.mubr.msk.bf16.vlgmr.msra.gmra.mxu0 %vm641_vm4, %v1535_v41  ;;  %v1528_v43 = vmul.f32 %v4572_v34, %v5075_v39 }
 0x517   :  { %4241 = vmatpush3.bf16.xpose.msra.mxu0 %v1929_v40  ;;  %4242 = vmatprep.mubr.msk.bf16.mxu0 %vm4640_vm0, %v4639_v3  ;;  %v2022_v44 = vpop.permute.xlu0 %2021  ;;  %v2174_v52 = vpop.permute.xlu1 %2173 }
 0x518   :  { %v1536_v49 = vpack.c.bf16 %v1528_v43, %v1528_v43  ;;  %4252 = vmatprep.subr.bf16.mxu0 %v4639_v3  ;;  %v2179_v54 = vsel %vm38_vm1, %v2174_v52, 0 }
 0x51a   :  { %4237 = vmatmul.mubr.msk.bf16.vlgmr.msra.gmra.mxu1 %vm641_vm4, %v1536_v49 }
 0x51b   :  { %4247 = vmatpush3.bf16.xpose.msra.mxu1 %v1979_v46  ;;  %4248 = vmatprep.mubr.msk.bf16.mxu1 %vm4640_vm0, %v4639_v3  ;;  %v2124_v39 = vpop.permute.xlu0 %2123  ;;  %v2172_v61 = vpop.permute.xlu1 %2171 }
 0x51c   :  { %4258 = vmatprep.subr.bf16.mxu1 %v4639_v3  ;;  %v2129_v59 = vsel %vm38_vm1, %v2124_v39, 0 }
 0x51e   :  { %4243 = vmatmul.mubr.msk.bf16.vlgmr.msra.gmra.mxu0 %vm38_vm1, %v1922_v31 }
 0x51f   :  { %4253 = vmatpush3.bf16.xpose.msra.mxu0 %v2029_v50  ;;  %4254 = vmatprep.mubr.msk.bf16.mxu0 %vm4640_vm0, %v4639_v3  ;;  %v2122_v58 = vpop.permute.xlu0 %2121  ;;  %v2274_v56 = vpop.permute.xlu1 %2273 }
 0x520   :  { %4264 = vmatprep.subr.bf16.mxu0 %v4639_v3  ;;  %v2279_v5 = vsel %vm38_vm1, %v2274_v56, 0  ;;  %v5220_v56 = vld [vmem:[%s5659_s1] sm:$0x3]  ;;  %s4649_s1 = smov 72  }
 0x522   :  { %4249 = vmatmul.mubr.msk.bf16.vlgmr.msra.gmra.mxu1 %vm38_vm1, %v1972_v32 }
 0x523   :  { %4259 = vmatpush3.bf16.xpose.msra.mxu1 %v2079_v51  ;;  %4260 = vmatprep.mubr.msk.bf16.mxu1 %vm4640_vm0, %v4639_v3  ;;  %v2224_v63 = vpop.permute.xlu0 %2223  ;;  %v2272_v7 = vpop.permute.xlu1 %2271 }
 0x524   :  { %4270 = vmatprep.subr.bf16.mxu1 %v4639_v3  ;;  %v2229_v1 = vsel %vm38_vm1, %v2224_v63, 0 }
 0x526   :  { %4255 = vmatmul.mubr.msk.bf16.vlgmr.msra.gmra.mxu0 %vm38_vm1, %v2022_v44 }
 0x527   :  { %4265 = vmatpush3.bf16.xpose.msra.mxu0 %v2129_v59  ;;  %4266 = vmatprep.mubr.msk.bf16.mxu0 %vm4640_vm0, %v4639_v3  ;;  %v2222_v47 = vpop.permute.xlu0 %2221  ;;  %v2434_v16 = vpop.permute.xlu1 %2433 }
 0x528   :  { %4276 = vmatprep.subr.bf16.mxu0 %v4639_v3  ;;  %v2439_v24 = vsel %vm645_vm2, %v2434_v16, 0 }
 0x52a   :  { %4261 = vmatmul.mubr.msk.bf16.vlgmr.msra.gmra.mxu1 %vm38_vm1, %v2072_v38 }
 0x52b   :  { %4271 = vmatpush3.bf16.xpose.msra.mxu1 %v2179_v54  ;;  %4272 = vmatprep.mubr.msk.bf16.mxu1 %vm4640_vm0, %v4639_v3  ;;  %v2482_v25 = vpop.permute.xlu0 %2481 }
 0x52c   :  { %4282 = vmatprep.subr.bf16.mxu1 %v4639_v3  ;;  %v2487_v33 = vsel %vm645_vm2, %v2482_v25, 0 }
 0x52e   :  { %4267 = vmatmul.mubr.msk.bf16.vlgmr.msra.gmra.mxu0 %vm38_vm1, %v2122_v58 }
 0x52f   :  { %4277 = vmatpush3.bf16.xpose.msra.mxu0 %v2229_v1  ;;  %4278 = vmatprep.mubr.msk.bf16.mxu0 %vm4640_vm0, %v4639_v3 }
 0x530   :  { %4288 = vmatprep.subr.bf16.mxu0 %v4639_v3 }
 0x532   :  { %4273 = vmatmul.mubr.msk.bf16.vlgmr.msra.gmra.mxu1 %vm38_vm1, %v2172_v61 }
 0x533   :  { %4283 = vmatpush3.bf16.xpose.msra.mxu1 %v2279_v5  ;;  %4284 = vmatprep.mubr.msk.bf16.mxu1 %vm4640_vm0, %v4639_v3 }
 0x534   :  { %4294 = vmatprep.subr.bf16.mxu1 %v4639_v3 }
 0x536   :  { %4279 = vmatmul.mubr.msk.bf16.vlgmr.msra.gmra.mxu0 %vm38_vm1, %v2222_v47 }
 0x537   :  { %4290 = vmatprep.mubr.msk.bf16.mxu0 %vm4640_vm0, %v4639_v3  ;;  %4289 = vmatpush3.bf16.msra.mxu0 %v2439_v24 }
 0x538   :  { %4300 = vmatprep.subr.bf16.mxu0 %v4639_v3 }
 0x53a   :  { %4285 = vmatmul.mubr.msk.bf16.vlgmr.msra.gmra.mxu1 %vm38_vm1, %v2272_v7 }
 0x53b   :  { %4296 = vmatprep.mubr.msk.bf16.mxu1 %vm4640_vm0, %v4639_v3  ;;  %4295 = vmatpush3.bf16.msra.mxu1 %v2487_v33 }
 0x53c   :  { %4306 = vmatprep.subr.bf16.mxu1 %v4639_v3 }
 0x591   :  { %v5189_v8 = vpop.f32.mrf.mxu0 }
 0x593   :  { %v4196_v9 = vpop.f32.mrf.mxu0 }
 0x595   :  { %v1582_v37 = vpop.f32.mrf.mxu0  ;;  %v5191_v48 = vpop.f32.mrf.mxu1 }
 0x596   :  { %v4449_v10 = vpack.i.bf16 %v5191_v48, %v5189_v8 }
 0x597   :  { %v4197_v45 = vpop.f32.mrf.mxu0  ;;  %v4202_v62 = vpop.f32.mrf.mxu1 }
 0x599   :  { %v1630_v12 = vpop.f32.mrf.mxu1  ;;  %v5195_v53 = vpop.f32.mrf.mxu0 }
 0x59b   :  { %v4203_v2 = vpop.f32.mrf.mxu1  ;;  %v4208_v14 = vpop.f32.mrf.mxu0 }
 0x59d   :  { %v1678_v55 = vpop.f32.mrf.mxu0  ;;  %v5197_v6 = vpop.f32.mrf.mxu1 }
 0x59e   :  { %v4454_v15 = vpack.i.bf16 %v5197_v6, %v5195_v53 }
 0x59f   :  { %v4209_v19 = vpop.f32.mrf.mxu0  ;;  %v4214_v22 = vpop.f32.mrf.mxu1 }
 0x5a1   :  { %v1726_v31 = vpop.f32.mrf.mxu1  ;;  %v5202_v32 = vpop.f32.mrf.mxu0 }
 0x5a3   :  { %v4215_v35 = vpop.f32.mrf.mxu1  ;;  %v4220_v36 = vpop.f32.mrf.mxu0 }
 0x5a5   :  { %v1774_v40 = vpop.f32.mrf.mxu0  ;;  %v5207_v41 = vpop.f32.mrf.mxu1 }
 0x5a6   :  { %v4459_v34 = vpack.i.bf16 %v5207_v41, %v5202_v32 }
 0x5a7   :  { %v4221_v42 = vpop.f32.mrf.mxu0  ;;  %v4226_v43 = vpop.f32.mrf.mxu1 }
 0x5a9   :  { %v1822_v44 = vpop.f32.mrf.mxu1 }
 0x5ab   :  { %v4227_v46 = vpop.f32.mrf.mxu1 }
 0x5d6   :  { %v5211_v49 = vpop.f32.mrf.mxu0 }
 0x5d8   :  { %v4232_v38 = vpop.f32.mrf.mxu0 }
 0x5da   :  { %v1870_v50 = vpop.f32.mrf.mxu0  ;;  %v5213_v39 = vpop.f32.mrf.mxu1 }
 0x5db   :  { %v4464_v51 = vpack.i.bf16 %v5213_v39, %v5211_v49 }
 0x5dc   :  { %v4233_v52 = vpop.f32.mrf.mxu0  ;;  %v4238_v58 = vpop.f32.mrf.mxu1 }
 0x5de   :  { %v1918_v59 = vpop.f32.mrf.mxu1  ;;  %v1965_v61 = vpop.f32.mrf.mxu0 }
 0x5df   :  { %v2321_v54 = vmul.f32 0.35355338, %v1965_v61 }
 0x5e0   :  { %v4239_v63 = vpop.f32.mrf.mxu1  ;;  %v4244_v1 = vpop.f32.mrf.mxu0 }
 0x5e1   :  { %v5223_v5 = vadd.f32 %v5220_v56, %v2321_v54 }
 0x5e2   :  { %v1968_v47 = vpop.f32.mrf.mxu0  ;;  %v2015_v7 = vpop.f32.mrf.mxu1 }
 0x5e3   :  { %v2322_v9 = vmul.f32 0.35355338, %v2015_v7  ;;  %v2337_v37 = vsel %vm542_vm3, %v5223_v5, -inf }
 0x5e4   :  { %v4250_v45 = vpop.f32.mrf.mxu1  ;;  %2338 = vmax.xlane.f32.xlu0 %v2337_v37  ;;  %v4245_v62 = vpop.f32.mrf.mxu0 }
 0x5e5   :  { %v5228_v12 = vadd.f32 %v5220_v56, %v2322_v9 }
 0x5e6   :  { %v2018_v2 = vpop.f32.mrf.mxu1  ;;  %v2065_v14 = vpop.f32.mrf.mxu0 }
 0x5e7   :  { %v2323_v55 = vmul.f32 0.35355338, %v2065_v14  ;;  %v2340_v16 = vsel %vm542_vm3, %v5228_v12, -inf }
 0x5e8   :  { %2341 = vmax.xlane.f32.xlu1 %v2340_v16  ;;  %v4251_v19 = vpop.f32.mrf.mxu1  ;;  %v4256_v22 = vpop.f32.mrf.mxu0 }
 0x5e9   :  { %v2331_v24 = vadd.f32 %v5220_v56, %v2323_v55 }
 0x5ea   :  { %v2068_v25 = vpop.f32.mrf.mxu0  ;;  %v2115_v31 = vpop.f32.mrf.mxu1 }
 0x5eb   :  { %v2324_v33 = vmul.f32 0.35355338, %v2115_v31  ;;  %v2343_v35 = vsel %vm542_vm3, %v2331_v24, -inf }
 0x5ec   :  { %v4262_v36 = vpop.f32.mrf.mxu1  ;;  %2344 = vmax.xlane.f32.xlu0 %v2343_v35  ;;  %v4257_v40 = vpop.f32.mrf.mxu0 }
 0x5ed   :  { %v2332_v42 = vadd.f32 %v5220_v56, %v2324_v33 }
 0x5ee   :  { %v2118_v43 = vpop.f32.mrf.mxu1  ;;  %v2165_v44 = vpop.f32.mrf.mxu0 }
 0x5ef   :  { %v2325_v46 = vmul.f32 0.35355338, %v2165_v44  ;;  %v2346_v38 = vsel %vm542_vm3, %v2332_v42, -inf  ;;  %v5251_v44 = vpop.permute.xlu1 %2529 }
 0x5f0   :  { %v4263_v50 = vpop.f32.mrf.mxu1  ;;  %2347 = vmax.xlane.f32.xlu0 %v2346_v38  ;;  %v4268_v52 = vpop.f32.mrf.mxu0 }
 0x5f1   :  { %v2333_v58 = vadd.f32 %v5220_v56, %v2325_v46 }
 0x5f2   :  { %v2168_v59 = vpop.f32.mrf.mxu0  ;;  %v2215_v61 = vpop.f32.mrf.mxu1 }
 0x5f3   :  { %v2326_v54 = vmul.f32 0.35355338, %v2215_v61  ;;  %v2349_v63 = vsel %vm542_vm3, %v2333_v58, -inf  ;;  %v5253_v46 = vpop.permute.xlu1 %2577 }
 0x5f4   :  { %v4274_v1 = vpop.f32.mrf.mxu1  ;;  %2350 = vmax.xlane.f32.xlu1 %v2349_v63  ;;  %v4269_v47 = vpop.f32.mrf.mxu0 }
 0x5f5   :  { %v2334_v7 = vadd.f32 %v5220_v56, %v2326_v54 }
 0x5f6   :  { %v2218_v9 = vpop.f32.mrf.mxu1  ;;  %v2265_v37 = vpop.f32.mrf.mxu0 }
 0x5f7   :  { %v2327_v45 = vmul.f32 0.35355338, %v2265_v37  ;;  %v2352_v62 = vsel %vm542_vm3, %v2334_v7, -inf }
 0x5f8   :  { %v4275_v2 = vpop.f32.mrf.mxu1  ;;  %2353 = vmax.xlane.f32.xlu0 %v2352_v62  ;;  %v4280_v14 = vpop.f32.mrf.mxu0 }
 0x5f9   :  { %v5241_v55 = vadd.f32 %v5220_v56, %v2327_v45 }
 0x5fa   :  { %v2315_v16 = vpop.f32.mrf.mxu1  ;;  %v2268_v19 = vpop.f32.mrf.mxu0 }
 0x5fb   :  { %v2328_v22 = vmul.f32 0.35355338, %v2315_v16  ;;  %v2355_v25 = vsel %vm542_vm3, %v5241_v55, -inf }
 0x5fc   :  { %2356 = vmax.xlane.f32.xlu1 %v2355_v25  ;;  %v4281_v31 = vpop.f32.mrf.mxu0  ;;  %v4286_v33 = vpop.f32.mrf.mxu1 }
 0x5fd   :  { %v2336_v35 = vadd.f32 %v5220_v56, %v2328_v22 }
 0x5fe   :  { %v2318_v36 = vpop.f32.mrf.mxu1 }
 0x5ff   :  { %v2358_v40 = vsel %vm542_vm3, %v2336_v35, -inf }
 0x600   :  { %2359 = vmax.xlane.f32.xlu0 %v2358_v40  ;;  %v4287_v43 = vpop.f32.mrf.mxu1 }
 0x60d   :  { %2673 = vrot.lane.b32.xlu1 %v4731_v27, %s4648_s5 }
 0x616   :  { %2625 = vrot.lane.b32.xlu0 %v4729_v26, %s4648_s5 }
 0x66d   :  { %v2339_v38 = vpop.xlane.xlu0 %2338 }
 0x66e   :  { %v2361_v50 = vsub.f32 %v5223_v5, %v2339_v38 }
 0x670   :  { %v2369_v52 = vmul.f32 1.442695, %v2361_v50 }
 0x671   :  { %v2342_v59 = vpop.xlane.xlu1 %2341 }
 0x672   :  { %4573 = vpow2.f32 %v2369_v52  ;;  %v2362_v61 = vsub.f32 %v5228_v12, %v2342_v59 }
 0x674   :  { %v2371_v54 = vmul.f32 1.442695, %v2362_v61 }
 0x675   :  { %v2345_v63 = vpop.xlane.xlu0 %2344 }
 0x676   :  { %4575 = vpow2.f32 %v2371_v54  ;;  %v2363_v1 = vsub.f32 %v2331_v24, %v2345_v63 }
 0x678   :  { %v2373_v47 = vmul.f32 1.442695, %v2363_v1 }
 0x679   :  { %v2348_v9 = vpop.xlane.xlu0 %2347 }
 0x67a   :  { %4577 = vpow2.f32 %v2373_v47  ;;  %v2364_v37 = vsub.f32 %v2332_v42, %v2348_v9 }
 0x67c   :  { %v2375_v45 = vmul.f32 1.442695, %v2364_v37 }
 0x67d   :  { %v2351_v62 = vpop.xlane.xlu1 %2350 }
 0x67e   :  { %4579 = vpow2.f32 %v2375_v45  ;;  %v2365_v2 = vsub.f32 %v2333_v58, %v2351_v62 }
 0x67f   :  { %v5257_v14 = vpop.eup %4573 }
 0x680   :  { %v2377_v5 = vmul.f32 1.442695, %v2365_v2  ;;  %v2385_v16 = vsel %vm542_vm3, %v5257_v14, 0.0 }
 0x681   :  { %2386 = vadd.xlane.f32.xlu1 %v2385_v16  ;;  %v2354_v12 = vpop.xlane.xlu0 %2353 }
 0x682   :  { %4581 = vpow2.f32 %v2377_v5  ;;  %v2366_v19 = vsub.f32 %v2334_v7, %v2354_v12 }
 0x683   :  { %v5261_v22 = vpop.eup %4575 }
 0x684   :  { %v2379_v24 = vmul.f32 1.442695, %v2366_v19  ;;  %v2388_v42 = vsel %vm542_vm3, %v5261_v22, 0.0 }
 0x685   :  { %2389 = vadd.xlane.f32.xlu0 %v2388_v42  ;;  %v2357_v38 = vpop.xlane.xlu1 %2356  ;;  %v2535_v42 = vsel %vm645_vm2, %v5251_v44, 0 }
 0x686   :  { %4583 = vpow2.f32 %v2379_v24  ;;  %v2367_v50 = vsub.f32 %v5241_v55, %v2357_v38 }
 0x687   :  { %v5265_v25 = vpop.eup %4577 }
 0x688   :  { %v2391_v58 = vsel %vm542_vm3, %v5265_v25, 0.0  ;;  %v2381_v59 = vmul.f32 1.442695, %v2367_v50 }
 0x689   :  { %2392 = vadd.xlane.f32.xlu1 %v2391_v58  ;;  %v2360_v52 = vpop.xlane.xlu0 %2359  ;;  %v2674_v55 = vpop.permute.xlu1 %2673 }
 0x68a   :  { %v2368_v61 = vsub.f32 %v2336_v35, %v2360_v52  ;;  %4585 = vpow2.f32 %v2381_v59  ;;  %v2679_v59 = vsel %vm645_vm2, %v2674_v55, 0 }
 0x68b   :  { %v5269_v31 = vpop.eup %4579 }
 0x68c   :  { %v2394_v33 = vsel %vm542_vm3, %v5269_v31, 0.0  ;;  %v2383_v54 = vmul.f32 1.442695, %v2368_v61 }
 0x68d   :  { %2395 = vadd.xlane.f32.xlu0 %v2394_v33  ;;  %v2626_v35 = vpop.permute.xlu0 %2625 }
 0x68e   :  { %4587 = vpow2.f32 %v2383_v54  ;;  %v2631_v50 = vsel %vm645_vm2, %v2626_v35, 0 }
 0x68f   :  { %v5273_v7 = vpop.eup %4581 }
 0x690   :  { %v2397_v36 = vsel %vm542_vm3, %v5273_v7, 0.0 }
 0x691   :  { %2398 = vadd.xlane.f32.xlu1 %v2397_v36 }
 0x693   :  { %v5277_v40 = vpop.eup %4583 }
 0x694   :  { %v2400_v43 = vsel %vm542_vm3, %v5277_v40, 0.0 }
 0x695   :  { %2401 = vadd.xlane.f32.xlu0 %v2400_v43  ;;  %v2583_v43 = vsel %vm645_vm2, %v5253_v46, 0 }
 0x697   :  { %v5286_v63 = vpop.eup %4585 }
 0x698   :  { %v2403_v1 = vsel %vm542_vm3, %v5286_v63, 0.0 }
 0x69b   :  { %v5290_v47 = vpop.eup %4587 }
 0x69c   :  { %v2406_v9 = vsel %vm542_vm3, %v5290_v47, 0.0 }
 0x6a2   :  { %2769 = vrot.lane.b32.xlu1 %v4738_v30, %s4648_s5 }
 0x6ab   :  { %2721 = vrot.lane.b32.xlu0 %v4736_v29, %s4648_s5 }
 0x6c6   :  { %2404 = vadd.xlane.f32.xlu1 %v2403_v1 }
 0x6ca   :  { %2407 = vadd.xlane.f32.xlu0 %v2406_v9 }
 0x6d7   :  { %2869 = vrot.lane.b32.xlu1 %v4710_v20, %s4649_s1 }
 0x6db   :  { %2867 = vrot.lane.b32.xlu1 %v4710_v20, %s4650_s8 }
 0x6df   :  { %2969 = vrot.lane.b32.xlu1 %v4713_v21, %s4649_s1 }
 0x6e0   :  { %2819 = vrot.lane.b32.xlu0 %v4704_v17, %s4649_s1 }
 0x6e3   :  { %2967 = vrot.lane.b32.xlu1 %v4713_v21, %s4650_s8 }
 0x6e4   :  { %2817 = vrot.lane.b32.xlu0 %v4704_v17, %s4650_s8 }
 0x6e7   :  { %3069 = vrot.lane.b32.xlu1 %v4731_v27, %s4649_s1 }
 0x6e8   :  { %2919 = vrot.lane.b32.xlu0 %v4706_v18, %s4649_s1 }
 0x6eb   :  { %3067 = vrot.lane.b32.xlu1 %v4731_v27, %s4650_s8 }
 0x6ec   :  { %2917 = vrot.lane.b32.xlu0 %v4706_v18, %s4650_s8 }
 0x6ef   :  { %3169 = vrot.lane.b32.xlu1 %v4738_v30, %s4649_s1 }
 0x6f0   :  { %3019 = vrot.lane.b32.xlu0 %v4729_v26, %s4649_s1 }
 0x6f3   :  { %3167 = vrot.lane.b32.xlu1 %v4738_v30, %s4650_s8 }
 0x6f4   :  { %3017 = vrot.lane.b32.xlu0 %v4729_v26, %s4650_s8 }
 0x6f7   :  { %3329 = vrot.lane.b32.xlu1 %v4704_v17, %s4651_s9 }
 0x6f8   :  { %3119 = vrot.lane.b32.xlu0 %v4736_v29, %s4649_s1 }
 0x6fc   :  { %3117 = vrot.lane.b32.xlu0 %v4736_v29, %s4650_s8 }
 0x70a   :  { %v2387_v37 = vpop.xlane.xlu1 %2386 }
 0x70b   :  { %4589 = vrcp.f32 %v2387_v37 }
 0x70e   :  { %v2390_v45 = vpop.xlane.xlu0 %2389 }
 0x70f   :  { %4591 = vrcp.f32 %v2390_v45 }
 0x712   :  { %v2393_v62 = vpop.xlane.xlu1 %2392 }
 0x713   :  { %4593 = vrcp.f32 %v2393_v62 }
 0x716   :  { %v2396_v2 = vpop.xlane.xlu0 %2395 }
 0x717   :  { %4595 = vrcp.f32 %v2396_v2 }
 0x718   :  { %v4590_v5 = vpop.eup %4589 }
 0x719   :  { %v2417_v16 = vmul.f32 %v4590_v5, %v5257_v14 }
 0x71a   :  { %v2399_v12 = vpop.xlane.xlu1 %2398 }
 0x71b   :  { %4597 = vrcp.f32 %v2399_v12  ;;  %v2425_v19 = vpack.c.bf16 %v2417_v16, %v2417_v16 }
 0x71c   :  { %v4592_v24 = vpop.eup %4591 }
 0x71d   :  { %4291 = vmatmul.mubr.msk.bf16.vlgmr.msra.gmra.mxu0 %vm641_vm4, %v2425_v19  ;;  %v2418_v58 = vmul.f32 %v4592_v24, %v5261_v22 }
 0x71e   :  { %4301 = vmatpush3.bf16.msra.mxu0 %v2535_v42  ;;  %v2402_v33 = vpop.xlane.xlu0 %2401  ;;  %4302 = vmatprep.mubr.msk.bf16.mxu0 %vm4640_vm0, %v4639_v3  ;;  %v2770_v55 = vpop.permute.xlu1 %2769 }
 0x71f   :  { %4599 = vrcp.f32 %v2402_v33  ;;  %v2426_v36 = vpack.c.bf16 %v2418_v58, %v2418_v58  ;;  %4312 = vmatprep.subr.bf16.mxu0 %v4639_v3  ;;  %v2775_v37 = vsel %vm645_vm2, %v2770_v55, 0 }
 0x720   :  { %v4594_v14 = vpop.eup %4593 }
 0x721   :  { %4297 = vmatmul.mubr.msk.bf16.vlgmr.msra.gmra.mxu1 %vm641_vm4, %v2426_v36  ;;  %v2419_v44 = vmul.f32 %v4594_v14, %v5265_v25 }
 0x722   :  { %4307 = vmatpush3.bf16.msra.mxu1 %v2583_v43  ;;  %4308 = vmatprep.mubr.msk.bf16.mxu1 %vm4640_vm0, %v4639_v3  ;;  %v2722_v54 = vpop.permute.xlu0 %2721 }
 0x723   :  { %v2427_v22 = vpack.c.bf16 %v2419_v44, %v2419_v44  ;;  %4318 = vmatprep.subr.bf16.mxu1 %v4639_v3  ;;  %v2727_v9 = vsel %vm645_vm2, %v2722_v54, 0 }
 0x724   :  { %v4596_v38 = vpop.eup %4595 }
 0x725   :  { %4303 = vmatmul.mubr.msk.bf16.vlgmr.msra.gmra.mxu0 %vm641_vm4, %v2427_v22  ;;  %v2420_v52 = vmul.f32 %v4596_v38, %v5269_v31 }
 0x726   :  { %4313 = vmatpush3.bf16.msra.mxu0 %v2631_v50  ;;  %4314 = vmatprep.mubr.msk.bf16.mxu0 %vm4640_vm0, %v4639_v3 }
 0x727   :  { %v2428_v46 = vpack.c.bf16 %v2420_v52, %v2420_v52  ;;  %4324 = vmatprep.subr.bf16.mxu0 %v4639_v3 }
 0x728   :  { %v4598_v25 = vpop.eup %4597 }
 0x729   :  { %4309 = vmatmul.mubr.msk.bf16.vlgmr.msra.gmra.mxu1 %vm641_vm4, %v2428_v46  ;;  %v2421_v61 = vmul.f32 %v4598_v25, %v5273_v7 }
 0x72a   :  { %4319 = vmatpush3.bf16.msra.mxu1 %v2679_v59  ;;  %4320 = vmatprep.mubr.msk.bf16.mxu1 %vm4640_vm0, %v4639_v3 }
 0x72b   :  { %v2429_v31 = vpack.c.bf16 %v2421_v61, %v2421_v61  ;;  %4330 = vmatprep.subr.bf16.mxu1 %v4639_v3 }
 0x72c   :  { %v4600_v1 = vpop.eup %4599 }
 0x72d   :  { %4315 = vmatmul.mubr.msk.bf16.vlgmr.msra.gmra.mxu0 %vm641_vm4, %v2429_v31  ;;  %v2422_v35 = vmul.f32 %v4600_v1, %v5277_v40 }
 0x72e   :  { %4325 = vmatpush3.bf16.msra.mxu0 %v2727_v9  ;;  %4326 = vmatprep.mubr.msk.bf16.mxu0 %vm4640_vm0, %v4639_v3 }
 0x72f   :  { %v2430_v7 = vpack.c.bf16 %v2422_v35, %v2422_v35  ;;  %4336 = vmatprep.subr.bf16.mxu0 %v4639_v3 }
 0x731   :  { %4321 = vmatmul.mubr.msk.bf16.vlgmr.msra.gmra.mxu1 %vm641_vm4, %v2430_v7 }
 0x732   :  { %4331 = vmatpush3.bf16.msra.mxu1 %v2775_v37  ;;  %4332 = vmatprep.mubr.msk.bf16.mxu1 %vm4640_vm0, %v4639_v3 }
 0x733   :  { %4342 = vmatprep.subr.bf16.mxu1 %v4639_v3 }
 0x74f   :  { %v2405_v45 = vpop.xlane.xlu1 %2404 }
 0x750   :  { %4601 = vrcp.f32 %v2405_v45 }
 0x753   :  { %v2408_v40 = vpop.xlane.xlu0 %2407  ;;  %v2870_v62 = vpop.permute.xlu1 %2869 }
 0x754   :  { %4603 = vrcp.f32 %v2408_v40  ;;  %v2875_v44 = vsel %vm38_vm1, %v2870_v62, 0 }
 0x757   :  { %v2820_v2 = vpop.permute.xlu0 %2819  ;;  %v2868_v16 = vpop.permute.xlu1 %2867 }
 0x758   :  { %v2825_v42 = vsel %vm38_vm1, %v2820_v2, 0 }
 0x75b   :  { %v2818_v5 = vpop.permute.xlu0 %2817  ;;  %v2970_v36 = vpop.permute.xlu1 %2969 }
 0x75c   :  { %v2975_v50 = vsel %vm38_vm1, %v2970_v36, 0 }
 0x75d   :  { %v4602_v12 = vpop.eup %4601 }
 0x75e   :  { %v2423_v19 = vmul.f32 %v4602_v12, %v5286_v63 }
 0x75f   :  { %v2920_v24 = vpop.permute.xlu0 %2919  ;;  %v2968_v63 = vpop.permute.xlu1 %2967 }
 0x760   :  { %v2431_v58 = vpack.c.bf16 %v2423_v19, %v2423_v19  ;;  %v2925_v38 = vsel %vm38_vm1, %v2920_v24, 0 }
 0x761   :  { %v4604_v33 = vpop.eup %4603 }
 0x762   :  { %4327 = vmatmul.mubr.msk.bf16.vlgmr.msra.gmra.mxu0 %vm641_vm4, %v2431_v58  ;;  %v2424_v14 = vmul.f32 %v4604_v33, %v5290_v47 }
 0x763   :  { %4337 = vmatpush3.bf16.xpose.msra.mxu0 %v2825_v42  ;;  %4338 = vmatprep.mubr.msk.bf16.mxu0 %vm4640_vm0, %v4639_v3  ;;  %v2918_v43 = vpop.permute.xlu0 %2917  ;;  %v3070_v52 = vpop.permute.xlu1 %3069 }
 0x764   :  { %v2432_v22 = vpack.c.bf16 %v2424_v14, %v2424_v14  ;;  %4348 = vmatprep.subr.bf16.mxu0 %v4639_v3  ;;  %v3075_v61 = vsel %vm38_vm1, %v3070_v52, 0 }
 0x766   :  { %4333 = vmatmul.mubr.msk.bf16.vlgmr.msra.gmra.mxu1 %vm641_vm4, %v2432_v22 }
 0x767   :  { %4343 = vmatpush3.bf16.xpose.msra.mxu1 %v2875_v44  ;;  %4344 = vmatprep.mubr.msk.bf16.mxu1 %vm4640_vm0, %v4639_v3  ;;  %v3020_v47 = vpop.permute.xlu0 %3019  ;;  %v3068_v59 = vpop.permute.xlu1 %3067 }
 0x768   :  { %4354 = vmatprep.subr.bf16.mxu1 %v4639_v3  ;;  %v3025_v25 = vsel %vm38_vm1, %v3020_v47, 0 }
 0x76a   :  { %4339 = vmatmul.mubr.msk.bf16.vlgmr.msra.gmra.mxu0 %vm38_vm1, %v2818_v5 }
 0x76b   :  { %4349 = vmatpush3.bf16.xpose.msra.mxu0 %v2925_v38  ;;  %4350 = vmatprep.mubr.msk.bf16.mxu0 %vm4640_vm0, %v4639_v3  ;;  %v3018_v46 = vpop.permute.xlu0 %3017  ;;  %v3170_v1 = vpop.permute.xlu1 %3169 }
 0x76c   :  { %4360 = vmatprep.subr.bf16.mxu0 %v4639_v3  ;;  %v3175_v9 = vsel %vm38_vm1, %v3170_v1, 0 }
 0x76e   :  { %4345 = vmatmul.mubr.msk.bf16.vlgmr.msra.gmra.mxu1 %vm38_vm1, %v2868_v16 }
 0x76f   :  { %4355 = vmatpush3.bf16.xpose.msra.mxu1 %v2975_v50  ;;  %4356 = vmatprep.mubr.msk.bf16.mxu1 %vm4640_vm0, %v4639_v3  ;;  %v3120_v54 = vpop.permute.xlu0 %3119  ;;  %v3168_v17 = vpop.permute.xlu1 %3167 }
 0x770   :  { %4366 = vmatprep.subr.bf16.mxu1 %v4639_v3  ;;  %v3125_v31 = vsel %vm38_vm1, %v3120_v54, 0 }
 0x772   :  { %4351 = vmatmul.mubr.msk.bf16.vlgmr.msra.gmra.mxu0 %vm38_vm1, %v2918_v43 }
 0x773   :  { %4361 = vmatpush3.bf16.xpose.msra.mxu0 %v3025_v25  ;;  %4362 = vmatprep.mubr.msk.bf16.mxu0 %vm4640_vm0, %v4639_v3  ;;  %v3118_v35 = vpop.permute.xlu0 %3117  ;;  %v3330_v33 = vpop.permute.xlu1 %3329 }
 0x774   :  { %4372 = vmatprep.subr.bf16.mxu0 %v4639_v3  ;;  %v3335_v43 = vsel %vm645_vm2, %v3330_v33, 0 }
 0x776   :  { %4357 = vmatmul.mubr.msk.bf16.vlgmr.msra.gmra.mxu1 %vm38_vm1, %v2968_v63 }
 0x777   :  { %4367 = vmatpush3.bf16.xpose.msra.mxu1 %v3075_v61  ;;  %4368 = vmatprep.mubr.msk.bf16.mxu1 %vm4640_vm0, %v4639_v3 }
 0x778   :  { %4378 = vmatprep.subr.bf16.mxu1 %v4639_v3 }
 0x77a   :  { %4363 = vmatmul.mubr.msk.bf16.vlgmr.msra.gmra.mxu0 %vm38_vm1, %v3018_v46 }
 0x77b   :  { %4373 = vmatpush3.bf16.xpose.msra.mxu0 %v3125_v31  ;;  %4374 = vmatprep.mubr.msk.bf16.mxu0 %vm4640_vm0, %v4639_v3 }
 0x77c   :  { %4384 = vmatprep.subr.bf16.mxu0 %v4639_v3 }
 0x77e   :  { %4369 = vmatmul.mubr.msk.bf16.vlgmr.msra.gmra.mxu1 %vm38_vm1, %v3068_v59 }
 0x77f   :  { %4379 = vmatpush3.bf16.xpose.msra.mxu1 %v3175_v9  ;;  %4380 = vmatprep.mubr.msk.bf16.mxu1 %vm4640_vm0, %v4639_v3 }
 0x780   :  { %4390 = vmatprep.subr.bf16.mxu1 %v4639_v3 }
 0x782   :  { %4375 = vmatmul.mubr.msk.bf16.vlgmr.msra.gmra.mxu0 %vm38_vm1, %v3118_v35 }
 0x783   :  { %4386 = vmatprep.mubr.msk.bf16.mxu0 %vm4640_vm0, %v4639_v3  ;;  %4385 = vmatpush3.bf16.msra.mxu0 %v3335_v43 }
 0x784   :  { %4396 = vmatprep.subr.bf16.mxu0 %v4639_v3 }
 0x786   :  { %4381 = vmatmul.mubr.msk.bf16.vlgmr.msra.gmra.mxu1 %vm38_vm1, %v3168_v17 }
 0x787   :  { %4392 = vmatprep.mubr.msk.bf16.mxu1 %vm4640_vm0, %v4639_v3 }
 0x7dd   :  { %v5398_v55 = vpop.f32.mrf.mxu0 }
 0x7df   :  { %v4292_v7 = vpop.f32.mrf.mxu0 }
 0x7e1   :  { %v2478_v37 = vpop.f32.mrf.mxu0  ;;  %v5400_v45 = vpop.f32.mrf.mxu1 }
 0x7e2   :  { %v4469_v40 = vpack.i.bf16 %v5400_v45, %v5398_v55 }
 0x7e3   :  { %v4293_v62 = vpop.f32.mrf.mxu0  ;;  %v4298_v2 = vpop.f32.mrf.mxu1 }
 0x7e5   :  { %v2526_v5 = vpop.f32.mrf.mxu1  ;;  %v5404_v16 = vpop.f32.mrf.mxu0 }
 0x7e7   :  { %v4299_v12 = vpop.f32.mrf.mxu1  ;;  %v4304_v19 = vpop.f32.mrf.mxu0 }
 0x7e9   :  { %v2574_v24 = vpop.f32.mrf.mxu0  ;;  %v5406_v42 = vpop.f32.mrf.mxu1 }
 0x7ea   :  { %v4474_v58 = vpack.i.bf16 %v5406_v42, %v5404_v16 }
 0x7eb   :  { %v4305_v36 = vpop.f32.mrf.mxu0  ;;  %v4310_v14 = vpop.f32.mrf.mxu1 }
 0x7ed   :  { %v2622_v44 = vpop.f32.mrf.mxu1  ;;  %v5411_v22 = vpop.f32.mrf.mxu0 }
 0x7ef   :  { %v4311_v63 = vpop.f32.mrf.mxu1  ;;  %v4316_v38 = vpop.f32.mrf.mxu0 }
 0x7f1   :  { %v2670_v47 = vpop.f32.mrf.mxu0  ;;  %v5414_v50 = vpop.f32.mrf.mxu1 }
 0x7f2   :  { %v4479_v52 = vpack.i.bf16 %v5414_v50, %v5411_v22 }
 0x7f3   :  { %v4317_v46 = vpop.f32.mrf.mxu0  ;;  %v4322_v25 = vpop.f32.mrf.mxu1 }
 0x7f5   :  { %v2718_v59 = vpop.f32.mrf.mxu1 }
 0x7f7   :  { %v4323_v61 = vpop.f32.mrf.mxu1 }
 0x822   :  { %v5418_v54 = vpop.f32.mrf.mxu0 }
 0x824   :  { %v4328_v31 = vpop.f32.mrf.mxu0 }
 0x826   :  { %v2766_v1 = vpop.f32.mrf.mxu0  ;;  %v5420_v9 = vpop.f32.mrf.mxu1 }
 0x827   :  { %v4484_v35 = vpack.i.bf16 %v5420_v9, %v5418_v54 }
 0x828   :  { %v4329_v17 = vpop.f32.mrf.mxu0  ;;  %v4334_v7 = vpop.f32.mrf.mxu1 }
 0x82a   :  { %v2814_v37 = vpop.f32.mrf.mxu1  ;;  %v2861_v62 = vpop.f32.mrf.mxu0 }
 0x82b   :  { %v3217_v2 = vmul.f32 0.35355338, %v2861_v62 }
 0x82c   :  { %v4335_v5 = vpop.f32.mrf.mxu1  ;;  %v4340_v12 = vpop.f32.mrf.mxu0 }
 0x82d   :  { %v5425_v19 = vadd.f32 %v5220_v56, %v3217_v2 }
 0x82e   :  { %v2864_v24 = vpop.f32.mrf.mxu0  ;;  %v2911_v33 = vpop.f32.mrf.mxu1 }
 0x82f   :  { %v3218_v36 = vmul.f32 0.35355338, %v2911_v33  ;;  %v3233_v14 = vsel %vm542_vm3, %v5425_v19, -inf }
 0x830   :  { %v4346_v43 = vpop.f32.mrf.mxu1  ;;  %3234 = vmax.xlane.f32.xlu0 %v3233_v14  ;;  %v4341_v44 = vpop.f32.mrf.mxu0 }
 0x831   :  { %v3226_v63 = vadd.f32 %v5220_v56, %v3218_v36 }
 0x832   :  { %v2914_v38 = vpop.f32.mrf.mxu1  ;;  %v2961_v47 = vpop.f32.mrf.mxu0 }
 0x833   :  { %v3219_v46 = vmul.f32 0.35355338, %v2961_v47  ;;  %v3236_v25 = vsel %vm542_vm3, %v3226_v63, -inf }
 0x834   :  { %3237 = vmax.xlane.f32.xlu1 %v3236_v25  ;;  %v4347_v59 = vpop.f32.mrf.mxu1  ;;  %v4352_v61 = vpop.f32.mrf.mxu0 }
 0x835   :  { %v3227_v31 = vadd.f32 %v5220_v56, %v3219_v46 }
 0x836   :  { %v2964_v1 = vpop.f32.mrf.mxu0  ;;  %v3011_v17 = vpop.f32.mrf.mxu1 }
 0x837   :  { %v3220_v7 = vmul.f32 0.35355338, %v3011_v17  ;;  %v3239_v37 = vsel %vm542_vm3, %v3227_v31, -inf }
 0x838   :  { %v4358_v62 = vpop.f32.mrf.mxu1  ;;  %3240 = vmax.xlane.f32.xlu0 %v3239_v37  ;;  %v4353_v2 = vpop.f32.mrf.mxu0 }
 0x839   :  { %v3228_v5 = vadd.f32 %v5220_v56, %v3220_v7 }
 0x83a   :  { %v3014_v12 = vpop.f32.mrf.mxu1  ;;  %v3061_v24 = vpop.f32.mrf.mxu0 }
 0x83b   :  { %v3221_v33 = vmul.f32 0.35355338, %v3061_v24  ;;  %v3242_v36 = vsel %vm542_vm3, %v3228_v5, -inf }
 0x83c   :  { %v4359_v14 = vpop.f32.mrf.mxu1  ;;  %3243 = vmax.xlane.f32.xlu0 %v3242_v36  ;;  %v4364_v43 = vpop.f32.mrf.mxu0 }
 0x83d   :  { %v5436_v44 = vadd.f32 %v5220_v56, %v3221_v33 }
 0x83e   :  { %v3064_v38 = vpop.f32.mrf.mxu0  ;;  %v3111_v47 = vpop.f32.mrf.mxu1 }
 0x83f   :  { %v3222_v46 = vmul.f32 0.35355338, %v3111_v47  ;;  %v3245_v25 = vsel %vm542_vm3, %v5436_v44, -inf }
 0x840   :  { %v4370_v59 = vpop.f32.mrf.mxu1  ;;  %3246 = vmax.xlane.f32.xlu1 %v3245_v25  ;;  %v4365_v61 = vpop.f32.mrf.mxu0 }
 0x841   :  { %v5441_v1 = vadd.f32 %v5220_v56, %v3222_v46 }
 0x842   :  { %v3114_v17 = vpop.f32.mrf.mxu1  ;;  %v3161_v7 = vpop.f32.mrf.mxu0 }
 0x843   :  { %v3223_v37 = vmul.f32 0.35355338, %v3161_v7  ;;  %v3248_v62 = vsel %vm542_vm3, %v5441_v1, -inf }
 0x844   :  { %v4371_v2 = vpop.f32.mrf.mxu1  ;;  %3249 = vmax.xlane.f32.xlu0 %v3248_v62  ;;  %v4376_v12 = vpop.f32.mrf.mxu0 }
 0x845   :  { %v3231_v24 = vadd.f32 %v5220_v56, %v3223_v37 }
 0x846   :  { %v3211_v33 = vpop.f32.mrf.mxu1  ;;  %v3164_v36 = vpop.f32.mrf.mxu0 }
 0x847   :  { %v3224_v14 = vmul.f32 0.35355338, %v3211_v33  ;;  %v3251_v43 = vsel %vm542_vm3, %v3231_v24, -inf }
 0x848   :  { %3252 = vmax.xlane.f32.xlu1 %v3251_v43  ;;  %v4382_v38 = vpop.f32.mrf.mxu1  ;;  %v4377_v47 = vpop.f32.mrf.mxu0 }
 0x849   :  { %v3232_v46 = vadd.f32 %v5220_v56, %v3224_v14 }
 0x84a   :  { %v3214_v25 = vpop.f32.mrf.mxu1 }
 0x84b   :  { %v3254_v59 = vsel %vm542_vm3, %v3232_v46, -inf }
 0x84c   :  { %3255 = vmax.xlane.f32.xlu0 %v3254_v59  ;;  %v4383_v61 = vpop.f32.mrf.mxu1 }
 0x859   :  { %3425 = vrot.lane.b32.xlu1 %v4706_v18, %s4651_s9 }
 0x85d   :  { %3473 = vrot.lane.b32.xlu1 %v4713_v21, %s4651_s9 }
 0x862   :  { %3377 = vrot.lane.b32.xlu0 %v4710_v20, %s4651_s9 }
 0x8b9   :  { %v3235_v17 = vpop.xlane.xlu0 %3234 }
 0x8ba   :  { %v3257_v7 = vsub.f32 %v5425_v19, %v3235_v17 }
 0x8bc   :  { %v3265_v37 = vmul.f32 1.442695, %v3257_v7 }
 0x8bd   :  { %v3238_v62 = vpop.xlane.xlu1 %3237 }
 0x8be   :  { %4605 = vpow2.f32 %v3265_v37  ;;  %v3258_v56 = vsub.f32 %v3226_v63, %v3238_v62 }
 0x8c0   :  { %v3267_v2 = vmul.f32 1.442695, %v3258_v56 }
 0x8c1   :  { %v3241_v12 = vpop.xlane.xlu0 %3240 }
 0x8c2   :  { %4607 = vpow2.f32 %v3267_v2  ;;  %v3259_v33 = vsub.f32 %v3227_v31, %v3241_v12 }
 0x8c4   :  { %v3269_v36 = vmul.f32 1.442695, %v3259_v33 }
 0x8c5   :  { %v3244_v14 = vpop.xlane.xlu0 %3243 }
 0x8c6   :  { %4609 = vpow2.f32 %v3269_v36  ;;  %v3260_v18 = vsub.f32 %v3228_v5, %v3244_v14 }
 0x8c8   :  { %v3271_v43 = vmul.f32 1.442695, %v3260_v18 }
 0x8c9   :  { %v3247_v7 = vpop.xlane.xlu1 %3246 }
 0x8ca   :  { %4611 = vpow2.f32 %v3271_v43  ;;  %v3261_v37 = vsub.f32 %v5436_v44, %v3247_v7 }
 0x8cb   :  { %v5456_v21 = vpop.eup %4605 }
 0x8cc   :  { %v3281_v20 = vsel %vm542_vm3, %v5456_v21, 0.0  ;;  %v3273_v2 = vmul.f32 1.442695, %v3261_v37 }
 0x8cd   :  { %3282 = vadd.xlane.f32.xlu1 %v3281_v20  ;;  %v3250_v38 = vpop.xlane.xlu0 %3249 }
 0x8ce   :  { %v3262_v56 = vsub.f32 %v5441_v1, %v3250_v38  ;;  %4613 = vpow2.f32 %v3273_v2 }
 0x8cf   :  { %v5460_v19 = vpop.eup %4607 }
 0x8d0   :  { %v3284_v63 = vsel %vm542_vm3, %v5460_v19, 0.0  ;;  %v3275_v33 = vmul.f32 1.442695, %v3262_v56 }
 0x8d1   :  { %3285 = vadd.xlane.f32.xlu0 %v3284_v63  ;;  %v3253_v62 = vpop.xlane.xlu1 %3252 }
 0x8d2   :  { %v3263_v12 = vsub.f32 %v3231_v24, %v3253_v62  ;;  %4615 = vpow2.f32 %v3275_v33 }
 0x8d3   :  { %v5464_v31 = vpop.eup %4609 }
 0x8d4   :  { %v3287_v5 = vsel %vm542_vm3, %v5464_v31, 0.0  ;;  %v3277_v36 = vmul.f32 1.442695, %v3263_v12 }
 0x8d5   :  { %3288 = vadd.xlane.f32.xlu1 %v3287_v5  ;;  %v3256_v47 = vpop.xlane.xlu0 %3255 }
 0x8d6   :  { %v3264_v14 = vsub.f32 %v3232_v46, %v3256_v47  ;;  %4617 = vpow2.f32 %v3277_v36 }
 0x8d7   :  { %v5468_v25 = vpop.eup %4611 }
 0x8d8   :  { %v3290_v59 = vsel %vm542_vm3, %v5468_v25, 0.0  ;;  %v3279_v18 = vmul.f32 1.442695, %v3264_v14 }
 0x8d9   :  { %3291 = vadd.xlane.f32.xlu0 %v3290_v59  ;;  %v3378_v61 = vpop.permute.xlu0 %3377 }
 0x8da   :  { %v3383_v17 = vsel %vm645_vm2, %v3378_v61, 0  ;;  %4619 = vpow2.f32 %v3279_v18 }
 0x8db   :  { %4391 = vmatpush3.bf16.msra.mxu1 %v3383_v17 }
 0x8dc   :  { %4402 = vmatprep.subr.bf16.mxu1 %v4639_v3 }
 0x8e6   :  { %3569 = vrot.lane.b32.xlu1 %v4731_v27, %s4651_s9  ;;  %v5480_v27 = vpop.eup %4613 }
 0x8e7   :  { %v5482_v43 = vpop.eup %4615 }
 0x8e8   :  { %v5486_v44 = vpop.eup %4617  ;;  %v3296_v24 = vsel %vm542_vm3, %v5482_v43, 0.0 }
 0x8e9   :  { %v3299_v1 = vsel %vm542_vm3, %v5486_v44, 0.0  ;;  %v5492_v46 = vpop.eup %4619 }
 0x8ea   :  { %v3302_v20 = vsel %vm542_vm3, %v5492_v46, 0.0 }
 0x8ef   :  { %3521 = vrot.lane.b32.xlu0 %v4729_v26, %s4651_s9  ;;  %v3293_v26 = vsel %vm542_vm3, %v5480_v27, 0.0 }
 0x90a   :  { %3294 = vadd.xlane.f32.xlu1 %v3293_v26 }
 0x90e   :  { %3300 = vadd.xlane.f32.xlu1 %v3299_v1  ;;  %3297 = vadd.xlane.f32.xlu0 %v3296_v24 }
 0x912   :  { %3303 = vadd.xlane.f32.xlu0 %v3302_v20 }
 0x91f   :  { %3665 = vrot.lane.b32.xlu1 %v4738_v30, %s4651_s9 }
 0x923   :  { %4455 = vrot.lane.b32.xlu1 %v4454_v15, %s4652_s10 }
 0x927   :  { %4465 = vrot.lane.b32.xlu1 %v4464_v51, %s4652_s10 }
 0x928   :  { %3617 = vrot.lane.b32.xlu0 %v4736_v29, %s4651_s9  ;;  %v3426_v29 = vpop.permute.xlu1 %3425 }
 0x92b   :  { %4475 = vrot.lane.b32.xlu1 %v4474_v58, %s4653_s11 }
 0x92c   :  { %4450 = vrot.lane.b32.xlu0 %v4449_v10, %s4652_s10  ;;  %v3474_v30 = vpop.permute.xlu1 %3473 }
 0x92d   :  { %v3479_v55 = vsel %vm645_vm2, %v3474_v30, 0 }
 0x92f   :  { %4485 = vrot.lane.b32.xlu1 %v4484_v35, %s4653_s11 }
 0x930   :  { %4460 = vrot.lane.b32.xlu0 %v4459_v34, %s4652_s10  ;;  %v3431_v34 = vsel %vm645_vm2, %v3426_v29, 0 }
 0x934   :  { %4470 = vrot.lane.b32.xlu0 %v4469_v40, %s4653_s11 }
 0x938   :  { %4480 = vrot.lane.b32.xlu0 %v4479_v52, %s4653_s11 }
 0x956   :  { %v3283_v8 = vpop.xlane.xlu1 %3282 }
 0x957   :  { %4621 = vrcp.f32 %v3283_v8 }
 0x95a   :  { %v3286_v48 = vpop.xlane.xlu0 %3285 }
 0x95b   :  { %4623 = vrcp.f32 %v3286_v48 }
 0x95e   :  { %v3289_v10 = vpop.xlane.xlu1 %3288 }
 0x95f   :  { %4625 = vrcp.f32 %v3289_v10 }
 0x962   :  { %v3292_v53 = vpop.xlane.xlu0 %3291  ;;  %v3570_v50 = vpop.permute.xlu1 %3569 }
 0x963   :  { %4627 = vrcp.f32 %v3292_v53  ;;  %v3575_v54 = vsel %vm645_vm2, %v3570_v50, 0 }
 0x964   :  { %v4622_v6 = vpop.eup %4621 }
 0x965   :  { %v3313_v15 = vmul.f32 %v4622_v6, %v5456_v21 }
 0x966   :  { %v3522_v40 = vpop.permute.xlu0 %3521 }
 0x967   :  { %v3321_v32 = vpack.c.bf16 %v3313_v15, %v3313_v15  ;;  %v3527_v22 = vsel %vm645_vm2, %v3522_v40, 0 }
 0x968   :  { %v4624_v41 = vpop.eup %4623 }
 0x969   :  { %v3314_v49 = vmul.f32 %v4624_v41, %v5460_v19  ;;  %4387 = vmatmul.mubr.msk.bf16.vlgmr.msra.gmra.mxu0 %vm641_vm4, %v3321_v32 }
 0x96a   :  { %4397 = vmatpush3.bf16.msra.mxu0 %v3431_v34  ;;  %4398 = vmatprep.mubr.msk.bf16.mxu0 %vm4640_vm0, %v4639_v3 }
 0x96b   :  { %v3322_v39 = vpack.c.bf16 %v3314_v49, %v3314_v49  ;;  %4408 = vmatprep.subr.bf16.mxu0 %v4639_v3 }
 0x96c   :  { %v4626_v51 = vpop.eup %4625 }
 0x96d   :  { %v3315_v45 = vmul.f32 %v4626_v51, %v5464_v31  ;;  %4393 = vmatmul.mubr.msk.bf16.vlgmr.msra.gmra.mxu1 %vm641_vm4, %v3322_v39 }
 0x96e   :  { %4403 = vmatpush3.bf16.msra.mxu1 %v3479_v55  ;;  %4404 = vmatprep.mubr.msk.bf16.mxu1 %vm4640_vm0, %v4639_v3 }
 0x96f   :  { %v3323_v16 = vpack.c.bf16 %v3315_v45, %v3315_v45  ;;  %4414 = vmatprep.subr.bf16.mxu1 %v4639_v3 }
 0x970   :  { %v4628_v42 = vpop.eup %4627 }
 0x971   :  { %v3316_v58 = vmul.f32 %v4628_v42, %v5468_v25  ;;  %4399 = vmatmul.mubr.msk.bf16.vlgmr.msra.gmra.mxu0 %vm641_vm4, %v3323_v16 }
 0x972   :  { %4409 = vmatpush3.bf16.msra.mxu0 %v3527_v22  ;;  %4410 = vmatprep.mubr.msk.bf16.mxu0 %vm4640_vm0, %v4639_v3 }
 0x973   :  { %v3324_v52 = vpack.c.bf16 %v3316_v58, %v3316_v58  ;;  %4420 = vmatprep.subr.bf16.mxu0 %v4639_v3 }
 0x975   :  { %4405 = vmatmul.mubr.msk.bf16.vlgmr.msra.gmra.mxu1 %vm641_vm4, %v3324_v52 }
 0x976   :  { %4415 = vmatpush3.bf16.msra.mxu1 %v3575_v54  ;;  %4416 = vmatprep.mubr.msk.bf16.mxu1 %vm4640_vm0, %v4639_v3 }
 0x977   :  { %4426 = vmatprep.subr.bf16.mxu1 %v4639_v3 }
 0x993   :  { %v3295_v9 = vpop.xlane.xlu1 %3294 }
 0x994   :  { %4629 = vrcp.f32 %v3295_v9 }
 0x997   :  { %v3301_v35 = vpop.xlane.xlu1 %3300  ;;  %v3298_v21 = vpop.xlane.xlu0 %3297 }
 0x998   :  { %4631 = vrcp.f32 %v3301_v35 }
 0x999   :  { %4633 = vrcp.f32 %v3298_v21 }
 0x99b   :  { %v3666_v19 = vpop.permute.xlu1 %3665  ;;  %v3304_v63 = vpop.xlane.xlu0 %3303 }
 0x99c   :  { %4635 = vrcp.f32 %v3304_v63  ;;  %v3671_v14 = vsel %vm645_vm2, %v3666_v19, 0 }
 0x99f   :  { %v5548_v38 = vpop.permute.xlu1 %4455  ;;  %v3618_v31 = vpop.permute.xlu0 %3617 }
 0x9a0   :  { %v3623_v17 = vsel %vm645_vm2, %v3618_v31, 0 }
 0x9a1   :  { %v4630_v5 = vpop.eup %4629 }
 0x9a2   :  { %v3317_v47 = vmul.f32 %v4630_v5, %v5480_v27 }
 0x9a3   :  { %v4466_v25 = vpop.permute.xlu1 %4465  ;;  %v5551_v59 = vpop.permute.xlu0 %4450 }
 0x9a4   :  { %v3325_v61 = vpack.c.bf16 %v3317_v47, %v3317_v47  ;;  %v4468_v33 = vunpack.i.h.bf16 %v4466_v25  ;;  %v4467_v18 = vunpack.i.l.bf16 %v4466_v25 }
 0x9a5   :  { %v4632_v7 = vpop.eup %4631 }
 0x9a6   :  { %v4634_v37 = vpop.eup %4633  ;;  %4411 = vmatmul.mubr.msk.bf16.vlgmr.msra.gmra.mxu0 %vm641_vm4, %v3325_v61  ;;  %v3319_v12 = vmul.f32 %v4632_v7, %v5486_v44  ;;  %v3816_v24 = vsel %vm38_vm1, %v5005_v28, %v4468_v33  ;;  %v3815_v30 = vsel %vm38_vm1, %v5003_v23, %v4467_v18 }
 0x9a7   :  { %v3318_v62 = vmul.f32 %v4634_v37, %v5482_v43  ;;  %v5556_v56 = vpop.permute.xlu1 %4475  ;;  %v4461_v2 = vpop.permute.xlu0 %4460  ;;  %4421 = vmatpush3.bf16.msra.mxu0 %v3623_v17  ;;  %4422 = vmatprep.mubr.msk.bf16.mxu0 %vm4640_vm0, %v4639_v3 }
 0x9a8   :  { %v3327_v1 = vpack.c.bf16 %v3319_v12, %v3319_v12  ;;  %v4463_v8 = vunpack.i.h.bf16 %v4461_v2  ;;  %v4462_v48 = vunpack.i.l.bf16 %v4461_v2 }
 0x9a9   :  { %v3326_v36 = vpack.c.bf16 %v3318_v62, %v3318_v62  ;;  %v4636_v27 = vpop.eup %4635 }
 0x9aa   :  { %v3320_v44 = vmul.f32 %v4636_v27, %v5492_v46  ;;  %v3813_v23 = vsel %vm38_vm1, %v4996_v11, %v4462_v48  ;;  %v4453_v27 = vunpack.i.h.bf16 %v5551_v59 }
 0x9ab   :  { %4417 = vmatmul.mubr.msk.bf16.vlgmr.msra.gmra.mxu1 %vm641_vm4, %v3326_v36  ;;  %v4486_v26 = vpop.permute.xlu1 %4485  ;;  %v5563_v43 = vpop.permute.xlu0 %4470 }
 0x9ac   :  { %v4488_v20 = vunpack.i.h.bf16 %v4486_v26  ;;  %v4487_v29 = vunpack.i.l.bf16 %v4486_v26  ;;  %4427 = vmatpush3.bf16.msra.mxu1 %v3671_v14  ;;  %4428 = vmatprep.mubr.msk.bf16.mxu1 %vm4640_vm0, %v4639_v3  ;;  %v3328_v32 = vpack.c.bf16 %v3320_v44, %v3320_v44  ;;  %v3814_v3 = vsel %vm38_vm1, %v5001_v13, %v4463_v8 }
 0x9ad   :  { %v4452_v26 = vunpack.i.l.bf16 %v5551_v59 }
 0x9ae   :  { %v5573_v10 = vsel %vm3817_vm5, %v3815_v30, %v4487_v29  ;;  %v5576_v53 = vsel %vm3817_vm5, %v3816_v24, %v4488_v20  ;;  %4423 = vmatmul.mubr.msk.bf16.vlgmr.msra.gmra.mxu0 %vm641_vm4, %v3327_v1  ;;  %v4473_v1 = vunpack.i.h.bf16 %v5563_v43  ;;  %v4472_v24 = vunpack.i.l.bf16 %v5563_v43 }
 0x9af   :  { %v4481_v28 = vpop.permute.xlu0 %4480  ;;  %v3810_v29 = vsel %vm38_vm1, %v4989_v60, %v4453_v27  ;;  %v3809_v44 = vsel %vm38_vm1, %v4987_v57, %v4452_v26  ;;  %v4457_v60 = vunpack.i.l.bf16 %v5548_v38  ;;  %v4477_v57 = vunpack.i.l.bf16 %v5556_v56 }
 0x9b0   :  { %v4483_v6 = vunpack.i.h.bf16 %v4481_v28  ;;  %v4482_v15 = vunpack.i.l.bf16 %v4481_v28  ;;  %v3818_v48 = vsel %vm3817_vm5, %v3809_v44, %v4472_v24  ;;  %v3819_v28 = vsel %vm3817_vm5, %v3810_v29, %v4473_v1 }
 0x9b2   :  { %v5584_v46 = vsel %vm3817_vm5, %v3813_v23, %v4482_v15  ;;  %v5587_v41 = vsel %vm3817_vm5, %v3814_v3, %v4483_v6  ;;  %v4478_v3 = vunpack.i.h.bf16 %v5556_v56 }
 0x9b3   :  { %4429 = vmatmul.mubr.msk.bf16.vlgmr.msra.gmra.mxu1 %vm641_vm4, %v3328_v32  ;;  %v4458_v32 = vunpack.i.h.bf16 %v5548_v38  ;;  %v3811_v38 = vsel %vm38_vm1, %v4991_v0, %v4457_v60 }
 0x9b4   :  { %v3820_v56 = vsel %vm3817_vm5, %v3811_v38, %v4477_v57 }
 0xa29   :  { %v3371_v34 = vpop.f32.mrf.mxu0 }
 0xa2b   :  { %v4388_v49 = vpop.f32.mrf.mxu0 }
 0xa2d   :  { %v3374_v39 = vpop.f32.mrf.mxu0  ;;  %v3419_v51 = vpop.f32.mrf.mxu1 }
 0xa2e   :  { %v4489_v55 = vpack.i.bf16 %v3419_v51, %v3371_v34  ;;  %v3812_v34 = vsel %vm38_vm1, %v4993_v4, %v4458_v32 }
 0xa2f   :  { %v4389_v45 = vpop.f32.mrf.mxu0  ;;  %v4394_v40 = vpop.f32.mrf.mxu1  ;;  %v3821_v51 = vsel %vm3817_vm5, %v3812_v34, %v4478_v3 }
 0xa30   :  { %4490 = vrot.lane.b32.xlu0 %v4489_v55, %s4654_s12 }
 0xa31   :  { %v3422_v13 = vpop.f32.mrf.mxu1  ;;  %v3467_v11 = vpop.f32.mrf.mxu0 }
 0xa33   :  { %v4395_v16 = vpop.f32.mrf.mxu1  ;;  %v4400_v42 = vpop.f32.mrf.mxu0 }
 0xa35   :  { %v3470_v58 = vpop.f32.mrf.mxu0  ;;  %v3515_v22 = vpop.f32.mrf.mxu1 }
 0xa36   :  { %v4494_v50 = vpack.i.bf16 %v3515_v22, %v3467_v11 }
 0xa37   :  { %v4401_v52 = vpop.f32.mrf.mxu0  ;;  %v4406_v54 = vpop.f32.mrf.mxu1 }
 0xa38   :  { %4495 = vrot.lane.b32.xlu1 %v4494_v50, %s4654_s12 }
 0xa39   :  { %v3518_v9 = vpop.f32.mrf.mxu1 }
 0xa3b   :  { %v4407_v35 = vpop.f32.mrf.mxu1 }
 0xa66   :  { %v3563_v21 = vpop.f32.mrf.mxu0 }
 0xa68   :  { %v4412_v19 = vpop.f32.mrf.mxu0 }
 0xa6a   :  { %v3566_v63 = vpop.f32.mrf.mxu0 }
 0xa6b   :  { %v3611_v31 = vpop.f32.mrf.mxu1 }
 0xa6c   :  { %v4499_v5 = vpack.i.bf16 %v3611_v31, %v3563_v21  ;;  %v4413_v47 = vpop.f32.mrf.mxu0 }
 0xa6d   :  { %v4418_v25 = vpop.f32.mrf.mxu1 }
 0xa6e   :  { %4500 = vrot.lane.b32.xlu0 %v4499_v5, %s4654_s12  ;;  %v3659_v61 = vpop.f32.mrf.mxu0 }
 0xa6f   :  { %v3614_v17 = vpop.f32.mrf.mxu1 }
 0xa70   :  { %v4424_v7 = vpop.f32.mrf.mxu0 }
 0xa71   :  { %v4419_v37 = vpop.f32.mrf.mxu1 }
 0xa72   :  { %v3662_v62 = vpop.f32.mrf.mxu0 }
 0xa73   :  { %v3707_v2 = vpop.f32.mrf.mxu1 }
 0xa74   :  { %v4504_v12 = vpack.i.bf16 %v3707_v2, %v3659_v61  ;;  %v4425_v33 = vpop.f32.mrf.mxu0 }
 0xa75   :  { %v4430_v36 = vpop.f32.mrf.mxu1 }
 0xa76   :  { %4505 = vrot.lane.b32.xlu1 %v4504_v12, %s4654_s12 }
 0xa77   :  { %v3710_v14 = vpop.f32.mrf.mxu1 }
 0xa79   :  { %v4431_v18 = vpop.f32.mrf.mxu1 }
 0xaa2   :  { %v4491_v20 = vpop.permute.xlu0 %4490 }
 0xaa3   :  { %v4493_v30 = vunpack.i.h.bf16 %v4491_v20  ;;  %v4492_v8 = vunpack.i.l.bf16 %v4491_v20 }
 0xaa5   :  { %v3827_v59 = vsel %vm3826_vm6, %v3818_v48, %v4492_v8  ;;  %v3828_v6 = vsel %vm3826_vm6, %v3819_v28, %v4493_v30 }
 0xaa6   :  { %v3835_v43 = vpack.c.bf16 %v3827_v59, %v3827_v59  ;;  %v3836_v15 = vpack.c.bf16 %v3828_v6, %v3828_v6 }
 0xaa8   :  { %3844 = vst.msk [vmem:[%s5660_s2] sm:$0x1] %vm3843_vm7, %v3835_v43  ;;  %3845 = vst.msk [vmem:[%s5660_s2 + $0x1] sm:$0x1] %vm3843_vm7, %v3836_v15 }
 0xaaa   :  { %v4496_v23 = vpop.permute.xlu1 %4495 }
 0xaab   :  { %v4498_v49 = vunpack.i.h.bf16 %v4496_v23  ;;  %v4497_v39 = vunpack.i.l.bf16 %v4496_v23 }
 0xaad   :  { %v3830_v55 = vsel %vm3826_vm6, %v3821_v51, %v4498_v49  ;;  %v3829_v45 = vsel %vm3826_vm6, %v3820_v56, %v4497_v39 }
 0xaae   :  { %v3838_v40 = vpack.c.bf16 %v3830_v55, %v3830_v55  ;;  %v3837_v13 = vpack.c.bf16 %v3829_v45, %v3829_v45 }
 0xab0   :  { %3847 = vst.msk [vmem:[%s5660_s2 + $0x3] sm:$0x1] %vm3843_vm7, %v3838_v40  ;;  %3846 = vst.msk [vmem:[%s5660_s2 + $0x2] sm:$0x1] %vm3843_vm7, %v3837_v13 }
 0xae0   :  { %v4501_v0 = vpop.permute.xlu0 %4500 }
 0xae1   :  { %v4503_v4 = vunpack.i.h.bf16 %v4501_v0  ;;  %v4502_v11 = vunpack.i.l.bf16 %v4501_v0 }
 0xae3   :  { %v3831_v16 = vsel %vm3826_vm6, %v5584_v46, %v4502_v11  ;;  %v3832_v42 = vsel %vm3826_vm6, %v5587_v41, %v4503_v4 }
 0xae4   :  { %v3839_v58 = vpack.c.bf16 %v3831_v16, %v3831_v16  ;;  %v3840_v22 = vpack.c.bf16 %v3832_v42, %v3832_v42 }
 0xae6   :  { %3848 = vst.msk [vmem:[%s5660_s2 + $0x4] sm:$0x1] %vm3843_vm7, %v3839_v58  ;;  %3849 = vst.msk [vmem:[%s5660_s2 + $0x5] sm:$0x1] %vm3843_vm7, %v3840_v22 }
 0xae8   :  { %v4506_v50 = vpop.permute.xlu1 %4505 }
 0xae9   :  { %v4508_v52 = vunpack.i.h.bf16 %v4506_v50  ;;  %v4507_v54 = vunpack.i.l.bf16 %v4506_v50 }
 0xaeb   :  { %v3834_v46 = vsel %vm3826_vm6, %v5576_v53, %v4508_v52  ;;  %v3833_v41 = vsel %vm3826_vm6, %v5573_v10, %v4507_v54 }
 0xaec   :  { %v3842_v9 = vpack.c.bf16 %v3834_v46, %v3834_v46  ;;  %v3841_v35 = vpack.c.bf16 %v3833_v41, %v3833_v41 }
 0xaee   :  { %3851 = vst.msk [vmem:[%s5660_s2 + $0x7] sm:$0x1] %vm3843_vm7, %v3842_v9  ;;  %3850 = vst.msk [vmem:[%s5660_s2 + $0x6] sm:$0x1] %vm3843_vm7, %v3841_v35 }

// kernel: transformer_forward.17
= control target key start
LH: loop header
LB: loop body
LE: loop exit
PB: predicated region body
PF: predicated region fallthrough
CT: control target
= control target key end

     0   :  { %vm1485_vm0 = vcmask 261120   ;;  %vm1539_vm1 = vcmask 257024   ;;  %s2498_s1 = inlined_call_operand.vmem [shape: bf16[2048,32], index: 1, kind: input, shape index: {}]   ;;  %s2499_s0 = inlined_call_operand.vmem [shape: bf16[16,2048], index: 0, kind: input, shape index: {}]   ;;  %s2500_s2 = inlined_call_operand.vmem [shape: f32[1,32], index: 2, kind: input, shape index: {}]   ;;  %s2501_s3 = inlined_call_operand.vmem [shape: bf16[16,32], index: 3, kind: input, shape index: {}]   ;;  %s2502_s4 = inlined_call_operand.vmem [shape: f32[1,32], index: 4, kind: input, shape index: {}]   ;;  %s2503_s5 = inlined_call_operand.vmem [shape: f32[1,32], index: 5, kind: input, shape index: {}]   ;;  %s2504_s6 = inlined_call_operand.vmem [shape: bf16[16,32], index: 6, kind: output, shape index: {}]  }
   0x1   :  { %v1877_v0 = vld [vmem:[%s2498_s1 + $0x78] sm:$0xff]   ;;  %v1881_v4 = vld [vmem:[%s2498_s1 + $0x70] sm:$0xff]   ;;  %v1885_v8 = vld [vmem:[%s2498_s1 + $0x68] sm:$0xff]  }
   0x2   :  { %v1878_v1 = vld [vmem:[%s2498_s1 + $0xf8] sm:$0xff]   ;;  %1701 = vmatprep.subr.bf16.mxu0 %v1877_v0  ;;  %v1882_v5 = vld [vmem:[%s2498_s1 + $0xf0] sm:$0xff]   ;;  %v1886_v9 = vld [vmem:[%s2498_s1 + $0xe8] sm:$0xff]  }
   0x3   :  { %v1879_v2 = vld [vmem:[%s2498_s1 + $0x38] sm:$0xff]   ;;  %1723 = vmatprep.subr.bf16.mxu1 %v1878_v1  ;;  %v1883_v6 = vld [vmem:[%s2498_s1 + $0x30] sm:$0xff]   ;;  %v1887_v10 = vld [vmem:[%s2498_s1 + $0x28] sm:$0xff]  }
   0x4   :  { %v1880_v3 = vld [vmem:[%s2498_s1 + $0xb8] sm:$0xff]   ;;  %1702 = vmatpush3.bf16.msra.mxu0 %v1879_v2  ;;  %v1884_v7 = vld [vmem:[%s2498_s1 + $0xb0] sm:$0xff]   ;;  %v1888_v11 = vld [vmem:[%s2498_s1 + $0xa8] sm:$0xff]  }
   0x5   :  { %1724 = vmatpush3.bf16.msra.mxu1 %v1880_v3  ;;  %1703 = vmatprep.subr.bf16.mxu0 %v1881_v4  ;;  %v1889_v12 = vld [vmem:[%s2498_s1 + $0x60] sm:$0xff]   ;;  %v1893_v16 = vld [vmem:[%s2498_s1 + $0x58] sm:$0xff]   ;;  %v1897_v20 = vld [vmem:[%s2498_s1 + $0x50] sm:$0xff]  }
   0x6   :  { %1725 = vmatprep.subr.bf16.mxu1 %v1882_v5  ;;  %v1890_v13 = vld [vmem:[%s2498_s1 + $0xe0] sm:$0xff]   ;;  %v1894_v17 = vld [vmem:[%s2498_s1 + $0xd8] sm:$0xff]   ;;  %v1898_v21 = vld [vmem:[%s2498_s1 + $0xd0] sm:$0xff]  }
   0x7   :  { %v1891_v14 = vld [vmem:[%s2498_s1 + $0x20] sm:$0xff]   ;;  %v1895_v18 = vld [vmem:[%s2498_s1 + $0x18] sm:$0xff]   ;;  %v1899_v22 = vld [vmem:[%s2498_s1 + $0x10] sm:$0xff]  }
   0x8   :  { %1704 = vmatpush3.bf16.msra.mxu0 %v1883_v6  ;;  %v1892_v15 = vld [vmem:[%s2498_s1 + $0xa0] sm:$0xff]   ;;  %v1896_v19 = vld [vmem:[%s2498_s1 + $0x98] sm:$0xff]   ;;  %v1900_v23 = vld [vmem:[%s2498_s1 + $0x90] sm:$0xff]  }
   0x9   :  { %1726 = vmatpush3.bf16.msra.mxu1 %v1884_v7  ;;  %1705 = vmatprep.subr.bf16.mxu0 %v1885_v8  ;;  %v1901_v24 = vld [vmem:[%s2498_s1 + $0x48] sm:$0xff]   ;;  %v1905_v28 = vld [vmem:[%s2498_s1 + $0x40] sm:$0xff]   ;;  %v1909_v40 = vld [vmem:[%s2498_s1 + $0x178] sm:$0xff]  }
   0xa   :  { %1727 = vmatprep.subr.bf16.mxu1 %v1886_v9  ;;  %v1902_v25 = vld [vmem:[%s2498_s1 + $0xc8] sm:$0xff]   ;;  %v1906_v29 = vld [vmem:[%s2498_s1 + $0xc0] sm:$0xff]   ;;  %v1910_v41 = vld [vmem:[%s2498_s1 + $0x1f8] sm:$0xff]  }
   0xb   :  { %v1903_v26 = vld [vmem:[%s2498_s1 + $0x8] sm:$0xff]   ;;  %v1907_v30 = vld [vmem:[%s2498_s1] sm:$0xff]   ;;  %v1911_v42 = vld [vmem:[%s2498_s1 + $0x138] sm:$0xff]  }
   0xc   :  { %1706 = vmatpush3.bf16.msra.mxu0 %v1887_v10  ;;  %v1904_v27 = vld [vmem:[%s2498_s1 + $0x88] sm:$0xff]   ;;  %v1908_v31 = vld [vmem:[%s2498_s1 + $0x80] sm:$0xff]   ;;  %v1912_v43 = vld [vmem:[%s2498_s1 + $0x1b8] sm:$0xff]  }
   0xd   :  { %1728 = vmatpush3.bf16.msra.mxu1 %v1888_v11  ;;  %1707 = vmatprep.subr.bf16.mxu0 %v1889_v12  ;;  %v24_v32 = vld [vmem:[%s2499_s0] sm:$0xff]  ;;  %v25_v34 = vld [vmem:[%s2499_s0 + $0x8] sm:$0xff]  ;;  %v1913_v44 = vld [vmem:[%s2498_s1 + $0x170] sm:$0xff]  }
   0xe   :  { %1729 = vmatprep.subr.bf16.mxu1 %v1890_v13  ;;  %v32_v33 = vld [vmem:[%s2499_s0 + $0x40] sm:$0xff]  ;;  %v33_v37 = vld [vmem:[%s2499_s0 + $0x48] sm:$0xff]  ;;  %v1914_v45 = vld [vmem:[%s2498_s1 + $0x1f0] sm:$0xff]  }
   0xf   :  { %v1547_v35 = vcombine.low %v24_v32, %v32_v33  ;;  %v1548_v36 = vcombine.high %v24_v32, %v32_v33  ;;  %v1549_v38 = vcombine.low %v25_v34, %v33_v37  ;;  %v1550_v39 = vcombine.high %v25_v34, %v33_v37  ;;  %v1915_v46 = vld [vmem:[%s2498_s1 + $0x130] sm:$0xff]   ;;  %v1917_v48 = vld [vmem:[%s2498_s1 + $0x168] sm:$0xff]   ;;  %v1921_v52 = vld [vmem:[%s2498_s1 + $0x160] sm:$0xff]  }
  0x10   :  { %1708 = vmatpush3.bf16.msra.mxu0 %v1891_v14  ;;  %v1916_v47 = vld [vmem:[%s2498_s1 + $0x1b0] sm:$0xff]   ;;  %v1918_v49 = vld [vmem:[%s2498_s1 + $0x1e8] sm:$0xff]   ;;  %v1922_v53 = vld [vmem:[%s2498_s1 + $0x1e0] sm:$0xff]  }
  0x11   :  { %1730 = vmatpush3.bf16.msra.mxu1 %v1892_v15  ;;  %1709 = vmatprep.subr.bf16.mxu0 %v1893_v16  ;;  %v1919_v50 = vld [vmem:[%s2498_s1 + $0x128] sm:$0xff]   ;;  %v1923_v54 = vld [vmem:[%s2498_s1 + $0x120] sm:$0xff]   ;;  %v1925_v56 = vld [vmem:[%s2498_s1 + $0x158] sm:$0xff]  }
  0x12   :  { %1731 = vmatprep.subr.bf16.mxu1 %v1894_v17  ;;  %1183 = vmatprep.mubr.bf16.mxu0 %v1548_v36  ;;  %v1920_v51 = vld [vmem:[%s2498_s1 + $0x1a8] sm:$0xff]   ;;  %v1924_v55 = vld [vmem:[%s2498_s1 + $0x1a0] sm:$0xff]   ;;  %v1926_v57 = vld [vmem:[%s2498_s1 + $0x1d8] sm:$0xff]  }
  0x13   :  { %1224 = vmatprep.mubr.bf16.mxu1 %v1550_v39  ;;  %v1927_v58 = vld [vmem:[%s2498_s1 + $0x118] sm:$0xff]   ;;  %v1929_v60 = vld [vmem:[%s2498_s1 + $0x150] sm:$0xff]   ;;  %v1933_v0 = vld [vmem:[%s2498_s1 + $0x148] sm:$0xff]  }
  0x14   :  { %1710 = vmatpush3.bf16.msra.mxu0 %v1895_v18  ;;  %v1928_v59 = vld [vmem:[%s2498_s1 + $0x198] sm:$0xff]   ;;  %v1930_v61 = vld [vmem:[%s2498_s1 + $0x1d0] sm:$0xff]   ;;  %v1934_v1 = vld [vmem:[%s2498_s1 + $0x1c8] sm:$0xff]  }
  0x15   :  { %1732 = vmatpush3.bf16.msra.mxu1 %v1896_v19  ;;  %1711 = vmatprep.subr.bf16.mxu0 %v1897_v20  ;;  %v1931_v62 = vld [vmem:[%s2498_s1 + $0x110] sm:$0xff]   ;;  %v1935_v2 = vld [vmem:[%s2498_s1 + $0x108] sm:$0xff]   ;;  %v1937_v4 = vld [vmem:[%s2498_s1 + $0x140] sm:$0xff]  }
  0x16   :  { %1733 = vmatprep.subr.bf16.mxu1 %v1898_v21  ;;  %v1932_v63 = vld [vmem:[%s2498_s1 + $0x190] sm:$0xff]   ;;  %v1936_v3 = vld [vmem:[%s2498_s1 + $0x188] sm:$0xff]   ;;  %v1938_v5 = vld [vmem:[%s2498_s1 + $0x1c0] sm:$0xff]  }
  0x17   :  { %v1939_v6 = vld [vmem:[%s2498_s1 + $0x100] sm:$0xff]   ;;  %v26_v8 = vld [vmem:[%s2499_s0 + $0x10] sm:$0xff]  ;;  %v27_v12 = vld [vmem:[%s2499_s0 + $0x18] sm:$0xff] }
  0x18   :  { %1712 = vmatpush3.bf16.msra.mxu0 %v1899_v22  ;;  %v1940_v7 = vld [vmem:[%s2498_s1 + $0x180] sm:$0xff]   ;;  %v34_v9 = vld [vmem:[%s2499_s0 + $0x50] sm:$0xff]  ;;  %v35_v13 = vld [vmem:[%s2499_s0 + $0x58] sm:$0xff] }
  0x19   :  { %1734 = vmatpush3.bf16.msra.mxu1 %v1900_v23  ;;  %1713 = vmatprep.subr.bf16.mxu0 %v1901_v24  ;;  %v1551_v10 = vcombine.low %v26_v8, %v34_v9  ;;  %v1552_v11 = vcombine.high %v26_v8, %v34_v9  ;;  %v1553_v14 = vcombine.low %v27_v12, %v35_v13  ;;  %v1941_v16 = vld [vmem:[%s2498_s1 + $0x278] sm:$0xff]   ;;  %v1945_v20 = vld [vmem:[%s2498_s1 + $0x270] sm:$0xff]   ;;  %v1949_v24 = vld [vmem:[%s2498_s1 + $0x268] sm:$0xff]  }
  0x1a   :  { %1735 = vmatprep.subr.bf16.mxu1 %v1902_v25  ;;  %v1554_v15 = vcombine.high %v27_v12, %v35_v13  ;;  %v1942_v17 = vld [vmem:[%s2498_s1 + $0x2f8] sm:$0xff]   ;;  %v1946_v21 = vld [vmem:[%s2498_s1 + $0x2f0] sm:$0xff]   ;;  %v1950_v25 = vld [vmem:[%s2498_s1 + $0x2e8] sm:$0xff]  }
  0x1b   :  { %v1943_v18 = vld [vmem:[%s2498_s1 + $0x238] sm:$0xff]   ;;  %v1947_v22 = vld [vmem:[%s2498_s1 + $0x230] sm:$0xff]  }
  0x1c   :  { %1714 = vmatpush3.bf16.msra.mxu0 %v1903_v26  ;;  %v1944_v19 = vld [vmem:[%s2498_s1 + $0x2b8] sm:$0xff]   ;;  %v1948_v23 = vld [vmem:[%s2498_s1 + $0x2b0] sm:$0xff]   ;;  %v1951_v26 = vld [vmem:[%s2498_s1 + $0x228] sm:$0xff]  }
  0x1d   :  { %1736 = vmatpush3.bf16.msra.mxu1 %v1904_v27  ;;  %1715 = vmatprep.subr.bf16.mxu0 %v1905_v28  ;;  %v1952_v27 = vld [vmem:[%s2498_s1 + $0x2a8] sm:$0xff]   ;;  %v1953_v28 = vld [vmem:[%s2498_s1 + $0x260] sm:$0xff]   ;;  %v1957_v32 = vld [vmem:[%s2498_s1 + $0x258] sm:$0xff]  }
  0x1e   :  { %1737 = vmatprep.subr.bf16.mxu1 %v1906_v29  ;;  %v1954_v29 = vld [vmem:[%s2498_s1 + $0x2e0] sm:$0xff]   ;;  %v1958_v33 = vld [vmem:[%s2498_s1 + $0x2d8] sm:$0xff]   ;;  %v1961_v36 = vld [vmem:[%s2498_s1 + $0x250] sm:$0xff]  }
  0x1f   :  { %v1959_v34 = vld [vmem:[%s2498_s1 + $0x218] sm:$0xff]   ;;  %v1962_v37 = vld [vmem:[%s2498_s1 + $0x2d0] sm:$0xff]  }
  0x20   :  { %1716 = vmatpush3.bf16.msra.mxu0 %v1907_v30  ;;  %v1955_v30 = vld [vmem:[%s2498_s1 + $0x220] sm:$0xff]   ;;  %v1964_v39 = vld [vmem:[%s2498_s1 + $0x290] sm:$0xff]   ;;  %v1989_v8 = vld [vmem:[%s2498_s1 + $0x358] sm:$0xff]  }
  0x21   :  { %1738 = vmatpush3.bf16.msra.mxu1 %v1908_v31  ;;  %1745 = vmatprep.subr.bf16.mxu0 %v1909_v40  ;;  %v1956_v31 = vld [vmem:[%s2498_s1 + $0x2a0] sm:$0xff]   ;;  %v1965_v40 = vld [vmem:[%s2498_s1 + $0x248] sm:$0xff]   ;;  %v1990_v9 = vld [vmem:[%s2498_s1 + $0x3d8] sm:$0xff]  }
  0x22   :  { %1767 = vmatprep.subr.bf16.mxu1 %v1910_v41  ;;  %v1966_v41 = vld [vmem:[%s2498_s1 + $0x2c8] sm:$0xff]   ;;  %v1993_v12 = vld [vmem:[%s2498_s1 + $0x350] sm:$0xff]  }
  0x23   :  { %1184 = vmatmul.mubr.bf16.vlgmr.msra.gmra.mxu0 %v1547_v35  ;;  %v1960_v35 = vld [vmem:[%s2498_s1 + $0x298] sm:$0xff]   ;;  %v1994_v13 = vld [vmem:[%s2498_s1 + $0x3d0] sm:$0xff]  }
  0x24   :  { %1225 = vmatmul.mubr.bf16.vlgmr.msra.gmra.mxu1 %v1549_v38  ;;  %1746 = vmatpush3.bf16.msra.mxu0 %v1911_v42  ;;  %v1963_v38 = vld [vmem:[%s2498_s1 + $0x210] sm:$0xff]   ;;  %v1967_v42 = vld [vmem:[%s2498_s1 + $0x208] sm:$0xff]  }
  0x25   :  { %1768 = vmatpush3.bf16.msra.mxu1 %v1912_v43  ;;  %1747 = vmatprep.subr.bf16.mxu0 %v1913_v44  ;;  %v1968_v43 = vld [vmem:[%s2498_s1 + $0x288] sm:$0xff]   ;;  %v1969_v44 = vld [vmem:[%s2498_s1 + $0x240] sm:$0xff]  }
  0x26   :  { %1769 = vmatprep.subr.bf16.mxu1 %v1914_v45  ;;  %1265 = vmatprep.mubr.bf16.mxu0 %v1552_v11  ;;  %v1970_v45 = vld [vmem:[%s2498_s1 + $0x2c0] sm:$0xff]   ;;  %v1992_v11 = vld [vmem:[%s2498_s1 + $0x398] sm:$0xff]  }
  0x27   :  { %1306 = vmatprep.mubr.bf16.mxu1 %v1554_v15  ;;  %v1996_v15 = vld [vmem:[%s2498_s1 + $0x390] sm:$0xff]  }
  0x28   :  { %1748 = vmatpush3.bf16.msra.mxu0 %v1915_v46  ;;  %v1971_v46 = vld [vmem:[%s2498_s1 + $0x200] sm:$0xff]  }
  0x29   :  { %1770 = vmatpush3.bf16.msra.mxu1 %v1916_v47  ;;  %1749 = vmatprep.subr.bf16.mxu0 %v1917_v48  ;;  %v1972_v47 = vld [vmem:[%s2498_s1 + $0x280] sm:$0xff]  }
  0x2a   :  { %1771 = vmatprep.subr.bf16.mxu1 %v1918_v49  ;;  %v28_v48 = vld [vmem:[%s2499_s0 + $0x20] sm:$0xff] }
  0x2b   :  { %v36_v49 = vld [vmem:[%s2499_s0 + $0x60] sm:$0xff] }
  0x2c   :  { %1750 = vmatpush3.bf16.msra.mxu0 %v1919_v50  ;;  %v29_v50 = vld [vmem:[%s2499_s0 + $0x28] sm:$0xff] }
  0x2d   :  { %1772 = vmatpush3.bf16.msra.mxu1 %v1920_v51  ;;  %1751 = vmatprep.subr.bf16.mxu0 %v1921_v52  ;;  %v37_v51 = vld [vmem:[%s2499_s0 + $0x68] sm:$0xff]  ;;  %v1555_v52 = vcombine.low %v28_v48, %v36_v49 }
  0x2e   :  { %1773 = vmatprep.subr.bf16.mxu1 %v1922_v53  ;;  %v1556_v53 = vcombine.high %v28_v48, %v36_v49  ;;  %v1546_v48 = vld [vmem:[%s2500_s2] ss:$0 sm:$0xff] }
  0x30   :  { %1752 = vmatpush3.bf16.msra.mxu0 %v1923_v54  ;;  %v1557_v54 = vcombine.low %v29_v50, %v37_v51 }
  0x31   :  { %1774 = vmatpush3.bf16.msra.mxu1 %v1924_v55  ;;  %1753 = vmatprep.subr.bf16.mxu0 %v1925_v56  ;;  %v1558_v55 = vcombine.high %v29_v50, %v37_v51  ;;  %v1973_v56 = vld [vmem:[%s2498_s1 + $0x378] sm:$0xff]  }
  0x32   :  { %1775 = vmatprep.subr.bf16.mxu1 %v1926_v57  ;;  %v1974_v57 = vld [vmem:[%s2498_s1 + $0x3f8] sm:$0xff]  }
  0x34   :  { %1754 = vmatpush3.bf16.msra.mxu0 %v1927_v58  ;;  %v1975_v58 = vld [vmem:[%s2498_s1 + $0x338] sm:$0xff]  }
  0x35   :  { %1776 = vmatpush3.bf16.msra.mxu1 %v1928_v59  ;;  %1755 = vmatprep.subr.bf16.mxu0 %v1929_v60  ;;  %v1976_v59 = vld [vmem:[%s2498_s1 + $0x3b8] sm:$0xff]   ;;  %v1977_v60 = vld [vmem:[%s2498_s1 + $0x370] sm:$0xff]  }
  0x36   :  { %1777 = vmatprep.subr.bf16.mxu1 %v1930_v61  ;;  %v1978_v61 = vld [vmem:[%s2498_s1 + $0x3f0] sm:$0xff]  }
  0x38   :  { %1756 = vmatpush3.bf16.msra.mxu0 %v1931_v62  ;;  %v1979_v62 = vld [vmem:[%s2498_s1 + $0x330] sm:$0xff]  }
  0x39   :  { %1778 = vmatpush3.bf16.msra.mxu1 %v1932_v63  ;;  %1757 = vmatprep.subr.bf16.mxu0 %v1933_v0  ;;  %v1980_v63 = vld [vmem:[%s2498_s1 + $0x3b0] sm:$0xff]   ;;  %v1981_v0 = vld [vmem:[%s2498_s1 + $0x368] sm:$0xff]  }
  0x3a   :  { %1779 = vmatprep.subr.bf16.mxu1 %v1934_v1  ;;  %v1982_v1 = vld [vmem:[%s2498_s1 + $0x3e8] sm:$0xff]  }
  0x3c   :  { %1758 = vmatpush3.bf16.msra.mxu0 %v1935_v2  ;;  %v1983_v2 = vld [vmem:[%s2498_s1 + $0x328] sm:$0xff]  }
  0x3d   :  { %1780 = vmatpush3.bf16.msra.mxu1 %v1936_v3  ;;  %1759 = vmatprep.subr.bf16.mxu0 %v1937_v4  ;;  %v1984_v3 = vld [vmem:[%s2498_s1 + $0x3a8] sm:$0xff]   ;;  %v1985_v4 = vld [vmem:[%s2498_s1 + $0x360] sm:$0xff]  }
  0x3e   :  { %1781 = vmatprep.subr.bf16.mxu1 %v1938_v5  ;;  %v1986_v5 = vld [vmem:[%s2498_s1 + $0x3e0] sm:$0xff]  }
  0x40   :  { %1760 = vmatpush3.bf16.msra.mxu0 %v1939_v6  ;;  %v1987_v6 = vld [vmem:[%s2498_s1 + $0x320] sm:$0xff]  }
  0x41   :  { %1782 = vmatpush3.bf16.msra.mxu1 %v1940_v7  ;;  %1789 = vmatprep.subr.bf16.mxu0 %v1941_v16  ;;  %v1988_v7 = vld [vmem:[%s2498_s1 + $0x3a0] sm:$0xff]   ;;  %v1997_v16 = vld [vmem:[%s2498_s1 + $0x348] sm:$0xff]  }
  0x42   :  { %1811 = vmatprep.subr.bf16.mxu1 %v1942_v17  ;;  %v1998_v17 = vld [vmem:[%s2498_s1 + $0x3c8] sm:$0xff]  }
  0x43   :  { %1266 = vmatmul.mubr.bf16.vlgmr.msra.gmra.mxu0 %v1551_v10  ;;  %v1991_v10 = vld [vmem:[%s2498_s1 + $0x318] sm:$0xff]  }
  0x44   :  { %1307 = vmatmul.mubr.bf16.vlgmr.msra.gmra.mxu1 %v1553_v14  ;;  %1790 = vmatpush3.bf16.msra.mxu0 %v1943_v18  ;;  %v1995_v14 = vld [vmem:[%s2498_s1 + $0x310] sm:$0xff]   ;;  %v1999_v18 = vld [vmem:[%s2498_s1 + $0x308] sm:$0xff]  }
  0x45   :  { %1812 = vmatpush3.bf16.msra.mxu1 %v1944_v19  ;;  %1791 = vmatprep.subr.bf16.mxu0 %v1945_v20  ;;  %v2000_v19 = vld [vmem:[%s2498_s1 + $0x388] sm:$0xff]   ;;  %v2001_v20 = vld [vmem:[%s2498_s1 + $0x340] sm:$0xff]  }
  0x46   :  { %1813 = vmatprep.subr.bf16.mxu1 %v1946_v21  ;;  %1347 = vmatprep.mubr.bf16.mxu0 %v1556_v53  ;;  %v2002_v21 = vld [vmem:[%s2498_s1 + $0x3c0] sm:$0xff]  }
  0x47   :  { %1388 = vmatprep.mubr.bf16.mxu1 %v1558_v55 }
  0x48   :  { %1792 = vmatpush3.bf16.msra.mxu0 %v1947_v22  ;;  %v2003_v22 = vld [vmem:[%s2498_s1 + $0x300] sm:$0xff]  }
  0x49   :  { %1814 = vmatpush3.bf16.msra.mxu1 %v1948_v23  ;;  %1793 = vmatprep.subr.bf16.mxu0 %v1949_v24  ;;  %v2004_v23 = vld [vmem:[%s2498_s1 + $0x380] sm:$0xff]   ;;  %v30_v24 = vld [vmem:[%s2499_s0 + $0x30] sm:$0xff] }
  0x4a   :  { %1815 = vmatprep.subr.bf16.mxu1 %v1950_v25  ;;  %v38_v25 = vld [vmem:[%s2499_s0 + $0x70] sm:$0xff] }
  0x4c   :  { %1794 = vmatpush3.bf16.msra.mxu0 %v1951_v26  ;;  %v31_v26 = vld [vmem:[%s2499_s0 + $0x38] sm:$0xff] }
  0x4d   :  { %1816 = vmatpush3.bf16.msra.mxu1 %v1952_v27  ;;  %1795 = vmatprep.subr.bf16.mxu0 %v1953_v28  ;;  %v1559_v27 = vcombine.low %v30_v24, %v38_v25  ;;  %v1560_v28 = vcombine.high %v30_v24, %v38_v25 }
  0x4e   :  { %1817 = vmatprep.subr.bf16.mxu1 %v1954_v29  ;;  %v39_v29 = vld [vmem:[%s2499_s0 + $0x78] sm:$0xff] }
  0x50   :  { %1796 = vmatpush3.bf16.msra.mxu0 %v1955_v30  ;;  %v1561_v30 = vcombine.low %v31_v26, %v39_v29 }
  0x51   :  { %1818 = vmatpush3.bf16.msra.mxu1 %v1956_v31  ;;  %1797 = vmatprep.subr.bf16.mxu0 %v1957_v32  ;;  %v1562_v31 = vcombine.high %v31_v26, %v39_v29 }
  0x52   :  { %1819 = vmatprep.subr.bf16.mxu1 %v1958_v33 }
  0x54   :  { %1798 = vmatpush3.bf16.msra.mxu0 %v1959_v34 }
  0x55   :  { %1820 = vmatpush3.bf16.msra.mxu1 %v1960_v35  ;;  %1799 = vmatprep.subr.bf16.mxu0 %v1961_v36 }
  0x56   :  { %1821 = vmatprep.subr.bf16.mxu1 %v1962_v37 }
  0x58   :  { %1800 = vmatpush3.bf16.msra.mxu0 %v1963_v38 }
  0x59   :  { %1822 = vmatpush3.bf16.msra.mxu1 %v1964_v39  ;;  %1801 = vmatprep.subr.bf16.mxu0 %v1965_v40 }
  0x5a   :  { %1823 = vmatprep.subr.bf16.mxu1 %v1966_v41 }
  0x5c   :  { %1802 = vmatpush3.bf16.msra.mxu0 %v1967_v42 }
  0x5d   :  { %1824 = vmatpush3.bf16.msra.mxu1 %v1968_v43  ;;  %1803 = vmatprep.subr.bf16.mxu0 %v1969_v44 }
  0x5e   :  { %1825 = vmatprep.subr.bf16.mxu1 %v1970_v45 }
  0x60   :  { %1804 = vmatpush3.bf16.msra.mxu0 %v1971_v46 }
  0x61   :  { %1826 = vmatpush3.bf16.msra.mxu1 %v1972_v47  ;;  %1833 = vmatprep.subr.bf16.mxu0 %v1973_v56 }
  0x62   :  { %1855 = vmatprep.subr.bf16.mxu1 %v1974_v57 }
  0x63   :  { %1348 = vmatmul.mubr.bf16.vlgmr.msra.gmra.mxu0 %v1555_v52 }
  0x64   :  { %1389 = vmatmul.mubr.bf16.vlgmr.msra.gmra.mxu1 %v1557_v54  ;;  %1834 = vmatpush3.bf16.msra.mxu0 %v1975_v58 }
  0x65   :  { %1856 = vmatpush3.bf16.msra.mxu1 %v1976_v59  ;;  %1835 = vmatprep.subr.bf16.mxu0 %v1977_v60 }
  0x66   :  { %1857 = vmatprep.subr.bf16.mxu1 %v1978_v61  ;;  %1429 = vmatprep.mubr.bf16.mxu0 %v1560_v28 }
  0x67   :  { %1470 = vmatprep.mubr.bf16.mxu1 %v1562_v31 }
  0x68   :  { %1836 = vmatpush3.bf16.msra.mxu0 %v1979_v62 }
  0x69   :  { %1858 = vmatpush3.bf16.msra.mxu1 %v1980_v63  ;;  %1837 = vmatprep.subr.bf16.mxu0 %v1981_v0 }
  0x6a   :  { %1859 = vmatprep.subr.bf16.mxu1 %v1982_v1 }
  0x6c   :  { %1838 = vmatpush3.bf16.msra.mxu0 %v1983_v2 }
  0x6d   :  { %1860 = vmatpush3.bf16.msra.mxu1 %v1984_v3  ;;  %1839 = vmatprep.subr.bf16.mxu0 %v1985_v4 }
  0x6e   :  { %1861 = vmatprep.subr.bf16.mxu1 %v1986_v5 }
  0x70   :  { %1840 = vmatpush3.bf16.msra.mxu0 %v1987_v6 }
  0x71   :  { %1862 = vmatpush3.bf16.msra.mxu1 %v1988_v7  ;;  %1841 = vmatprep.subr.bf16.mxu0 %v1989_v8 }
  0x72   :  { %1863 = vmatprep.subr.bf16.mxu1 %v1990_v9 }
  0x74   :  { %1842 = vmatpush3.bf16.msra.mxu0 %v1991_v10 }
  0x75   :  { %1864 = vmatpush3.bf16.msra.mxu1 %v1992_v11  ;;  %1843 = vmatprep.subr.bf16.mxu0 %v1993_v12 }
  0x76   :  { %1865 = vmatprep.subr.bf16.mxu1 %v1994_v13 }
  0x78   :  { %1844 = vmatpush3.bf16.msra.mxu0 %v1995_v14 }
  0x79   :  { %1866 = vmatpush3.bf16.msra.mxu1 %v1996_v15  ;;  %1845 = vmatprep.subr.bf16.mxu0 %v1997_v16  ;;  %v1698_v16 = vld [vmem:[%s2501_s3] sm:$0xff]  }
  0x7a   :  { %1867 = vmatprep.subr.bf16.mxu1 %v1998_v17  ;;  %v1699_v26 = vunpack.c.l.bf16 %v1698_v16 }
  0x7c   :  { %1846 = vmatpush3.bf16.msra.mxu0 %v1999_v18 }
  0x7d   :  { %1868 = vmatpush3.bf16.msra.mxu1 %v2000_v19  ;;  %1847 = vmatprep.subr.bf16.mxu0 %v2001_v20 }
  0x7e   :  { %1869 = vmatprep.subr.bf16.mxu1 %v2002_v21 }
  0x80   :  { %1848 = vmatpush3.bf16.msra.mxu0 %v2003_v22 }
  0x81   :  { %1870 = vmatpush3.bf16.msra.mxu1 %v2004_v23 }
  0x83   :  { %1430 = vmatmul.mubr.bf16.vlgmr.msra.gmra.mxu0 %v1559_v27 }
  0x84   :  { %1471 = vmatmul.mubr.bf16.vlgmr.msra.gmra.mxu1 %v1561_v30 }
  0xe3   :  { %v1717_v32 = vpop.f32.mrf.mxu0 }
  0xe4   :  { %v1739_v33 = vpop.f32.mrf.mxu1 }
  0xe5   :  { %v1718_v34 = vpop.f32.mrf.mxu0 }
  0xe6   :  { %v1740_v35 = vpop.f32.mrf.mxu1  ;;  %v1719_v47 = vadd.f32 %v1718_v34, %v1717_v32 }
  0xe7   :  { %v1720_v36 = vpop.f32.mrf.mxu0  ;;  %v1741_v52 = vadd.f32 %v1740_v35, %v1739_v33  ;;  %v1700_v35 = vunpack.c.h.bf16 %v1698_v16 }
  0xe8   :  { %v1742_v37 = vpop.f32.mrf.mxu1  ;;  %v1186_v51 = vadd.f32 %v1719_v47, %v1546_v48 }
  0xe9   :  { %v1721_v38 = vpop.f32.mrf.mxu0 }
  0xea   :  { %v1743_v40 = vpop.f32.mrf.mxu1  ;;  %v1722_v53 = vadd.f32 %v1721_v38, %v1720_v36  ;;  %v1227_v57 = vadd.f32 %v1741_v52, %v1186_v51 }
  0xeb   :  { %v1744_v61 = vadd.f32 %v1743_v40, %v1742_v37 }
  0xec   :  { %v1189_v58 = vadd.f32 %v1722_v53, %v1546_v48 }
  0xee   :  { %v1230_v1 = vadd.f32 %v1744_v61, %v1189_v58 }
 0x103   :  { %v1761_v39 = vpop.f32.mrf.mxu0 }
 0x104   :  { %v1783_v41 = vpop.f32.mrf.mxu1 }
 0x105   :  { %v1762_v42 = vpop.f32.mrf.mxu0 }
 0x106   :  { %v1784_v43 = vpop.f32.mrf.mxu1  ;;  %v1763_v56 = vadd.f32 %v1762_v42, %v1761_v39 }
 0x107   :  { %v1764_v44 = vpop.f32.mrf.mxu0  ;;  %v1785_v63 = vadd.f32 %v1784_v43, %v1783_v41 }
 0x108   :  { %v1786_v45 = vpop.f32.mrf.mxu1  ;;  %v1268_v62 = vadd.f32 %v1763_v56, %v1227_v57  ;;  %v1691_v57 = vld [vmem:[%s2502_s4] ss:$0 sm:$0xff] }
 0x109   :  { %v1765_v46 = vpop.f32.mrf.mxu0 }
 0x10a   :  { %v1787_v50 = vpop.f32.mrf.mxu1  ;;  %v1766_v0 = vadd.f32 %v1765_v46, %v1764_v44  ;;  %v1309_v5 = vadd.f32 %v1785_v63, %v1268_v62 }
 0x10b   :  { %v1788_v7 = vadd.f32 %v1787_v50, %v1786_v45 }
 0x10c   :  { %v1271_v6 = vadd.f32 %v1766_v0, %v1230_v1 }
 0x10e   :  { %v1312_v13 = vadd.f32 %v1788_v7, %v1271_v6 }
 0x123   :  { %v1805_v49 = vpop.f32.mrf.mxu0 }
 0x124   :  { %v1827_v54 = vpop.f32.mrf.mxu1 }
 0x125   :  { %v1806_v55 = vpop.f32.mrf.mxu0 }
 0x126   :  { %v1828_v59 = vpop.f32.mrf.mxu1  ;;  %v1807_v2 = vadd.f32 %v1806_v55, %v1805_v49 }
 0x127   :  { %v1808_v60 = vpop.f32.mrf.mxu0  ;;  %v1829_v9 = vadd.f32 %v1828_v59, %v1827_v54  ;;  %v1692_v59 = vld [vmem:[%s2503_s5] ss:$0 sm:$0xff] }
 0x128   :  { %v1830_v3 = vpop.f32.mrf.mxu1  ;;  %v1350_v8 = vadd.f32 %v1807_v2, %v1309_v5 }
 0x129   :  { %v1809_v4 = vpop.f32.mrf.mxu0 }
 0x12a   :  { %v1810_v10 = vadd.f32 %v1809_v4, %v1808_v60  ;;  %v1831_v11 = vpop.f32.mrf.mxu1  ;;  %v1391_v17 = vadd.f32 %v1829_v9, %v1350_v8 }
 0x12b   :  { %v1832_v22 = vadd.f32 %v1831_v11, %v1830_v3 }
 0x12c   :  { %v1353_v18 = vadd.f32 %v1810_v10, %v1312_v13 }
 0x12e   :  { %v1394_v28 = vadd.f32 %v1832_v22, %v1353_v18 }
 0x143   :  { %v1849_v12 = vpop.f32.mrf.mxu0 }
 0x144   :  { %v1871_v14 = vpop.f32.mrf.mxu1 }
 0x145   :  { %v1850_v15 = vpop.f32.mrf.mxu0 }
 0x146   :  { %v1851_v19 = vadd.f32 %v1850_v15, %v1849_v12  ;;  %v1872_v20 = vpop.f32.mrf.mxu1 }
 0x147   :  { %v1852_v21 = vpop.f32.mrf.mxu0  ;;  %v1873_v24 = vadd.f32 %v1872_v20, %v1871_v14 }
 0x148   :  { %v1432_v23 = vadd.f32 %v1851_v19, %v1391_v17  ;;  %v1874_v25 = vpop.f32.mrf.mxu1 }
 0x149   :  { %v1853_v27 = vpop.f32.mrf.mxu0 }
 0x14a   :  { %v1473_v29 = vadd.f32 %v1873_v24, %v1432_v23  ;;  %v1854_v30 = vadd.f32 %v1853_v27, %v1852_v21  ;;  %v1875_v31 = vpop.f32.mrf.mxu1 }
 0x14b   :  { %v1876_v33 = vadd.f32 %v1875_v31, %v1874_v25 }
 0x14c   :  { %v1435_v32 = vadd.f32 %v1854_v30, %v1394_v28  ;;  %v1483_v34 = vadd.f32 %v1699_v26, %v1473_v29 }
 0x14e   :  { %v1476_v36 = vadd.f32 %v1876_v33, %v1435_v32  ;;  %v1486_v37 = vsel %vm1485_vm0, %v1483_v34, 0.0 }
 0x14f   :  { %1487 = vadd.xlane.f32.xlu0 %v1486_v37 }
 0x150   :  { %v1484_v38 = vadd.f32 %v1700_v35, %v1476_v36 }
 0x152   :  { %v1489_v39 = vsel %vm1485_vm0, %v1484_v38, 0.0 }
 0x153   :  { %1490 = vadd.xlane.f32.xlu0 %v1489_v39 }
 0x1d8   :  { %v1488_v40 = vpop.xlane.xlu0 %1487 }
 0x1d9   :  { %v1493_v41 = vmul.f32 0.03125, %v1488_v40 }
 0x1db   :  { %v1495_v42 = vsub.f32 %v1483_v34, %v1493_v41 }
 0x1dc   :  { %v1491_v43 = vpop.xlane.xlu0 %1490 }
 0x1dd   :  { %v1494_v44 = vmul.f32 0.03125, %v1491_v43  ;;  %v1497_v45 = vmul.f32 %v1495_v42, %v1495_v42 }
 0x1df   :  { %v1496_v46 = vsub.f32 %v1484_v38, %v1494_v44  ;;  %v1499_v47 = vsel %vm1485_vm0, %v1497_v45, 0.0 }
 0x1e0   :  { %1500 = vadd.xlane.f32.xlu1 %v1499_v47 }
 0x1e1   :  { %v1498_v48 = vmul.f32 %v1496_v46, %v1496_v46 }
 0x1e3   :  { %v1502_v49 = vsel %vm1485_vm0, %v1498_v48, 0.0 }
 0x1e4   :  { %1503 = vadd.xlane.f32.xlu1 %v1502_v49 }
 0x269   :  { %v1501_v50 = vpop.xlane.xlu1 %1500 }
 0x26a   :  { %v1505_v51 = vmul.f32 0.03125, %v1501_v50 }
 0x26c   :  { %v1507_v52 = vadd.f32 1e-05, %v1505_v51 }
 0x26d   :  { %v1504_v53 = vpop.xlane.xlu1 %1503 }
 0x26e   :  { %2005 = vrsqrt.f32 %v1507_v52  ;;  %v1506_v54 = vmul.f32 0.03125, %v1504_v53 }
 0x270   :  { %v1508_v55 = vadd.f32 1e-05, %v1506_v54 }
 0x272   :  { %2007 = vrsqrt.f32 %v1508_v55 }
 0x27b   :  { %v2006_v56 = vpop.eup %2005 }
 0x27c   :  { %v1511_v58 = vmul.f32 %v2006_v56, %v1495_v42 }
 0x27e   :  { %v1520_v60 = vmul.f32 %v1691_v57, %v1511_v58 }
 0x27f   :  { %v2008_v61 = vpop.eup %2007 }
 0x280   :  { %v1529_v62 = vadd.f32 %v1692_v59, %v1520_v60  ;;  %v1512_v63 = vmul.f32 %v2008_v61, %v1496_v46 }
 0x282   :  { %v1695_v0 = vpack.c.bf16 %v1529_v62, %v1529_v62  ;;  %v1521_v1 = vmul.f32 %v1691_v57, %v1512_v63 }
 0x284   :  { %1540 = vst.msk [vmem:[%s2504_s6] sm:$0xf] %vm1539_vm1, %v1695_v0  ;;  %v1530_v2 = vadd.f32 %v1692_v59, %v1521_v1 }
 0x286   :  { %v1696_v3 = vpack.c.bf16 %v1530_v2, %v1530_v2 }
 0x288   :  { %1541 = vst.msk [vmem:[%s2504_s6 + $0x4] sm:$0xf] %vm1539_vm1, %v1696_v3 }

</bundles_post_ra>
